<compile_context>
chip_gen: v6e
topology: v6e:2x2x1
jax: 0.10.0
libtpu: 0.0.40
codegen_flags: <defaults>
</compile_context>

<pallas_src>
import functools

import jax
import jax.numpy as jnp
from jax import lax
from jax.experimental import pallas as pl
from jax.experimental.pallas import tpu as pltpu

EPS = 1e-5                      # torch.nn.BatchNorm2d default
VMEM_LIMIT = 32 * 1024 * 1024   # explicit scoped-VMEM budget (safe on v5e/v6e/v7x)


# ---------------------------------------------------------------------------
# Kernels
# ---------------------------------------------------------------------------
def _conv_bn_stats_kernel(x_ref, scale_ref, shift_ref, w_ref,
                          y_ref, mean_ref, m2_ref,
                          pad_ref, col_ref, *, apply_relu, out_channel_major):
    """One image: (folded BN affine [+ReLU]) -> 3x3 SAME conv -> per-image stats.

    x_ref:     (1, H*W, Cin)  spatial-major activation tile (f32)
    scale_ref: (1, Cin)       folded BN scale for the *input* (identity in pass A)
    shift_ref: (1, Cin)       folded BN shift for the *input*
    w_ref:     tap-major bf16 weight slab, resident across the grid:
                 (9*Cin, Cout) if not out_channel_major, else (Cout, 9*Cin)
    y_ref:     pre-BN conv output: (1, H*W, Cout) or (1, Cout, H*W)
    mean_ref / m2_ref: per-image channel mean / centered sum-of-squares
    pad_ref:   (H+2, W+2, Cin) f32 scratch
    col_ref:   (H*W, 9*Cin)    f32 im2col scratch
    """
    _, HW, Cin = x_ref.shape
    Hp2, Wp2, _ = pad_ref.shape
    H, W = Hp2 - 2, Wp2 - 2

    # Folded-BN affine (+ ReLU) on the incoming activation (pure VPU work).
    h = x_ref[...].reshape(HW, Cin) * scale_ref[...] + shift_ref[...]
    if apply_relu:
        h = jnp.maximum(h, 0.0)

    # SAME padding: zero only the 1-pixel halo, write the interior directly.
    pad_ref[0:1, :, :] = jnp.zeros((1, Wp2, Cin), jnp.float32)
    pad_ref[H + 1:H + 2, :, :] = jnp.zeros((1, Wp2, Cin), jnp.float32)
    pad_ref[:, 0:1, :] = jnp.zeros((Hp2, 1, Cin), jnp.float32)
    pad_ref[:, W + 1:W + 2, :] = jnp.zeros((Hp2, 1, Cin), jnp.float32)
    pad_ref[1:H + 1, 1:W + 1, :] = h.reshape(H, W, Cin)

    # im2col slab -> a single MXU matmul per conv (K = 9*Cin).
    for t in range(9):
        dh, dw = t // 3, t % 3
        col_ref[:, t * Cin:(t + 1) * Cin] = (
            pad_ref[dh:dh + H, dw:dw + W, :].reshape(HW, Cin))
    col = col_ref[...].astype(jnp.bfloat16)          # bf16 MXU operand

    if out_channel_major:
        # (Cout, 9Cin) . (H*W, 9Cin)^T -> (Cout, H*W): lane-dense output
        cout = w_ref.shape[0]
        y = lax.dot_general(w_ref[...], col, (((1,), (1,)), ((), ())),
                            preferred_element_type=jnp.float32)
        y_ref[...] = y.reshape(1, cout, HW)
        mu = jnp.mean(y, axis=1, keepdims=True)      # (Cout, 1)
        d = y - mu
        mean_ref[...] = mu.reshape(1, cout, 1)
        m2_ref[...] = jnp.sum(d * d, axis=1, keepdims=True).reshape(1, cout, 1)
    else:
        # (H*W, 9Cin) . (9Cin, Cout) -> (H*W, Cout)
        cout = w_ref.shape[1]
        y = jnp.dot(col, w_ref[...], preferred_element_type=jnp.float32)
        y_ref[...] = y.reshape(1, HW, cout)
        mu = jnp.mean(y, axis=0, keepdims=True)      # (1, Cout)
        d = y - mu
        mean_ref[...] = mu.reshape(1, 1, cout)
        m2_ref[...] = jnp.sum(d * d, axis=0, keepdims=True).reshape(1, 1, cout)


def _bn_relu_kernel(y_ref, scale_ref, shift_ref, o_ref):
    """Pointwise folded-BN affine + ReLU on a channel-major (1, C, H*W) tile."""
    o_ref[...] = jnp.maximum(
        y_ref[...] * scale_ref[...] + shift_ref[...], 0.0)


# ---------------------------------------------------------------------------
# pallas_call builders
# ---------------------------------------------------------------------------
def _conv_bn_stats_pass(x_sm, scale, shift, w_slab, H, W, *,
                        apply_relu, out_channel_major):
    N, HW, Cin = x_sm.shape
    if out_channel_major:
        cout = w_slab.shape[0]
        y_shape = (N, cout, HW)
        stat_shape = (N, cout, 1)
    else:
        cout = w_slab.shape[1]
        y_shape = (N, HW, cout)
        stat_shape = (N, 1, cout)

    kern = functools.partial(_conv_bn_stats_kernel,
                             apply_relu=apply_relu,
                             out_channel_major=out_channel_major)
    return pl.pallas_call(
        kern,
        grid=(N,),
        in_specs=[
            pl.BlockSpec((1, HW, Cin), lambda n: (n, 0, 0)),
            pl.BlockSpec((1, Cin), lambda n: (0, 0)),        # resident
            pl.BlockSpec((1, Cin), lambda n: (0, 0)),        # resident
            pl.BlockSpec(w_slab.shape, lambda n: (0, 0)),    # resident weights
        ],
        out_specs=(
            pl.BlockSpec((1,) + y_shape[1:], lambda n: (n, 0, 0)),
            pl.BlockSpec((1,) + stat_shape[1:], lambda n: (n, 0, 0)),
            pl.BlockSpec((1,) + stat_shape[1:], lambda n: (n, 0, 0)),
        ),
        out_shape=(
            jax.ShapeDtypeStruct(y_shape, jnp.float32),
            jax.ShapeDtypeStruct(stat_shape, jnp.float32),
            jax.ShapeDtypeStruct(stat_shape, jnp.float32),
        ),
        scratch_shapes=[
            pltpu.VMEM((H + 2, W + 2, Cin), jnp.float32),    # padded image
            pltpu.VMEM((H * W, 9 * Cin), jnp.float32),       # im2col slab
        ],
        compiler_params=pltpu.CompilerParams(
            dimension_semantics=("parallel",),
            vmem_limit_bytes=VMEM_LIMIT),
    )(x_sm, scale, shift, w_slab)


def _bn_relu_pass(y_cm, scale, shift):
    N, C, HW = y_cm.shape
    return pl.pallas_call(
        _bn_relu_kernel,
        grid=(N,),
        in_specs=[
            pl.BlockSpec((1, C, HW), lambda n: (n, 0, 0)),
            pl.BlockSpec((C, 1), lambda n: (0, 0)),
            pl.BlockSpec((C, 1), lambda n: (0, 0)),
        ],
        out_specs=pl.BlockSpec((1, C, HW), lambda n: (n, 0, 0)),
        out_shape=jax.ShapeDtypeStruct((N, C, HW), jnp.float32),
        compiler_params=pltpu.CompilerParams(
            dimension_semantics=("parallel",),
            vmem_limit_bytes=VMEM_LIMIT),
    )(y_cm, scale, shift)


# ---------------------------------------------------------------------------
# Wrapper
# ---------------------------------------------------------------------------
def _bn_fold(tile_mean, tile_m2, count, gamma, beta):
    """Combine per-tile (mean, centered M2) with Chan's formula; fold BN affine."""
    n_tiles = tile_mean.shape[0]
    c = gamma.shape[0]
    tm = tile_mean.reshape(n_tiles, c)
    t2 = tile_m2.reshape(n_tiles, c)
    total = n_tiles * count
    mean = jnp.mean(tm, axis=0)                                        # (C,)
    dev = tm - mean
    var = (jnp.sum(t2, axis=0) + count * jnp.sum(dev * dev, axis=0)) / total
    inv = lax.rsqrt(var + EPS)
    scale = gamma * inv
    shift = beta - mean * scale
    return scale, shift                                                # (C,), (C,)


@jax.jit
def double_conv(x_nchw, w1, b1, g1, be1, w2, b2, g2, be2):
    """DoubleConv forward.  x_nchw: (N, Cin, H, W); w1/w2 in PyTorch OIHW.

    b1/b2 (conv biases) are accepted for API parity but unused: a per-channel
    constant bias is exactly cancelled by the training-mode BN mean
    subtraction that immediately follows each conv.
    """
    del b1, b2
    N, Cin, H, W = x_nchw.shape
    Cmid, Cout = w1.shape[0], w2.shape[0]
    HW = H * W

    # Input NCHW -> spatial-major (N, H*W, Cin).  (If the surrounding model
    # carries NHWC activations, feed them directly and drop this transpose.)
    x_sm = jnp.transpose(x_nchw, (0, 2, 3, 1)).reshape(N, HW, Cin)
    x_sm = x_sm.astype(jnp.float32)

    # Tap-major bf16 weight slabs (MXU-native operands).
    w1k = jnp.transpose(w1, (2, 3, 1, 0)).reshape(9 * Cin, Cmid).astype(jnp.bfloat16)
    w2k = jnp.transpose(w2, (0, 2, 3, 1)).reshape(Cout, 9 * Cmid).astype(jnp.bfloat16)

    ident = jnp.ones((1, Cin), jnp.float32)
    zero = jnp.zeros((1, Cin), jnp.float32)

    # Pass A: conv1 -> y1 (pre-BN) + per-image BN1 statistics.
    y1, mu1, m21 = _conv_bn_stats_pass(x_sm, ident, zero, w1k, H, W,
                                       apply_relu=False, out_channel_major=False)
    scale1, shift1 = _bn_fold(mu1, m21, HW, g1, be1)

    # Pass B: BN1 + ReLU + conv2 -> y2 (pre-BN, lane-dense channel-major)
    #         + per-image BN2 statistics.
    y2, mu2, m22 = _conv_bn_stats_pass(y1, scale1.reshape(1, Cmid),
                                       shift1.reshape(1, Cmid), w2k, H, W,
                                       apply_relu=True, out_channel_major=True)
    scale2, shift2 = _bn_fold(mu2, m22, HW, g2, be2)

    # Pass C: BN2 + ReLU -> output; channel-major == NCHW, so no transpose.
    out = _bn_relu_pass(y2, scale2.reshape(Cout, 1), shift2.reshape(Cout, 1))
    return out.reshape(N, Cout, H, W)


# ---------------------------------------------------------------------------
# Pure-JAX reference (training-mode BN semantics)
# ---------------------------------------------------------------------------
def _reference(x_nchw, w1, b1, g1, be1, w2, b2, g2, be2):
    """Conv operands are cast to bf16 (f32 accumulation) to mirror the
    kernel's MXU-native precision; BN math stays in f32.  Conv biases are
    kept here to demonstrate they are cancelled by the BN mean subtraction."""
    x = jnp.transpose(x_nchw, (0, 2, 3, 1)).astype(jnp.float32)

    def conv(x, w_oihw, b):
        w = jnp.transpose(w_oihw, (2, 3, 1, 0))                        # HWIO
        y = lax.conv_general_dilated(
            x.astype(jnp.bfloat16), w.astype(jnp.bfloat16),
            window_strides=(1, 1), padding="SAME",
            dimension_numbers=("NHWC", "HWIO", "NHWC"),
            preferred_element_type=jnp.float32)
        return y + b.reshape(1, 1, 1, -1)

    def bn_relu(y, g, be):
        mean = y.mean(axis=(0, 1, 2), keepdims=True)
        var = y.var(axis=(0, 1, 2), keepdims=True)
        yhat = (y - mean) / jnp.sqrt(var + EPS)
        return jnp.maximum(
            yhat * g.reshape(1, 1, 1, -1) + be.reshape(1, 1, 1, -1), 0.0)

    h = bn_relu(conv(x, w1, b1), g1, be1)
    o = bn_relu(conv(h, w2, b2), g2, be2)
    return jnp.transpose(o, (0, 3, 1, 2))


if __name__ == "__main__":
    # Small shapes: N=2, Cin=4, H=W=16, mid=out=8
    N, Cin, H, W = 2, 4, 16, 16
    Cmid, Cout = 8, 8

    key = jax.random.PRNGKey(0)
    k = jax.random.split(key, 5)
    x = jax.random.normal(k[0], (N, Cin, H, W), jnp.float32)

    # Conv params (deterministic synthetic init, PyTorch OIHW shapes)
    w1 = jax.random.normal(k[1], (Cmid, Cin, 3, 3), jnp.float32) * 0.1
    b1 = jax.random.normal(k[2], (Cmid,), jnp.float32) * 0.1
    w2 = jax.random.normal(k[3], (Cout, Cmid, 3, 3), jnp.float32) * 0.1
    b2 = jax.random.normal(k[4], (Cout,), jnp.float32) * 0.1
    # BatchNorm affine params (PyTorch default init: gamma=1, beta=0)
    g1 = jnp.ones((Cmid,), jnp.float32)
    be1 = jnp.zeros((Cmid,), jnp.float32)
    g2 = jnp.ones((Cout,), jnp.float32)
    be2 = jnp.zeros((Cout,), jnp.float32)

    out = double_conv(x, w1, b1, g1, be1, w2, b2, g2, be2)
    out = jax.block_until_ready(out)

    ref = _reference(x, w1, b1, g1, be1, w2, b2, g2, be2)
    assert out.shape == (N, Cout, H, W)
    # Tolerance accounts for bf16 MXU operands and fp reassociation in the
    # tiled BN-statistic accumulation.
    assert jnp.allclose(out, ref, atol=1e-2, rtol=1e-2), "mismatch vs reference"

    print("KERNEL_OK")
</pallas_src>

<mosaic_0001>
module attributes {stable_mosaic.version = 11 : i64} {
  func.func @_bn_relu_kernel(%arg0: i32, %arg1: memref<1x8x256xf32, #tpu.memory_space<vmem>>, %arg2: memref<8x1xf32, #tpu.memory_space<vmem>>, %arg3: memref<8x1xf32, #tpu.memory_space<vmem>>, %arg4: memref<1x8x256xf32, #tpu.memory_space<vmem>>) attributes {dimension_semantics = [#tpu.dimension_semantics<parallel>], iteration_bounds = array<i64: 2>, scalar_prefetch = 0 : i64, scratch_operands = 0 : i64, tpu.core_type = #tpu.core_type<tc>, window_params = [{transform_indices = @transform_0, window_bounds = array<i64: 1, 8, 256>}, {pipeline_mode = #tpu.pipeline_mode<synchronous>, transform_indices = @transform_1, window_bounds = array<i64: 8, 1>}, {pipeline_mode = #tpu.pipeline_mode<synchronous>, transform_indices = @transform_2, window_bounds = array<i64: 8, 1>}, {transform_indices = @transform_3, window_bounds = array<i64: 1, 8, 256>}]} {
    %c0 = arith.constant 0 : index
    %c0_0 = arith.constant 0 : index
    %c0_1 = arith.constant 0 : index
    %0 = vector.load %arg1[%c0, %c0_0, %c0_1] : memref<1x8x256xf32, #tpu.memory_space<vmem>>, vector<1x8x256xf32>
    %c0_2 = arith.constant 0 : index
    %c0_3 = arith.constant 0 : index
    %1 = vector.load %arg2[%c0_2, %c0_3] : memref<8x1xf32, #tpu.memory_space<vmem>>, vector<8x1xf32>
    %2 = vector.shape_cast %1 : vector<8x1xf32> to vector<1x8x1xf32>
    %3 = vector.broadcast %2 : vector<1x8x1xf32> to vector<1x8x256xf32>
    %4 = arith.mulf %0, %3 : vector<1x8x256xf32>
    %c0_4 = arith.constant 0 : index
    %c0_5 = arith.constant 0 : index
    %5 = vector.load %arg3[%c0_4, %c0_5] : memref<8x1xf32, #tpu.memory_space<vmem>>, vector<8x1xf32>
    %6 = vector.shape_cast %5 : vector<8x1xf32> to vector<1x8x1xf32>
    %7 = vector.broadcast %6 : vector<1x8x1xf32> to vector<1x8x256xf32>
    %8 = arith.addf %4, %7 : vector<1x8x256xf32>
    %cst = arith.constant 0.000000e+00 : f32
    %9 = vector.broadcast %cst : f32 to vector<1x8x256xf32>
    %10 = arith.maximumf %8, %9 : vector<1x8x256xf32>
    %c0_6 = arith.constant 0 : index
    %c0_7 = arith.constant 0 : index
    %c0_8 = arith.constant 0 : index
    %11 = vector.load %arg4[%c0_6, %c0_7, %c0_8] : memref<1x8x256xf32, #tpu.memory_space<vmem>>, vector<1x8x256xf32>
    tpu.vector_store %arg4[%c0_6, %c0_7, %c0_8], %10 {strides = array<i32>} : memref<1x8x256xf32, #tpu.memory_space<vmem>>, vector<1x8x256xf32>,
    return
  }
  func.func @transform_0(%arg0: i32) -> (i32, i32, i32) {
    %c0_i32 = arith.constant 0 : i32
    %c0_i32_0 = arith.constant 0 : i32
    %c0_i32_1 = arith.constant 0 : i32
    return %arg0, %c0_i32, %c0_i32_0 : i32, i32, i32
  }
  func.func @transform_1(%arg0: i32) -> (i32, i32) {
    %c0_i32 = arith.constant 0 : i32
    %c0_i32_0 = arith.constant 0 : i32
    %c0_i32_1 = arith.constant 0 : i32
    return %c0_i32, %c0_i32_0 : i32, i32
  }
  func.func @transform_2(%arg0: i32) -> (i32, i32) {
    %c0_i32 = arith.constant 0 : i32
    %c0_i32_0 = arith.constant 0 : i32
    %c0_i32_1 = arith.constant 0 : i32
    return %c0_i32, %c0_i32_0 : i32, i32
  }
  func.func @transform_3(%arg0: i32) -> (i32, i32, i32) {
    %c0_i32 = arith.constant 0 : i32
    %c0_i32_0 = arith.constant 0 : i32
    %c0_i32_1 = arith.constant 0 : i32
    return %arg0, %c0_i32, %c0_i32_0 : i32, i32, i32
  }
}

module attributes {stable_mosaic.version = 11 : i64} {
  func.func @_conv_bn_stats_kernel(%arg0: i32, %arg1: memref<1x256x4xf32, #tpu.memory_space<vmem>>, %arg2: memref<1x4xf32, #tpu.memory_space<vmem>>, %arg3: memref<1x4xf32, #tpu.memory_space<vmem>>, %arg4: memref<36x8xbf16, #tpu.memory_space<vmem>>, %arg5: memref<1x256x8xf32, #tpu.memory_space<vmem>>, %arg6: memref<1x1x8xf32, #tpu.memory_space<vmem>>, %arg7: memref<1x1x8xf32, #tpu.memory_space<vmem>>, %arg8: memref<18x18x4xf32, #tpu.memory_space<vmem>>, %arg9: memref<256x36xf32, #tpu.memory_space<vmem>>) attributes {dimension_semantics = [#tpu.dimension_semantics<parallel>], iteration_bounds = array<i64: 2>, scalar_prefetch = 0 : i64, scratch_operands = 2 : i64, tpu.core_type = #tpu.core_type<tc>, window_params = [{transform_indices = @transform_0, window_bounds = array<i64: 1, 256, 4>}, {pipeline_mode = #tpu.pipeline_mode<synchronous>, transform_indices = @transform_1, window_bounds = array<i64: 1, 4>}, {pipeline_mode = #tpu.pipeline_mode<synchronous>, transform_indices = @transform_2, window_bounds = array<i64: 1, 4>}, {pipeline_mode = #tpu.pipeline_mode<synchronous>, transform_indices = @transform_3, window_bounds = array<i64: 36, 8>}, {transform_indices = @transform_4, window_bounds = array<i64: 1, 256, 8>}, {transform_indices = @transform_5, window_bounds = array<i64: 1, 1, 8>}, {transform_indices = @transform_6, window_bounds = array<i64: 1, 1, 8>}]} {
    %c0 = arith.constant 0 : index
    %c0_0 = arith.constant 0 : index
    %c0_1 = arith.constant 0 : index
    %0 = vector.load %arg1[%c0, %c0_0, %c0_1] : memref<1x256x4xf32, #tpu.memory_space<vmem>>, vector<1x256x4xf32>
    %1 = vector.shape_cast %0 : vector<1x256x4xf32> to vector<256x4xf32>
    %c0_2 = arith.constant 0 : index
    %c0_3 = arith.constant 0 : index
    %2 = vector.load %arg2[%c0_2, %c0_3] : memref<1x4xf32, #tpu.memory_space<vmem>>, vector<1x4xf32>
    %3 = vector.broadcast %2 : vector<1x4xf32> to vector<256x4xf32>
    %4 = arith.mulf %1, %3 : vector<256x4xf32>
    %c0_4 = arith.constant 0 : index
    %c0_5 = arith.constant 0 : index
    %5 = vector.load %arg3[%c0_4, %c0_5] : memref<1x4xf32, #tpu.memory_space<vmem>>, vector<1x4xf32>
    %6 = vector.broadcast %5 : vector<1x4xf32> to vector<256x4xf32>
    %7 = arith.addf %4, %6 : vector<256x4xf32>
    %cst = arith.constant 0.000000e+00 : f32
    %8 = vector.broadcast %cst : f32 to vector<1x18x4xf32>
    %c0_6 = arith.constant 0 : index
    %c0_7 = arith.constant 0 : index
    %c0_8 = arith.constant 0 : index
    %9 = vector.load %arg8[%c0_6, %c0_7, %c0_8] : memref<18x18x4xf32, #tpu.memory_space<vmem>>, vector<1x18x4xf32>
    tpu.vector_store %arg8[%c0_6, %c0_7, %c0_8], %8 {strides = array<i32>} : memref<18x18x4xf32, #tpu.memory_space<vmem>>, vector<1x18x4xf32>,
    %cst_9 = arith.constant 0.000000e+00 : f32
    %10 = vector.broadcast %cst_9 : f32 to vector<1x18x4xf32>
    %c17 = arith.constant 17 : index
    %c0_10 = arith.constant 0 : index
    %c0_11 = arith.constant 0 : index
    %11 = vector.load %arg8[%c17, %c0_10, %c0_11] : memref<18x18x4xf32, #tpu.memory_space<vmem>>, vector<1x18x4xf32>
    tpu.vector_store %arg8[%c17, %c0_10, %c0_11], %10 {strides = array<i32>} : memref<18x18x4xf32, #tpu.memory_space<vmem>>, vector<1x18x4xf32>,
    %cst_12 = arith.constant 0.000000e+00 : f32
    %12 = vector.broadcast %cst_12 : f32 to vector<18x1x4xf32>
    %c0_13 = arith.constant 0 : index
    %c0_14 = arith.constant 0 : index
    %c0_15 = arith.constant 0 : index
    %13 = vector.load %arg8[%c0_13, %c0_14, %c0_15] : memref<18x18x4xf32, #tpu.memory_space<vmem>>, vector<18x1x4xf32>
    tpu.vector_store %arg8[%c0_13, %c0_14, %c0_15], %12 {strides = array<i32>} : memref<18x18x4xf32, #tpu.memory_space<vmem>>, vector<18x1x4xf32>,
    %cst_16 = arith.constant 0.000000e+00 : f32
    %14 = vector.broadcast %cst_16 : f32 to vector<18x1x4xf32>
    %c0_17 = arith.constant 0 : index
    %c17_18 = arith.constant 17 : index
    %c0_19 = arith.constant 0 : index
    %15 = vector.load %arg8[%c0_17, %c17_18, %c0_19] : memref<18x18x4xf32, #tpu.memory_space<vmem>>, vector<18x1x4xf32>
    tpu.vector_store %arg8[%c0_17, %c17_18, %c0_19], %14 {strides = array<i32>} : memref<18x18x4xf32, #tpu.memory_space<vmem>>, vector<18x1x4xf32>,
    %16 = vector.shape_cast %7 : vector<256x4xf32> to vector<16x16x4xf32>
    %c1 = arith.constant 1 : index
    %c1_20 = arith.constant 1 : index
    %c0_21 = arith.constant 0 : index
    %17 = vector.load %arg8[%c1, %c1_20, %c0_21] : memref<18x18x4xf32, #tpu.memory_space<vmem>>, vector<16x16x4xf32>
    tpu.vector_store %arg8[%c1, %c1_20, %c0_21], %16 {strides = array<i32>} : memref<18x18x4xf32, #tpu.memory_space<vmem>>, vector<16x16x4xf32>,
    %c0_22 = arith.constant 0 : index
    %c0_23 = arith.constant 0 : index
    %c0_24 = arith.constant 0 : index
    %18 = vector.load %arg8[%c0_22, %c0_23, %c0_24] : memref<18x18x4xf32, #tpu.memory_space<vmem>>, vector<16x16x4xf32>
    %19 = vector.shape_cast %18 : vector<16x16x4xf32> to vector<256x4xf32>
    %c0_25 = arith.constant 0 : index
    %c0_26 = arith.constant 0 : index
    %20 = vector.load %arg9[%c0_25, %c0_26] : memref<256x36xf32, #tpu.memory_space<vmem>>, vector<256x4xf32>
    tpu.vector_store %arg9[%c0_25, %c0_26], %19 {strides = array<i32>} : memref<256x36xf32, #tpu.memory_space<vmem>>, vector<256x4xf32>,
    %c0_27 = arith.constant 0 : index
    %c1_28 = arith.constant 1 : index
    %c0_29 = arith.constant 0 : index
    %21 = vector.load %arg8[%c0_27, %c1_28, %c0_29] : memref<18x18x4xf32, #tpu.memory_space<vmem>>, vector<16x16x4xf32>
    %22 = vector.shape_cast %21 : vector<16x16x4xf32> to vector<256x4xf32>
    %c0_30 = arith.constant 0 : index
    %c4 = arith.constant 4 : index
    %23 = vector.load %arg9[%c0_30, %c4] : memref<256x36xf32, #tpu.memory_space<vmem>>, vector<256x4xf32>
    tpu.vector_store %arg9[%c0_30, %c4], %22 {strides = array<i32>} : memref<256x36xf32, #tpu.memory_space<vmem>>, vector<256x4xf32>,
    %c0_31 = arith.constant 0 : index
    %c2 = arith.constant 2 : index
    %c0_32 = arith.constant 0 : index
    %24 = vector.load %arg8[%c0_31, %c2, %c0_32] : memref<18x18x4xf32, #tpu.memory_space<vmem>>, vector<16x16x4xf32>
    %25 = vector.shape_cast %24 : vector<16x16x4xf32> to vector<256x4xf32>
    %c0_33 = arith.constant 0 : index
    %c8 = arith.constant 8 : index
    %26 = vector.load %arg9[%c0_33, %c8] : memref<256x36xf32, #tpu.memory_space<vmem>>, vector<256x4xf32>
    tpu.vector_store %arg9[%c0_33, %c8], %25 {strides = array<i32>} : memref<256x36xf32, #tpu.memory_space<vmem>>, vector<256x4xf32>,
    %c1_34 = arith.constant 1 : index
    %c0_35 = arith.constant 0 : index
    %c0_36 = arith.constant 0 : index
    %27 = vector.load %arg8[%c1_34, %c0_35, %c0_36] : memref<18x18x4xf32, #tpu.memory_space<vmem>>, vector<16x16x4xf32>
    %28 = vector.shape_cast %27 : vector<16x16x4xf32> to vector<256x4xf32>
    %c0_37 = arith.constant 0 : index
    %c12 = arith.constant 12 : index
    %29 = vector.load %arg9[%c0_37, %c12] : memref<256x36xf32, #tpu.memory_space<vmem>>, vector<256x4xf32>
    tpu.vector_store %arg9[%c0_37, %c12], %28 {strides = array<i32>} : memref<256x36xf32, #tpu.memory_space<vmem>>, vector<256x4xf32>,
    %c1_38 = arith.constant 1 : index
    %c1_39 = arith.constant 1 : index
    %c0_40 = arith.constant 0 : index
    %30 = vector.load %arg8[%c1_38, %c1_39, %c0_40] : memref<18x18x4xf32, #tpu.memory_space<vmem>>, vector<16x16x4xf32>
    %31 = vector.shape_cast %30 : vector<16x16x4xf32> to vector<256x4xf32>
    %c0_41 = arith.constant 0 : index
    %c16 = arith.constant 16 : index
    %32 = vector.load %arg9[%c0_41, %c16] : memref<256x36xf32, #tpu.memory_space<vmem>>, vector<256x4xf32>
    tpu.vector_store %arg9[%c0_41, %c16], %31 {strides = array<i32>} : memref<256x36xf32, #tpu.memory_space<vmem>>, vector<256x4xf32>,
    %c1_42 = arith.constant 1 : index
    %c2_43 = arith.constant 2 : index
    %c0_44 = arith.constant 0 : index
    %33 = vector.load %arg8[%c1_42, %c2_43, %c0_44] : memref<18x18x4xf32, #tpu.memory_space<vmem>>, vector<16x16x4xf32>
    %34 = vector.shape_cast %33 : vector<16x16x4xf32> to vector<256x4xf32>
    %c0_45 = arith.constant 0 : index
    %c20 = arith.constant 20 : index
    %35 = vector.load %arg9[%c0_45, %c20] : memref<256x36xf32, #tpu.memory_space<vmem>>, vector<256x4xf32>
    tpu.vector_store %arg9[%c0_45, %c20], %34 {strides = array<i32>} : memref<256x36xf32, #tpu.memory_space<vmem>>, vector<256x4xf32>,
    %c2_46 = arith.constant 2 : index
    %c0_47 = arith.constant 0 : index
    %c0_48 = arith.constant 0 : index
    %36 = vector.load %arg8[%c2_46, %c0_47, %c0_48] : memref<18x18x4xf32, #tpu.memory_space<vmem>>, vector<16x16x4xf32>
    %37 = vector.shape_cast %36 : vector<16x16x4xf32> to vector<256x4xf32>
    %c0_49 = arith.constant 0 : index
    %c24 = arith.constant 24 : index
    %38 = vector.load %arg9[%c0_49, %c24] : memref<256x36xf32, #tpu.memory_space<vmem>>, vector<256x4xf32>
    tpu.vector_store %arg9[%c0_49, %c24], %37 {strides = array<i32>} : memref<256x36xf32, #tpu.memory_space<vmem>>, vector<256x4xf32>,
    %c2_50 = arith.constant 2 : index
    %c1_51 = arith.constant 1 : index
    %c0_52 = arith.constant 0 : index
    %39 = vector.load %arg8[%c2_50, %c1_51, %c0_52] : memref<18x18x4xf32, #tpu.memory_space<vmem>>, vector<16x16x4xf32>
    %40 = vector.shape_cast %39 : vector<16x16x4xf32> to vector<256x4xf32>
    %c0_53 = arith.constant 0 : index
    %c28 = arith.constant 28 : index
    %41 = vector.load %arg9[%c0_53, %c28] : memref<256x36xf32, #tpu.memory_space<vmem>>, vector<256x4xf32>
    tpu.vector_store %arg9[%c0_53, %c28], %40 {strides = array<i32>} : memref<256x36xf32, #tpu.memory_space<vmem>>, vector<256x4xf32>,
    %c2_54 = arith.constant 2 : index
    %c2_55 = arith.constant 2 : index
    %c0_56 = arith.constant 0 : index
    %42 = vector.load %arg8[%c2_54, %c2_55, %c0_56] : memref<18x18x4xf32, #tpu.memory_space<vmem>>, vector<16x16x4xf32>
    %43 = vector.shape_cast %42 : vector<16x16x4xf32> to vector<256x4xf32>
    %c0_57 = arith.constant 0 : index
    %c32 = arith.constant 32 : index
    %44 = vector.load %arg9[%c0_57, %c32] : memref<256x36xf32, #tpu.memory_space<vmem>>, vector<256x4xf32>
    tpu.vector_store %arg9[%c0_57, %c32], %43 {strides = array<i32>} : memref<256x36xf32, #tpu.memory_space<vmem>>, vector<256x4xf32>,
    %c0_58 = arith.constant 0 : index
    %c0_59 = arith.constant 0 : index
    %45 = vector.load %arg9[%c0_58, %c0_59] : memref<256x36xf32, #tpu.memory_space<vmem>>, vector<256x36xf32>
    %46 = arith.truncf %45 : vector<256x36xf32> to vector<256x36xbf16>
    %c0_60 = arith.constant 0 : index
    %c0_61 = arith.constant 0 : index
    %47 = vector.load %arg4[%c0_60, %c0_61] : memref<36x8xbf16, #tpu.memory_space<vmem>>, vector<36x8xbf16>
    %cst_62 = arith.constant dense<0.000000e+00> : vector<256x8xf32>
    %48 = tpu.matmul %46, %47, %cst_62 {dimension_numbers = #tpu.dot_dimension_numbers<[1], [0], [0], [1], [0, 0, 1, 1], [], []>} : vector<256x36xbf16>, vector<36x8xbf16>, vector<256x8xf32> -> vector<256x8xf32>
    %49 = vector.shape_cast %48 : vector<256x8xf32> to vector<1x256x8xf32>
    %c0_63 = arith.constant 0 : index
    %c0_64 = arith.constant 0 : index
    %c0_65 = arith.constant 0 : index
    %50 = vector.load %arg5[%c0_63, %c0_64, %c0_65] : memref<1x256x8xf32, #tpu.memory_space<vmem>>, vector<1x256x8xf32>
    tpu.vector_store %arg5[%c0_63, %c0_64, %c0_65], %49 {strides = array<i32>} : memref<1x256x8xf32, #tpu.memory_space<vmem>>, vector<1x256x8xf32>,
    %cst_66 = arith.constant dense<0.000000e+00> : vector<8xf32>
    %51 = vector.multi_reduction <add>, %48, %cst_66 [0] : vector<256x8xf32> to vector<8xf32>
    %52 = vector.shape_cast %51 : vector<8xf32> to vector<1x8xf32>
    %cst_67 = arith.constant 2.560000e+02 : f32
    %53 = vector.broadcast %cst_67 : f32 to vector<1x8xf32>
    %54 = arith.divf %52, %53 : vector<1x8xf32>
    %55 = vector.broadcast %54 : vector<1x8xf32> to vector<256x8xf32>
    %56 = arith.subf %48, %55 : vector<256x8xf32>
    %57 = vector.shape_cast %54 : vector<1x8xf32> to vector<1x1x8xf32>
    %c0_68 = arith.constant 0 : index
    %c0_69 = arith.constant 0 : index
    %c0_70 = arith.constant 0 : index
    %58 = vector.load %arg6[%c0_68, %c0_69, %c0_70] : memref<1x1x8xf32, #tpu.memory_space<vmem>>, vector<1x1x8xf32>
    tpu.vector_store %arg6[%c0_68, %c0_69, %c0_70], %57 {strides = array<i32>} : memref<1x1x8xf32, #tpu.memory_space<vmem>>, vector<1x1x8xf32>,
    %59 = arith.mulf %56, %56 : vector<256x8xf32>
    %cst_71 = arith.constant dense<0.000000e+00> : vector<8xf32>
    %60 = vector.multi_reduction <add>, %59, %cst_71 [0] : vector<256x8xf32> to vector<8xf32>
    %61 = vector.shape_cast %60 : vector<8xf32> to vector<1x8xf32>
    %62 = vector.shape_cast %61 : vector<1x8xf32> to vector<1x1x8xf32>
    %c0_72 = arith.constant 0 : index
    %c0_73 = arith.constant 0 : index
    %c0_74 = arith.constant 0 : index
    %63 = vector.load %arg7[%c0_72, %c0_73, %c0_74] : memref<1x1x8xf32, #tpu.memory_space<vmem>>, vector<1x1x8xf32>
    tpu.vector_store %arg7[%c0_72, %c0_73, %c0_74], %62 {strides = array<i32>} : memref<1x1x8xf32, #tpu.memory_space<vmem>>, vector<1x1x8xf32>,
    return
  }
  func.func @transform_0(%arg0: i32) -> (i32, i32, i32) {
    %c0_i32 = arith.constant 0 : i32
    %c0_i32_0 = arith.constant 0 : i32
    %c0_i32_1 = arith.constant 0 : i32
    return %arg0, %c0_i32, %c0_i32_0 : i32, i32, i32
  }
  func.func @transform_1(%arg0: i32) -> (i32, i32) {
    %c0_i32 = arith.constant 0 : i32
    %c0_i32_0 = arith.constant 0 : i32
    %c0_i32_1 = arith.constant 0 : i32
    return %c0_i32, %c0_i32_0 : i32, i32
  }
  func.func @transform_2(%arg0: i32) -> (i32, i32) {
    %c0_i32 = arith.constant 0 : i32
    %c0_i32_0 = arith.constant 0 : i32
    %c0_i32_1 = arith.constant 0 : i32
    return %c0_i32, %c0_i32_0 : i32, i32
  }
  func.func @transform_3(%arg0: i32) -> (i32, i32) {
    %c0_i32 = arith.constant 0 : i32
    %c0_i32_0 = arith.constant 0 : i32
    %c0_i32_1 = arith.constant 0 : i32
    return %c0_i32, %c0_i32_0 : i32, i32
  }
  func.func @transform_4(%arg0: i32) -> (i32, i32, i32) {
    %c0_i32 = arith.constant 0 : i32
    %c0_i32_0 = arith.constant 0 : i32
    %c0_i32_1 = arith.constant 0 : i32
    return %arg0, %c0_i32, %c0_i32_0 : i32, i32, i32
  }
  func.func @transform_5(%arg0: i32) -> (i32, i32, i32) {
    %c0_i32 = arith.constant 0 : i32
    %c0_i32_0 = arith.constant 0 : i32
    %c0_i32_1 = arith.constant 0 : i32
    return %arg0, %c0_i32, %c0_i32_0 : i32, i32, i32
  }
  func.func @transform_6(%arg0: i32) -> (i32, i32, i32) {
    %c0_i32 = arith.constant 0 : i32
    %c0_i32_0 = arith.constant 0 : i32
    %c0_i32_1 = arith.constant 0 : i32
    return %arg0, %c0_i32, %c0_i32_0 : i32, i32, i32
  }
}

module attributes {stable_mosaic.version = 11 : i64} {
  func.func @_conv_bn_stats_kernel(%arg0: i32, %arg1: memref<1x256x8xf32, #tpu.memory_space<vmem>>, %arg2: memref<1x8xf32, #tpu.memory_space<vmem>>, %arg3: memref<1x8xf32, #tpu.memory_space<vmem>>, %arg4: memref<8x72xbf16, #tpu.memory_space<vmem>>, %arg5: memref<1x8x256xf32, #tpu.memory_space<vmem>>, %arg6: memref<1x8x1xf32, #tpu.memory_space<vmem>>, %arg7: memref<1x8x1xf32, #tpu.memory_space<vmem>>, %arg8: memref<18x18x8xf32, #tpu.memory_space<vmem>>, %arg9: memref<256x72xf32, #tpu.memory_space<vmem>>) attributes {dimension_semantics = [#tpu.dimension_semantics<parallel>], iteration_bounds = array<i64: 2>, scalar_prefetch = 0 : i64, scratch_operands = 2 : i64, tpu.core_type = #tpu.core_type<tc>, window_params = [{transform_indices = @transform_0, window_bounds = array<i64: 1, 256, 8>}, {pipeline_mode = #tpu.pipeline_mode<synchronous>, transform_indices = @transform_1, window_bounds = array<i64: 1, 8>}, {pipeline_mode = #tpu.pipeline_mode<synchronous>, transform_indices = @transform_2, window_bounds = array<i64: 1, 8>}, {pipeline_mode = #tpu.pipeline_mode<synchronous>, transform_indices = @transform_3, window_bounds = array<i64: 8, 72>}, {transform_indices = @transform_4, window_bounds = array<i64: 1, 8, 256>}, {transform_indices = @transform_5, window_bounds = array<i64: 1, 8, 1>}, {transform_indices = @transform_6, window_bounds = array<i64: 1, 8, 1>}]} {
    %c0 = arith.constant 0 : index
    %c0_0 = arith.constant 0 : index
    %c0_1 = arith.constant 0 : index
    %0 = vector.load %arg1[%c0, %c0_0, %c0_1] : memref<1x256x8xf32, #tpu.memory_space<vmem>>, vector<1x256x8xf32>
    %1 = vector.shape_cast %0 : vector<1x256x8xf32> to vector<256x8xf32>
    %c0_2 = arith.constant 0 : index
    %c0_3 = arith.constant 0 : index
    %2 = vector.load %arg2[%c0_2, %c0_3] : memref<1x8xf32, #tpu.memory_space<vmem>>, vector<1x8xf32>
    %3 = vector.broadcast %2 : vector<1x8xf32> to vector<256x8xf32>
    %4 = arith.mulf %1, %3 : vector<256x8xf32>
    %c0_4 = arith.constant 0 : index
    %c0_5 = arith.constant 0 : index
    %5 = vector.load %arg3[%c0_4, %c0_5] : memref<1x8xf32, #tpu.memory_space<vmem>>, vector<1x8xf32>
    %6 = vector.broadcast %5 : vector<1x8xf32> to vector<256x8xf32>
    %7 = arith.addf %4, %6 : vector<256x8xf32>
    %cst = arith.constant 0.000000e+00 : f32
    %8 = vector.broadcast %cst : f32 to vector<256x8xf32>
    %9 = arith.maximumf %7, %8 : vector<256x8xf32>
    %cst_6 = arith.constant 0.000000e+00 : f32
    %10 = vector.broadcast %cst_6 : f32 to vector<1x18x8xf32>
    %c0_7 = arith.constant 0 : index
    %c0_8 = arith.constant 0 : index
    %c0_9 = arith.constant 0 : index
    %11 = vector.load %arg8[%c0_7, %c0_8, %c0_9] : memref<18x18x8xf32, #tpu.memory_space<vmem>>, vector<1x18x8xf32>
    tpu.vector_store %arg8[%c0_7, %c0_8, %c0_9], %10 {strides = array<i32>} : memref<18x18x8xf32, #tpu.memory_space<vmem>>, vector<1x18x8xf32>,
    %cst_10 = arith.constant 0.000000e+00 : f32
    %12 = vector.broadcast %cst_10 : f32 to vector<1x18x8xf32>
    %c17 = arith.constant 17 : index
    %c0_11 = arith.constant 0 : index
    %c0_12 = arith.constant 0 : index
    %13 = vector.load %arg8[%c17, %c0_11, %c0_12] : memref<18x18x8xf32, #tpu.memory_space<vmem>>, vector<1x18x8xf32>
    tpu.vector_store %arg8[%c17, %c0_11, %c0_12], %12 {strides = array<i32>} : memref<18x18x8xf32, #tpu.memory_space<vmem>>, vector<1x18x8xf32>,
    %cst_13 = arith.constant 0.000000e+00 : f32
    %14 = vector.broadcast %cst_13 : f32 to vector<18x1x8xf32>
    %c0_14 = arith.constant 0 : index
    %c0_15 = arith.constant 0 : index
    %c0_16 = arith.constant 0 : index
    %15 = vector.load %arg8[%c0_14, %c0_15, %c0_16] : memref<18x18x8xf32, #tpu.memory_space<vmem>>, vector<18x1x8xf32>
    tpu.vector_store %arg8[%c0_14, %c0_15, %c0_16], %14 {strides = array<i32>} : memref<18x18x8xf32, #tpu.memory_space<vmem>>, vector<18x1x8xf32>,
    %cst_17 = arith.constant 0.000000e+00 : f32
    %16 = vector.broadcast %cst_17 : f32 to vector<18x1x8xf32>
    %c0_18 = arith.constant 0 : index
    %c17_19 = arith.constant 17 : index
    %c0_20 = arith.constant 0 : index
    %17 = vector.load %arg8[%c0_18, %c17_19, %c0_20] : memref<18x18x8xf32, #tpu.memory_space<vmem>>, vector<18x1x8xf32>
    tpu.vector_store %arg8[%c0_18, %c17_19, %c0_20], %16 {strides = array<i32>} : memref<18x18x8xf32, #tpu.memory_space<vmem>>, vector<18x1x8xf32>,
    %18 = vector.shape_cast %9 : vector<256x8xf32> to vector<16x16x8xf32>
    %c1 = arith.constant 1 : index
    %c1_21 = arith.constant 1 : index
    %c0_22 = arith.constant 0 : index
    %19 = vector.load %arg8[%c1, %c1_21, %c0_22] : memref<18x18x8xf32, #tpu.memory_space<vmem>>, vector<16x16x8xf32>
    tpu.vector_store %arg8[%c1, %c1_21, %c0_22], %18 {strides = array<i32>} : memref<18x18x8xf32, #tpu.memory_space<vmem>>, vector<16x16x8xf32>,
    %c0_23 = arith.constant 0 : index
    %c0_24 = arith.constant 0 : index
    %c0_25 = arith.constant 0 : index
    %20 = vector.load %arg8[%c0_23, %c0_24, %c0_25] : memref<18x18x8xf32, #tpu.memory_space<vmem>>, vector<16x16x8xf32>
    %21 = vector.shape_cast %20 : vector<16x16x8xf32> to vector<256x8xf32>
    %c0_26 = arith.constant 0 : index
    %c0_27 = arith.constant 0 : index
    %22 = vector.load %arg9[%c0_26, %c0_27] : memref<256x72xf32, #tpu.memory_space<vmem>>, vector<256x8xf32>
    tpu.vector_store %arg9[%c0_26, %c0_27], %21 {strides = array<i32>} : memref<256x72xf32, #tpu.memory_space<vmem>>, vector<256x8xf32>,
    %c0_28 = arith.constant 0 : index
    %c1_29 = arith.constant 1 : index
    %c0_30 = arith.constant 0 : index
    %23 = vector.load %arg8[%c0_28, %c1_29, %c0_30] : memref<18x18x8xf32, #tpu.memory_space<vmem>>, vector<16x16x8xf32>
    %24 = vector.shape_cast %23 : vector<16x16x8xf32> to vector<256x8xf32>
    %c0_31 = arith.constant 0 : index
    %c8 = arith.constant 8 : index
    %25 = vector.load %arg9[%c0_31, %c8] : memref<256x72xf32, #tpu.memory_space<vmem>>, vector<256x8xf32>
    tpu.vector_store %arg9[%c0_31, %c8], %24 {strides = array<i32>} : memref<256x72xf32, #tpu.memory_space<vmem>>, vector<256x8xf32>,
    %c0_32 = arith.constant 0 : index
    %c2 = arith.constant 2 : index
    %c0_33 = arith.constant 0 : index
    %26 = vector.load %arg8[%c0_32, %c2, %c0_33] : memref<18x18x8xf32, #tpu.memory_space<vmem>>, vector<16x16x8xf32>
    %27 = vector.shape_cast %26 : vector<16x16x8xf32> to vector<256x8xf32>
    %c0_34 = arith.constant 0 : index
    %c16 = arith.constant 16 : index
    %28 = vector.load %arg9[%c0_34, %c16] : memref<256x72xf32, #tpu.memory_space<vmem>>, vector<256x8xf32>
    tpu.vector_store %arg9[%c0_34, %c16], %27 {strides = array<i32>} : memref<256x72xf32, #tpu.memory_space<vmem>>, vector<256x8xf32>,
    %c1_35 = arith.constant 1 : index
    %c0_36 = arith.constant 0 : index
    %c0_37 = arith.constant 0 : index
    %29 = vector.load %arg8[%c1_35, %c0_36, %c0_37] : memref<18x18x8xf32, #tpu.memory_space<vmem>>, vector<16x16x8xf32>
    %30 = vector.shape_cast %29 : vector<16x16x8xf32> to vector<256x8xf32>
    %c0_38 = arith.constant 0 : index
    %c24 = arith.constant 24 : index
    %31 = vector.load %arg9[%c0_38, %c24] : memref<256x72xf32, #tpu.memory_space<vmem>>, vector<256x8xf32>
    tpu.vector_store %arg9[%c0_38, %c24], %30 {strides = array<i32>} : memref<256x72xf32, #tpu.memory_space<vmem>>, vector<256x8xf32>,
    %c1_39 = arith.constant 1 : index
    %c1_40 = arith.constant 1 : index
    %c0_41 = arith.constant 0 : index
    %32 = vector.load %arg8[%c1_39, %c1_40, %c0_41] : memref<18x18x8xf32, #tpu.memory_space<vmem>>, vector<16x16x8xf32>
    %33 = vector.shape_cast %32 : vector<16x16x8xf32> to vector<256x8xf32>
    %c0_42 = arith.constant 0 : index
    %c32 = arith.constant 32 : index
    %34 = vector.load %arg9[%c0_42, %c32] : memref<256x72xf32, #tpu.memory_space<vmem>>, vector<256x8xf32>
    tpu.vector_store %arg9[%c0_42, %c32], %33 {strides = array<i32>} : memref<256x72xf32, #tpu.memory_space<vmem>>, vector<256x8xf32>,
    %c1_43 = arith.constant 1 : index
    %c2_44 = arith.constant 2 : index
    %c0_45 = arith.constant 0 : index
    %35 = vector.load %arg8[%c1_43, %c2_44, %c0_45] : memref<18x18x8xf32, #tpu.memory_space<vmem>>, vector<16x16x8xf32>
    %36 = vector.shape_cast %35 : vector<16x16x8xf32> to vector<256x8xf32>
    %c0_46 = arith.constant 0 : index
    %c40 = arith.constant 40 : index
    %37 = vector.load %arg9[%c0_46, %c40] : memref<256x72xf32, #tpu.memory_space<vmem>>, vector<256x8xf32>
    tpu.vector_store %arg9[%c0_46, %c40], %36 {strides = array<i32>} : memref<256x72xf32, #tpu.memory_space<vmem>>, vector<256x8xf32>,
    %c2_47 = arith.constant 2 : index
    %c0_48 = arith.constant 0 : index
    %c0_49 = arith.constant 0 : index
    %38 = vector.load %arg8[%c2_47, %c0_48, %c0_49] : memref<18x18x8xf32, #tpu.memory_space<vmem>>, vector<16x16x8xf32>
    %39 = vector.shape_cast %38 : vector<16x16x8xf32> to vector<256x8xf32>
    %c0_50 = arith.constant 0 : index
    %c48 = arith.constant 48 : index
    %40 = vector.load %arg9[%c0_50, %c48] : memref<256x72xf32, #tpu.memory_space<vmem>>, vector<256x8xf32>
    tpu.vector_store %arg9[%c0_50, %c48], %39 {strides = array<i32>} : memref<256x72xf32, #tpu.memory_space<vmem>>, vector<256x8xf32>,
    %c2_51 = arith.constant 2 : index
    %c1_52 = arith.constant 1 : index
    %c0_53 = arith.constant 0 : index
    %41 = vector.load %arg8[%c2_51, %c1_52, %c0_53] : memref<18x18x8xf32, #tpu.memory_space<vmem>>, vector<16x16x8xf32>
    %42 = vector.shape_cast %41 : vector<16x16x8xf32> to vector<256x8xf32>
    %c0_54 = arith.constant 0 : index
    %c56 = arith.constant 56 : index
    %43 = vector.load %arg9[%c0_54, %c56] : memref<256x72xf32, #tpu.memory_space<vmem>>, vector<256x8xf32>
    tpu.vector_store %arg9[%c0_54, %c56], %42 {strides = array<i32>} : memref<256x72xf32, #tpu.memory_space<vmem>>, vector<256x8xf32>,
    %c2_55 = arith.constant 2 : index
    %c2_56 = arith.constant 2 : index
    %c0_57 = arith.constant 0 : index
    %44 = vector.load %arg8[%c2_55, %c2_56, %c0_57] : memref<18x18x8xf32, #tpu.memory_space<vmem>>, vector<16x16x8xf32>
    %45 = vector.shape_cast %44 : vector<16x16x8xf32> to vector<256x8xf32>
    %c0_58 = arith.constant 0 : index
    %c64 = arith.constant 64 : index
    %46 = vector.load %arg9[%c0_58, %c64] : memref<256x72xf32, #tpu.memory_space<vmem>>, vector<256x8xf32>
    tpu.vector_store %arg9[%c0_58, %c64], %45 {strides = array<i32>} : memref<256x72xf32, #tpu.memory_space<vmem>>, vector<256x8xf32>,
    %c0_59 = arith.constant 0 : index
    %c0_60 = arith.constant 0 : index
    %47 = vector.load %arg9[%c0_59, %c0_60] : memref<256x72xf32, #tpu.memory_space<vmem>>, vector<256x72xf32>
    %48 = arith.truncf %47 : vector<256x72xf32> to vector<256x72xbf16>
    %c0_61 = arith.constant 0 : index
    %c0_62 = arith.constant 0 : index
    %49 = vector.load %arg4[%c0_61, %c0_62] : memref<8x72xbf16, #tpu.memory_space<vmem>>, vector<8x72xbf16>
    %cst_63 = arith.constant dense<0.000000e+00> : vector<8x256xf32>
    %50 = tpu.matmul %49, %48, %cst_63 {dimension_numbers = #tpu.dot_dimension_numbers<[1], [1], [0], [0], [0, 0, 1, 0], [], []>} : vector<8x72xbf16>, vector<256x72xbf16>, vector<8x256xf32> -> vector<8x256xf32>
    %51 = vector.shape_cast %50 : vector<8x256xf32> to vector<1x8x256xf32>
    %c0_64 = arith.constant 0 : index
    %c0_65 = arith.constant 0 : index
    %c0_66 = arith.constant 0 : index
    %52 = vector.load %arg5[%c0_64, %c0_65, %c0_66] : memref<1x8x256xf32, #tpu.memory_space<vmem>>, vector<1x8x256xf32>
    tpu.vector_store %arg5[%c0_64, %c0_65, %c0_66], %51 {strides = array<i32>} : memref<1x8x256xf32, #tpu.memory_space<vmem>>, vector<1x8x256xf32>,
    %cst_67 = arith.constant dense<0.000000e+00> : vector<8xf32>
    %53 = vector.multi_reduction <add>, %50, %cst_67 [1] : vector<8x256xf32> to vector<8xf32>
    %54 = vector.shape_cast %53 : vector<8xf32> to vector<8x1xf32>
    %cst_68 = arith.constant 2.560000e+02 : f32
    %55 = vector.broadcast %cst_68 : f32 to vector<8x1xf32>
    %56 = arith.divf %54, %55 : vector<8x1xf32>
    %57 = vector.broadcast %56 : vector<8x1xf32> to vector<8x256xf32>
    %58 = arith.subf %50, %57 : vector<8x256xf32>
    %59 = vector.shape_cast %56 : vector<8x1xf32> to vector<1x8x1xf32>
    %c0_69 = arith.constant 0 : index
    %c0_70 = arith.constant 0 : index
    %c0_71 = arith.constant 0 : index
    %60 = vector.load %arg6[%c0_69, %c0_70, %c0_71] : memref<1x8x1xf32, #tpu.memory_space<vmem>>, vector<1x8x1xf32>
    tpu.vector_store %arg6[%c0_69, %c0_70, %c0_71], %59 {strides = array<i32>} : memref<1x8x1xf32, #tpu.memory_space<vmem>>, vector<1x8x1xf32>,
    %61 = arith.mulf %58, %58 : vector<8x256xf32>
    %cst_72 = arith.constant dense<0.000000e+00> : vector<8xf32>
    %62 = vector.multi_reduction <add>, %61, %cst_72 [1] : vector<8x256xf32> to vector<8xf32>
    %63 = vector.shape_cast %62 : vector<8xf32> to vector<8x1xf32>
    %64 = vector.shape_cast %63 : vector<8x1xf32> to vector<1x8x1xf32>
    %c0_73 = arith.constant 0 : index
    %c0_74 = arith.constant 0 : index
    %c0_75 = arith.constant 0 : index
    %65 = vector.load %arg7[%c0_73, %c0_74, %c0_75] : memref<1x8x1xf32, #tpu.memory_space<vmem>>, vector<1x8x1xf32>
    tpu.vector_store %arg7[%c0_73, %c0_74, %c0_75], %64 {strides = array<i32>} : memref<1x8x1xf32, #tpu.memory_space<vmem>>, vector<1x8x1xf32>,
    return
  }
  func.func @transform_0(%arg0: i32) -> (i32, i32, i32) {
    %c0_i32 = arith.constant 0 : i32
    %c0_i32_0 = arith.constant 0 : i32
    %c0_i32_1 = arith.constant 0 : i32
    return %arg0, %c0_i32, %c0_i32_0 : i32, i32, i32
  }
  func.func @transform_1(%arg0: i32) -> (i32, i32) {
    %c0_i32 = arith.constant 0 : i32
    %c0_i32_0 = arith.constant 0 : i32
    %c0_i32_1 = arith.constant 0 : i32
    return %c0_i32, %c0_i32_0 : i32, i32
  }
  func.func @transform_2(%arg0: i32) -> (i32, i32) {
    %c0_i32 = arith.constant 0 : i32
    %c0_i32_0 = arith.constant 0 : i32
    %c0_i32_1 = arith.constant 0 : i32
    return %c0_i32, %c0_i32_0 : i32, i32
  }
  func.func @transform_3(%arg0: i32) -> (i32, i32) {
    %c0_i32 = arith.constant 0 : i32
    %c0_i32_0 = arith.constant 0 : i32
    %c0_i32_1 = arith.constant 0 : i32
    return %c0_i32, %c0_i32_0 : i32, i32
  }
  func.func @transform_4(%arg0: i32) -> (i32, i32, i32) {
    %c0_i32 = arith.constant 0 : i32
    %c0_i32_0 = arith.constant 0 : i32
    %c0_i32_1 = arith.constant 0 : i32
    return %arg0, %c0_i32, %c0_i32_0 : i32, i32, i32
  }
  func.func @transform_5(%arg0: i32) -> (i32, i32, i32) {
    %c0_i32 = arith.constant 0 : i32
    %c0_i32_0 = arith.constant 0 : i32
    %c0_i32_1 = arith.constant 0 : i32
    return %arg0, %c0_i32, %c0_i32_0 : i32, i32, i32
  }
  func.func @transform_6(%arg0: i32) -> (i32, i32, i32) {
    %c0_i32 = arith.constant 0 : i32
    %c0_i32_0 = arith.constant 0 : i32
    %c0_i32_1 = arith.constant 0 : i32
    return %arg0, %c0_i32, %c0_i32_0 : i32, i32, i32
  }
}

</mosaic_0001>

<bundles_post_ra>
// kernel: double_conv.5
= control target key start
LH: loop header
LB: loop body
LE: loop exit
PB: predicated region body
PF: predicated region fallthrough
CT: control target
= control target key end

     0   :  { %s300_s12 = smov 0   ;;  %s323_s0 = inlined_call_operand.vmem [shape: f32[2,8,256], index: 0, kind: input, shape index: {}]   ;;  %s324_s1 = inlined_call_operand.vmem [shape: f32[8,1], index: 1, kind: input, shape index: {}]   ;;  %s325_s2 = inlined_call_operand.vmem [shape: f32[8,1], index: 2, kind: input, shape index: {}]   ;;  %s326_s3 = inlined_call_operand.vmem [shape: f32[2,8,256], index: 3, kind: output, shape index: {}]  }
   0x1 LB: > { %s248_s13 = sadd.s32 4294967295, %s277_s12   ;;  %p252_p0 = scmp.ge.s32.totalorder %s277_s12, 1  ;;  %s277_s12 = sphi %s300_s12, %s13_s12  }
   0x2   : > { %p137_p1 = scmp.lt.s32.totalorder %s277_s12, 3 }
   0x4   : > { %p138_p2 = pnand %p252_p0, %p137_p1 }
   0x5   : > { %p161_p3 = scmp.lt.s32.totalorder (!%p138_p2), %s248_s13, 1 }
   0x6   : > { %141 = sbr.rel (%p138_p2) target bundleno = 146 (0x92), region = 32 }
   0xb   : > { %v173_v0 = vld [vmem:[%s324_s1] sm:$0xff]  ;;  %v279_v1 = vmov 0   ;;  %s328_s13 = smov (!%p161_p3, %s248_s13), 1 }
   0xc   : > { %270 = vset.pattern.permute.xlu0 %v279_v1  ;;  %v181_v2 = vld [vmem:[%s325_s2] sm:$0xff]  ;;  %s259_s18 = sshll.u32 %s328_s13, 4 }
   0xd   : > { %176 = vperm.xlu0 %270, %v173_v0   ;;  %s165_s21 = scalar_lea.vmem %s323_s0, %s259_s18  ;;  %s170_s24 = scalar_lea.vmem %s326_s3, %s259_s18 }
   0xe   : > { %v171_v4 = vld [vmem:[%s165_s21] sm:$0xff]  ;;  %v172_v5 = vld [vmem:[%s165_s21 + $0x8] sm:$0xff] }
  0x11   : > { %184 = vperm.xlu0 %270, %v181_v2  }
  0x88   : > { %v177_v3 = vpop.permute.xlu0 %176 }
  0x89   : > { %v179_v6 = vmul.f32 %v177_v3, %v171_v4  ;;  %v180_v7 = vmul.f32 %v177_v3, %v172_v5 }
  0x8c   : > { %v185_v8 = vpop.permute.xlu0 %184 }
  0x8d   : > { %v187_v9 = vadd.f32 %v185_v8, %v179_v6  ;;  %v188_v10 = vadd.f32 %v185_v8, %v180_v7 }
  0x8f   : > { %v189_v11 = vmax.f32 %v187_v9, 0.0  ;;  %v190_v12 = vmax.f32 %v188_v10, 0.0 }
  0x91   : > { %191 = vst [vmem:[%s170_s24] sm:$0xff] %v189_v11  ;;  %192 = vst [vmem:[%s170_s24 + $0x8] sm:$0xff] %v190_v12 }
  0x92 PF: > { %s13_s12 = sadd.s32 1, %s277_s12  }
  0x93   : > { %p10_p4 = scmp.ge.s32.totalorder %s13_s12, 4  }
  0x95   :  { %12 = sbr.rel (!%p10_p4) target bundleno = 1 (0x1), region = 62 }

// kernel: double_conv.4
= control target key start
LH: loop header
LB: loop body
LE: loop exit
PB: predicated region body
PF: predicated region fallthrough
CT: control target
= control target key end

     0   :  { %s2493_s21 = smov 0   ;;  %s3700_s0 = inlined_call_operand.vmem [shape: f32[2,256,8], index: 0, kind: input, shape index: {}]   ;;  %s3701_s1 = inlined_call_operand.vmem [shape: f32[1,8], index: 1, kind: input, shape index: {}]   ;;  %s3702_s2 = inlined_call_operand.vmem [shape: f32[1,8], index: 2, kind: input, shape index: {}]   ;;  %s3703_s3 = inlined_call_operand.vmem [shape: bf16[8,72], index: 3, kind: input, shape index: {}]   ;;  %s3704_s4 = inlined_call_operand.vmem [shape: f32[2,8,256], index: 4, kind: output, shape index: {0}]   ;;  %s3705_s5 = inlined_call_operand.vmem [shape: f32[2,8,1], index: 5, kind: output, shape index: {1}]   ;;  %s3706_s6 = inlined_call_operand.vmem [shape: f32[2,8,1], index: 6, kind: output, shape index: {2}]  }
   0x1 LB: > { %s2380_s22 = sadd.s32 4294967295, %s2447_s21   ;;  %p2384_p0 = scmp.ge.s32.totalorder %s2447_s21, 1  ;;  %s2447_s21 = sphi %s2493_s21, %s17_s21  }
   0x2   : > { %p217_p1 = scmp.lt.s32.totalorder %s2447_s21, 3 }
   0x4   : > { %p218_p2 = pnand %p2384_p0, %p217_p1 }
   0x5   : > { %p2503_p3 = scmp.lt.s32.totalorder (!%p218_p2), %s2380_s22, 1  ;;  %s2450_s8 = smov (!%p218_p2), 8  }
   0x6   : > { %221 = sbr.rel (%p218_p2) target bundleno = 1164 (0x48c), region = 36  ;;  %s2451_s9 = smov (!%p218_p2), 16  }
   0x7   : > { %s2452_s10 = smov (!%p218_p2), 24   ;;  %s2453_s11 = smov (!%p218_p2), 32  }
   0x8   : > { %s2454_s12 = smov (!%p218_p2), 40   ;;  %s2455_s13 = smov (!%p218_p2), 48  }
   0x9   : > { %s2456_s14 = smov (!%p218_p2), 56   ;;  %s2457_s15 = smov (!%p218_p2), 64  }
   0xb   : > { %vm416_vm0 = vcmask 64512   ;;  %vm425_vm1 = vcmask 57344   ;;  %vm419_vm2 = vcmask 58368   ;;  %v2449_v0 = vmov 0.0   ;;  %s3709_s22 = smov (!%p2503_p3, %s2380_s22), 1 }
   0xc   : > { %417 = vst.msk [vmem:[#allocation2] sm:$0xff] %vm416_vm0, %v2449_v0  ;;  %418 = vst.msk [vmem:[#allocation2 + $0x8] sm:$0xff] %vm416_vm0, %v2449_v0  ;;  %s2396_s24 = sshll.u32 %s3709_s22, 8  ;;  %v2559_v1 = vld [vmem:[%s3701_s1] ss:$0 sm:$0xff]  ;;  %vm719_vm3 = vcmask 130112  }
   0xd   : > { %422 = vst.msk [vmem:[#allocation2 + $0x198] sm:$0xff] %vm416_vm0, %v2449_v0  ;;  %423 = vst.msk [vmem:[#allocation2 + $0x1a0] sm:$0xff] %vm416_vm0, %v2449_v0  ;;  %s2564_s29 = scalar_lea.vmem %s3700_s0, %s2396_s24  ;;  %v2569_v2 = vld [vmem:[%s3702_s2] ss:$0 sm:$0xff]  ;;  %vm912_vm4 = vcmask 195712   ;;  %vm1105_vm5 = vcmask 261312  }
   0xe   : > { %427 = vst.msk [vmem:[#allocation2 + $0x18] sm:$0x1] %vm425_vm1, %v2449_v0  ;;  %428 = vst.msk [vmem:[#allocation2 + $0x30] sm:$0x1] %vm425_vm1, %v2449_v0  ;;  %v274_v3 = vld [vmem:[%s2564_s29] sm:$0xff]  ;;  %v276_v4 = vld [vmem:[%s2564_s29 + $0x10] sm:$0xff] }
   0xf   : > { %429 = vst.msk [vmem:[#allocation2 + $0x48] sm:$0x1] %vm425_vm1, %v2449_v0  ;;  %430 = vst.msk [vmem:[#allocation2 + $0x60] sm:$0x1] %vm425_vm1, %v2449_v0  ;;  %v275_v5 = vld [vmem:[%s2564_s29 + $0x8] sm:$0xff]  ;;  %v313_v6 = vmul.f32 %v2559_v1, %v274_v3  ;;  %v315_v7 = vmul.f32 %v2559_v1, %v276_v4  ;;  %v278_v9 = vld [vmem:[%s2564_s29 + $0x20] sm:$0xff] }
  0x10   : > { %431 = vst.msk [vmem:[#allocation2 + $0x78] sm:$0x1] %vm425_vm1, %v2449_v0  ;;  %432 = vst.msk [vmem:[#allocation2 + $0x90] sm:$0x1] %vm425_vm1, %v2449_v0  ;;  %v314_v8 = vmul.f32 %v2559_v1, %v275_v5  ;;  %v277_v10 = vld [vmem:[%s2564_s29 + $0x18] sm:$0xff]  ;;  %v280_v11 = vld [vmem:[%s2564_s29 + $0x30] sm:$0xff]  ;;  %v317_v13 = vmul.f32 %v2559_v1, %v278_v9 }
  0x11   : > { %433 = vst.msk [vmem:[#allocation2 + $0xa8] sm:$0x1] %vm425_vm1, %v2449_v0  ;;  %434 = vst.msk [vmem:[#allocation2 + $0xc0] sm:$0x1] %vm425_vm1, %v2449_v0  ;;  %v316_v14 = vmul.f32 %v2559_v1, %v277_v10  ;;  %v319_v15 = vmul.f32 %v2559_v1, %v280_v11  ;;  %v279_v16 = vld [vmem:[%s2564_s29 + $0x28] sm:$0xff]  ;;  %v352_v18 = vadd.f32 %v2569_v2, %v313_v6  ;;  %v282_v22 = vld [vmem:[%s2564_s29 + $0x40] sm:$0xff] }
  0x12   : > { %435 = vst.msk [vmem:[#allocation2 + $0xd8] sm:$0x1] %vm425_vm1, %v2449_v0  ;;  %436 = vst.msk [vmem:[#allocation2 + $0xf0] sm:$0x1] %vm425_vm1, %v2449_v0  ;;  %v354_v19 = vadd.f32 %v2569_v2, %v315_v7  ;;  %v353_v20 = vadd.f32 %v2569_v2, %v314_v8  ;;  %v318_v21 = vmul.f32 %v2559_v1, %v279_v16  ;;  %v281_v27 = vld [vmem:[%s2564_s29 + $0x38] sm:$0xff]  ;;  %v284_v28 = vld [vmem:[%s2564_s29 + $0x50] sm:$0xff] }
  0x13   : > { %437 = vst.msk [vmem:[#allocation2 + $0x108] sm:$0x1] %vm425_vm1, %v2449_v0  ;;  %438 = vst.msk [vmem:[#allocation2 + $0x120] sm:$0x1] %vm425_vm1, %v2449_v0  ;;  %v559_v12 = vld [vmem:[#allocation2 + $0x1] sm:$0xff]  ;;  %v356_v23 = vadd.f32 %v2569_v2, %v317_v13  ;;  %v355_v24 = vadd.f32 %v2569_v2, %v316_v14  ;;  %v358_v25 = vadd.f32 %v2569_v2, %v319_v15  ;;  %v384_v30 = vmax.f32 %v352_v18, 0.0 }
  0x14   : > { %439 = vst.msk [vmem:[#allocation2 + $0x138] sm:$0x1] %vm425_vm1, %v2449_v0  ;;  %440 = vst.msk [vmem:[#allocation2 + $0x150] sm:$0x1] %vm425_vm1, %v2449_v0  ;;  %623 = vrot.lane.b32.xlu0 %v559_v12, %s2450_s8  ;;  %v321_v26 = vmul.f32 %v2559_v1, %v282_v22  ;;  %v283_v29 = vld [vmem:[%s2564_s29 + $0x48] sm:$0xff]  ;;  %v386_v31 = vmax.f32 %v354_v19, 0.0  ;;  %v357_v33 = vadd.f32 %v2569_v2, %v318_v21 }
  0x15   : > { %441 = vst.msk [vmem:[#allocation2 + $0x168] sm:$0x1] %vm425_vm1, %v2449_v0  ;;  %442 = vst.msk [vmem:[#allocation2 + $0x180] sm:$0x1] %vm425_vm1, %v2449_v0  ;;  %v385_v32 = vmax.f32 %v353_v20, 0.0  ;;  %v286_v34 = vld [vmem:[%s2564_s29 + $0x60] sm:$0xff]  ;;  %v320_v43 = vmul.f32 %v2559_v1, %v281_v27  ;;  %v323_v44 = vmul.f32 %v2559_v1, %v284_v28  ;;  %v322_v45 = vmul.f32 %v2559_v1, %v283_v29 }
  0x16   : > { %445 = vst.msk [vmem:[#allocation2 + $0x29] sm:$0x1] %vm425_vm1, %v2449_v0  ;;  %446 = vst.msk [vmem:[#allocation2 + $0x41] sm:$0x1] %vm425_vm1, %v2449_v0  ;;  %v285_v35 = vld [vmem:[%s2564_s29 + $0x58] sm:$0xff]  ;;  %v288_v36 = vld [vmem:[%s2564_s29 + $0x70] sm:$0xff]  ;;  %v360_v40 = vadd.f32 %v2569_v2, %v321_v26  ;;  %v325_v48 = vmul.f32 %v2559_v1, %v286_v34 }
  0x17   : > { %447 = vst.msk [vmem:[#allocation2 + $0x59] sm:$0x1] %vm425_vm1, %v2449_v0  ;;  %448 = vst.msk [vmem:[#allocation2 + $0x71] sm:$0x1] %vm425_vm1, %v2449_v0  ;;  %v388_v37 = vmax.f32 %v356_v23, 0.0  ;;  %v387_v38 = vmax.f32 %v355_v24, 0.0  ;;  %v324_v49 = vmul.f32 %v2559_v1, %v285_v35  ;;  %v327_v50 = vmul.f32 %v2559_v1, %v288_v36 }
  0x18   : > { %449 = vst.msk [vmem:[#allocation2 + $0x89] sm:$0x1] %vm425_vm1, %v2449_v0  ;;  %450 = vst.msk [vmem:[#allocation2 + $0xa1] sm:$0x1] %vm425_vm1, %v2449_v0  ;;  %v390_v39 = vmax.f32 %v358_v25, 0.0  ;;  %v287_v41 = vld [vmem:[%s2564_s29 + $0x68] sm:$0xff]  ;;  %v359_v51 = vadd.f32 %v2569_v2, %v320_v43  ;;  %v362_v52 = vadd.f32 %v2569_v2, %v323_v44  ;;  %v361_v53 = vadd.f32 %v2569_v2, %v322_v45 }
  0x19   : > { %451 = vst.msk [vmem:[#allocation2 + $0xb9] sm:$0x1] %vm425_vm1, %v2449_v0  ;;  %452 = vst.msk [vmem:[#allocation2 + $0xd1] sm:$0x1] %vm425_vm1, %v2449_v0  ;;  %v389_v42 = vmax.f32 %v357_v33, 0.0  ;;  %v290_v46 = vld [vmem:[%s2564_s29 + $0x80] sm:$0xff]  ;;  %v326_v54 = vmul.f32 %v2559_v1, %v287_v41  ;;  %v364_v56 = vadd.f32 %v2569_v2, %v325_v48  ;;  %v363_v57 = vadd.f32 %v2569_v2, %v324_v49 }
  0x1a   : > { %453 = vst.msk [vmem:[#allocation2 + $0xe9] sm:$0x1] %vm425_vm1, %v2449_v0  ;;  %454 = vst.msk [vmem:[#allocation2 + $0x101] sm:$0x1] %vm425_vm1, %v2449_v0  ;;  %v392_v47 = vmax.f32 %v360_v40, 0.0  ;;  %v289_v55 = vld [vmem:[%s2564_s29 + $0x78] sm:$0xff]  ;;  %v366_v58 = vadd.f32 %v2569_v2, %v327_v50  ;;  %v329_v59 = vmul.f32 %v2559_v1, %v290_v46 }
  0x1b   : > { %455 = vst.msk [vmem:[#allocation2 + $0x119] sm:$0x1] %vm425_vm1, %v2449_v0  ;;  %456 = vst.msk [vmem:[#allocation2 + $0x131] sm:$0x1] %vm425_vm1, %v2449_v0  ;;  %v292_v60 = vld [vmem:[%s2564_s29 + $0x90] sm:$0xff]  ;;  %v291_v61 = vld [vmem:[%s2564_s29 + $0x88] sm:$0xff]  ;;  %v365_v4 = vadd.f32 %v2569_v2, %v326_v54  ;;  %v328_v14 = vmul.f32 %v2559_v1, %v289_v55 }
  0x1c   : > { %457 = vst.msk [vmem:[#allocation2 + $0x149] sm:$0x1] %vm425_vm1, %v2449_v0  ;;  %458 = vst.msk [vmem:[#allocation2 + $0x161] sm:$0x1] %vm425_vm1, %v2449_v0  ;;  %v294_v62 = vld [vmem:[%s2564_s29 + $0xa0] sm:$0xff]  ;;  %v391_v63 = vmax.f32 %v359_v51, 0.0  ;;  %v368_v11 = vadd.f32 %v2569_v2, %v329_v59  ;;  %v331_v15 = vmul.f32 %v2559_v1, %v292_v60  ;;  %v330_v16 = vmul.f32 %v2559_v1, %v291_v61 }
  0x1d   : > { %459 = vst.msk [vmem:[#allocation2 + $0x179] sm:$0x1] %vm425_vm1, %v2449_v0  ;;  %460 = vst.msk [vmem:[#allocation2 + $0x191] sm:$0x1] %vm425_vm1, %v2449_v0  ;;  %v393_v3 = vmax.f32 %v361_v53, 0.0  ;;  %v293_v5 = vld [vmem:[%s2564_s29 + $0x98] sm:$0xff]  ;;  %v333_v21 = vmul.f32 %v2559_v1, %v294_v62  ;;  %v367_v26 = vadd.f32 %v2569_v2, %v328_v14 }
  0x1e   : > { %420 = vst.msk [vmem:[#allocation2 + $0x10] sm:$0x3] %vm419_vm2, %v2449_v0  ;;  %424 = vst.msk [vmem:[#allocation2 + $0x1a8] sm:$0x3] %vm419_vm2, %v2449_v0  ;;  %v303_v6 = vld [vmem:[%s2564_s29 + $0xe8] sm:$0xff]  ;;  %v396_v8 = vmax.f32 %v364_v56, 0.0  ;;  %v332_v22 = vmul.f32 %v2559_v1, %v293_v5  ;;  %v370_v27 = vadd.f32 %v2569_v2, %v331_v15  ;;  %v369_v28 = vadd.f32 %v2569_v2, %v330_v16 }
  0x1f   : > { %426 = vst.msk [vmem:[#allocation2] sm:$0x1] %vm425_vm1, %v2449_v0  ;;  %443 = vst.msk [vmem:[#allocation2 + $0x198] sm:$0x1] %vm425_vm1, %v2449_v0  ;;  %v395_v9 = vmax.f32 %v363_v57, 0.0  ;;  %v398_v10 = vmax.f32 %v366_v58, 0.0  ;;  %v342_v23 = vmul.f32 %v2559_v1, %v303_v6 }
  0x20   : > { %444 = vst.msk [vmem:[#allocation2 + $0x11] sm:$0x1] %vm425_vm1, %v2449_v0  ;;  %461 = vst.msk [vmem:[#allocation2 + $0x1a9] sm:$0x1] %vm425_vm1, %v2449_v0  ;;  %v394_v0 = vmax.f32 %v362_v52, 0.0  ;;  %v496_v12 = vld [vmem:[#allocation2 + $0x8] sm:$0xff]  ;;  %v371_v33 = vadd.f32 %v2569_v2, %v332_v22 }
  0x21   : > { %463 = vst.msk [vmem:[#allocation2 + $0x19] sm:$0xff] %vm416_vm0, %v384_v30  ;;  %465 = vst.msk [vmem:[#allocation2 + $0x31] sm:$0xff] %vm416_vm0, %v386_v31  ;;  %v397_v13 = vmax.f32 %v365_v4, 0.0  ;;  %v400_v20 = vmax.f32 %v368_v11, 0.0  ;;  %v304_v24 = vld [vmem:[%s2564_s29 + $0xf0] sm:$0xff]  ;;  %v305_v29 = vld [vmem:[%s2564_s29 + $0xf8] sm:$0xff]  ;;  %v381_v34 = vadd.f32 %v2569_v2, %v342_v23 }
  0x22   : > { %464 = vst.msk [vmem:[#allocation2 + $0x21] sm:$0xff] %vm416_vm0, %v385_v32  ;;  %467 = vst.msk [vmem:[#allocation2 + $0x49] sm:$0xff] %vm416_vm0, %v388_v37  ;;  %v301_v30 = vld [vmem:[%s2564_s29 + $0xd8] sm:$0xff]  ;;  %v372_v32 = vadd.f32 %v2569_v2, %v333_v21  ;;  %v401_v40 = vmax.f32 %v369_v28, 0.0  ;;  %v343_v41 = vmul.f32 %v2559_v1, %v304_v24  ;;  %v403_v46 = vmax.f32 %v371_v33, 0.0  ;;  %s2397_s18 = sshll.u32 %s3709_s22, 4 }
  0x23   : > { %466 = vst.msk [vmem:[#allocation2 + $0x39] sm:$0xff] %vm416_vm0, %v387_v38  ;;  %469 = vst.msk [vmem:[#allocation2 + $0x61] sm:$0xff] %vm416_vm0, %v390_v39  ;;  %v399_v38 = vmax.f32 %v367_v26, 0.0  ;;  %v402_v39 = vmax.f32 %v370_v27, 0.0  ;;  %v344_v52 = vmul.f32 %v2559_v1, %v305_v29  ;;  %v340_v54 = vmul.f32 %v2559_v1, %v301_v30  ;;  %v299_v26 = vld [vmem:[%s2564_s29 + $0xc8] sm:$0xff]  ;;  %v298_v27 = vld [vmem:[%s2564_s29 + $0xc0] sm:$0xff]  ;;  %s264_s23 = scalar_lea.vmem %s3704_s4, %s2397_s18 }
  0x24   : > { %468 = vst.msk [vmem:[#allocation2 + $0x51] sm:$0xff] %vm416_vm0, %v389_v42  ;;  %471 = vst.msk [vmem:[#allocation2 + $0x79] sm:$0xff] %vm416_vm0, %v392_v47  ;;  %v300_v42 = vld [vmem:[%s2564_s29 + $0xd0] sm:$0xff]  ;;  %v404_v45 = vmax.f32 %v372_v32, 0.0  ;;  %v413_v47 = vmax.f32 %v381_v34, 0.0  ;;  %v382_v53 = vadd.f32 %v2569_v2, %v343_v41  ;;  %v338_v28 = vmul.f32 %v2559_v1, %v299_v26  ;;  %s2389_s24 = sshll.u32 %s3709_s22, 3 }
  0x25   : > { %v560_v17 = vld [vmem:[#allocation2 + $0x9] sm:$0xff]  ;;  %470 = vst.msk [vmem:[#allocation2 + $0x69] sm:$0xff] %vm416_vm0, %v391_v63  ;;  %473 = vst.msk [vmem:[#allocation2 + $0x91] sm:$0xff] %vm416_vm0, %v394_v0  ;;  %v339_v59 = vmul.f32 %v2559_v1, %v300_v42  ;;  %v383_v60 = vadd.f32 %v2569_v2, %v344_v52  ;;  %v379_v62 = vadd.f32 %v2569_v2, %v340_v54  ;;  %vm1298_vm6 = vcmask 326912   ;;  %s268_s27 = scalar_lea.vmem %s3705_s5, %s2389_s24  ;;  %s272_s30 = scalar_lea.vmem %s3706_s6, %s2389_s24 }
  0x26   : > { %625 = vrot.lane.b32.xlu0 %v560_v17, %s2450_s8  ;;  %v495_v7 = vld [vmem:[#allocation2] sm:$0xff]  ;;  %472 = vst.msk [vmem:[#allocation2 + $0x81] sm:$0xff] %vm416_vm0, %v393_v3  ;;  %528 = vst.msk [vmem:[#allocation3 + $0x8] sm:$0xff] %vm416_vm0, %v496_v12  ;;  %v414_v61 = vmax.f32 %v382_v53, 0.0  ;;  %v337_v29 = vmul.f32 %v2559_v1, %v298_v27  ;;  %v377_v32 = vadd.f32 %v2569_v2, %v338_v28  ;;  %vm1491_vm7 = vcmask 392512  }
  0x27   : > { %527 = vst.msk [vmem:[#allocation3] sm:$0xff] %vm416_vm0, %v495_v7  ;;  %v302_v17 = vld [vmem:[%s2564_s29 + $0xe0] sm:$0xff]  ;;  %475 = vst.msk [vmem:[#allocation2 + $0xa9] sm:$0xff] %vm416_vm0, %v396_v8  ;;  %v378_v63 = vadd.f32 %v2569_v2, %v339_v59  ;;  %v415_v3 = vmax.f32 %v383_v60, 0.0  ;;  %v411_v5 = vmax.f32 %v379_v62, 0.0  ;;  %v1555_v62 = vld [vmem:[#allocation2 + $0x198] sm:$0xff] }
  0x28   : > { %v561_v18 = vld [vmem:[#allocation2 + $0x19] sm:$0xff]  ;;  %v563_v19 = vld [vmem:[#allocation2 + $0x31] sm:$0xff]  ;;  %474 = vst.msk [vmem:[#allocation2 + $0x99] sm:$0xff] %vm416_vm0, %v395_v9  ;;  %477 = vst.msk [vmem:[#allocation2 + $0xc1] sm:$0xff] %vm416_vm0, %v398_v10  ;;  %v341_v35 = vmul.f32 %v2559_v1, %v302_v17  ;;  %v376_v33 = vadd.f32 %v2569_v2, %v337_v29  ;;  %vm1685_vm8 = vcmask 458112   ;;  %vm1878_vm9 = vcmask 523712  }
  0x29   : > { %627 = vrot.lane.b32.xlu1 %v561_v18, %s2450_s8  ;;  %v562_v25 = vld [vmem:[#allocation2 + $0x21] sm:$0xff]  ;;  %476 = vst.msk [vmem:[#allocation2 + $0xb1] sm:$0xff] %vm416_vm0, %v397_v13  ;;  %v565_v31 = vld [vmem:[#allocation2 + $0x49] sm:$0xff]  ;;  %479 = vst.msk [vmem:[#allocation2 + $0xd9] sm:$0xff] %vm416_vm0, %v400_v20  ;;  %v410_v8 = vmax.f32 %v378_v63, 0.0  ;;  %vm2071_vm10 = vcmask 589312  }
  0x2a   : > { %631 = vrot.lane.b32.xlu0 %v563_v19, %s2450_s8  ;;  %v497_v36 = vld [vmem:[#allocation2 + $0x18] sm:$0xff]  ;;  %v499_v37 = vld [vmem:[#allocation2 + $0x30] sm:$0xff]  ;;  %v498_v43 = vld [vmem:[#allocation2 + $0x20] sm:$0xff]  ;;  %v380_v48 = vadd.f32 %v2569_v2, %v341_v35  ;;  %478 = vst.msk [vmem:[#allocation2 + $0xc9] sm:$0xff] %vm416_vm0, %v399_v38  ;;  %vm2153_vm11 = vcmask 588800   ;;  %vm2255_vm12 = vcmask 7168  }
  0x2b   : > { %529 = vst.msk [vmem:[#allocation3 + $0x10] sm:$0xff] %vm416_vm0, %v497_v36  ;;  %531 = vst.msk [vmem:[#allocation3 + $0x20] sm:$0xff] %vm416_vm0, %v499_v37  ;;  %v501_v44 = vld [vmem:[#allocation2 + $0x48] sm:$0xff]  ;;  %v500_v49 = vld [vmem:[#allocation2 + $0x38] sm:$0xff]  ;;  %v409_v36 = vmax.f32 %v377_v32, 0.0  ;;  %v408_v37 = vmax.f32 %v376_v33, 0.0 }
  0x2c   : > { %530 = vst.msk [vmem:[#allocation3 + $0x18] sm:$0xff] %vm416_vm0, %v498_v43  ;;  %533 = vst.msk [vmem:[#allocation3 + $0x30] sm:$0xff] %vm416_vm0, %v501_v44  ;;  %v2671_v50 = vld [vmem:[#allocation2 + $0x60] sm:$0xff]  ;;  %v502_v51 = vld [vmem:[#allocation2 + $0x50] sm:$0xff]  ;;  %v412_v58 = vmax.f32 %v380_v48, 0.0 }
  0x2d   : > { %629 = vrot.lane.b32.xlu1 %v562_v25, %s2450_s8  ;;  %481 = vst.msk [vmem:[#allocation2 + $0xf1] sm:$0xff] %vm416_vm0, %v402_v39  ;;  %480 = vst.msk [vmem:[#allocation2 + $0xe1] sm:$0xff] %vm416_vm0, %v401_v40  ;;  %v2685_v55 = vld [vmem:[#allocation2 + $0x78] sm:$0xff]  ;;  %v567_v57 = vld [vmem:[#allocation2 + $0x61] sm:$0xff] }
  0x2e   : > { %635 = vrot.lane.b32.xlu0 %v565_v31, %s2450_s8  ;;  %532 = vst.msk [vmem:[#allocation3 + $0x28] sm:$0xff] %vm416_vm0, %v500_v49  ;;  %535 = vst.msk [vmem:[#allocation3 + $0x40] sm:$0xff] %vm416_vm0, %v2671_v50  ;;  %v564_v56 = vld [vmem:[#allocation2 + $0x39] sm:$0xff]  ;;  %v566_v6 = vld [vmem:[#allocation2 + $0x51] sm:$0xff] }
  0x2f   : > { %534 = vst.msk [vmem:[#allocation3 + $0x38] sm:$0xff] %vm416_vm0, %v502_v51  ;;  %483 = vst.msk [vmem:[#allocation2 + $0x109] sm:$0xff] %vm416_vm0, %v404_v45  ;;  %v2699_v0 = vld [vmem:[#allocation2 + $0xc0] sm:$0xff]  ;;  %v2712_v10 = vld [vmem:[#allocation2 + $0xa8] sm:$0xff] }
  0x30   : > { %482 = vst.msk [vmem:[#allocation2 + $0xf9] sm:$0xff] %vm416_vm0, %v403_v46  ;;  %492 = vst.msk [vmem:[#allocation2 + $0x171] sm:$0xff] %vm416_vm0, %v413_v47  ;;  %v2702_v4 = vld [vmem:[#allocation2 + $0xd8] sm:$0xff]  ;;  %v2704_v9 = vld [vmem:[#allocation2 + $0xb0] sm:$0xff] }
  0x31   : > { %537 = vst.msk [vmem:[#allocation3 + $0x50] sm:$0xff] %vm416_vm0, %v2685_v55  ;;  %491 = vst.msk [vmem:[#allocation2 + $0x169] sm:$0xff] %vm416_vm0, %v412_v58  ;;  %633 = vrot.lane.b32.xlu1 %v564_v56, %s2450_s8  ;;  %v569_v7 = vld [vmem:[#allocation2 + $0x79] sm:$0xff]  ;;  %v2714_v11 = vld [vmem:[#allocation2 + $0x68] sm:$0xff] }
  0x32   : > { %639 = vrot.lane.b32.xlu0 %v567_v57, %s2450_s8  ;;  %493 = vst.msk [vmem:[#allocation2 + $0x181] sm:$0xff] %vm416_vm0, %v414_v61  ;;  %543 = vst.msk [vmem:[#allocation3 + $0x80] sm:$0xff] %vm416_vm0, %v2699_v0  ;;  %v2716_v12 = vld [vmem:[#allocation2 + $0x90] sm:$0xff]  ;;  %v2731_v15 = vld [vmem:[#allocation2 + $0xc8] sm:$0xff] }
  0x33   : > { %545 = vst.msk [vmem:[#allocation3 + $0x90] sm:$0xff] %vm416_vm0, %v2702_v4  ;;  %494 = vst.msk [vmem:[#allocation2 + $0x189] sm:$0xff] %vm416_vm0, %v415_v3  ;;  %v568_v13 = vld [vmem:[#allocation2 + $0x69] sm:$0xff]  ;;  %v2729_v14 = vld [vmem:[#allocation2 + $0x91] sm:$0xff] }
  0x34   : > { %490 = vst.msk [vmem:[#allocation2 + $0x159] sm:$0xff] %vm416_vm0, %v411_v5  ;;  %542 = vst.msk [vmem:[#allocation3 + $0x78] sm:$0xff] %vm416_vm0, %v2704_v9  ;;  %v2735_v16 = vld [vmem:[#allocation2 + $0xe0] sm:$0xff]  ;;  %v2744_v19 = vld [vmem:[#allocation2 + $0xa9] sm:$0xff] }
  0x35   : > { %489 = vst.msk [vmem:[#allocation2 + $0x151] sm:$0xff] %vm416_vm0, %v410_v8  ;;  %536 = vst.msk [vmem:[#allocation3 + $0x48] sm:$0xff] %vm416_vm0, %v2714_v11  ;;  %637 = vrot.lane.b32.xlu1 %v566_v6, %s2450_s8  ;;  %v570_v18 = vld [vmem:[#allocation2 + $0x81] sm:$0xff]  ;;  %v2748_v20 = vld [vmem:[#allocation2 + $0x99] sm:$0xff] }
  0x36   : > { %539 = vst.msk [vmem:[#allocation3 + $0x60] sm:$0xff] %vm416_vm0, %v2716_v12  ;;  %541 = vst.msk [vmem:[#allocation3 + $0x70] sm:$0xff] %vm416_vm0, %v2712_v10  ;;  %643 = vrot.lane.b32.xlu0 %v569_v7, %s2450_s8  ;;  %v2755_v22 = vld [vmem:[#allocation2 + $0x80] sm:$0xff]  ;;  %v2757_v23 = vld [vmem:[#allocation2 + $0x98] sm:$0xff] }
  0x37   : > { %544 = vst.msk [vmem:[#allocation3 + $0x88] sm:$0xff] %vm416_vm0, %v2731_v15  ;;  %546 = vst.msk [vmem:[#allocation3 + $0x98] sm:$0xff] %vm416_vm0, %v2735_v16  ;;  %v515_v24 = vld [vmem:[#allocation2 + $0xf0] sm:$0xff]  ;;  %v2761_v25 = vld [vmem:[#allocation2 + $0xc1] sm:$0xff] }
  0x38   : > { %v2740_v17 = vld [vmem:[#allocation2 + $0x170] sm:$0xff]  ;;  %v2750_v21 = vld [vmem:[#allocation2 + $0x168] sm:$0xff]  ;;  %538 = vst.msk [vmem:[#allocation3 + $0x58] sm:$0xff] %vm416_vm0, %v2755_v22  ;;  %540 = vst.msk [vmem:[#allocation3 + $0x68] sm:$0xff] %vm416_vm0, %v2757_v23 }
  0x39   : > { %641 = vrot.lane.b32.xlu1 %v568_v13, %s2450_s8  ;;  %558 = vst.msk [vmem:[#allocation3 + $0xf8] sm:$0xff] %vm416_vm0, %v2740_v17  ;;  %557 = vst.msk [vmem:[#allocation3 + $0xf0] sm:$0xff] %vm416_vm0, %v2750_v21  ;;  %v2776_v30 = vld [vmem:[#allocation2 + $0x108] sm:$0xff]  ;;  %v516_v31 = vld [vmem:[#allocation2 + $0xf8] sm:$0xff] }
  0x3a   : > { %647 = vrot.lane.b32.xlu0 %v2729_v14, %s2450_s8  ;;  %547 = vst.msk [vmem:[#allocation3 + $0xa0] sm:$0xff] %vm416_vm0, %v515_v24  ;;  %v2780_v34 = vld [vmem:[#allocation2 + $0xb1] sm:$0xff]  ;;  %v2782_v35 = vld [vmem:[#allocation2 + $0xd9] sm:$0xff]  ;;  %549 = vst.msk [vmem:[#allocation3 + $0xb0] sm:$0xff] %vm416_vm0, %v2776_v30 }
  0x3b   : > { %548 = vst.msk [vmem:[#allocation3 + $0xa8] sm:$0xff] %vm416_vm0, %v516_v31  ;;  %488 = vst.msk [vmem:[#allocation2 + $0x141] sm:$0xff] %vm416_vm0, %v409_v36  ;;  %v2793_v38 = vld [vmem:[#allocation2 + $0xc9] sm:$0xff]  ;;  %v579_v39 = vld [vmem:[#allocation2 + $0xf1] sm:$0xff] }
  0x3c   : > { %487 = vst.msk [vmem:[#allocation2 + $0x139] sm:$0xff] %vm416_vm0, %v408_v37  ;;  %v578_v40 = vld [vmem:[#allocation2 + $0xe1] sm:$0xff]  ;;  %v581_v41 = vld [vmem:[#allocation2 + $0x109] sm:$0xff]  ;;  %v580_v42 = vld [vmem:[#allocation2 + $0xf9] sm:$0xff] }
  0x3d   : > { %645 = vrot.lane.b32.xlu1 %v570_v18, %s2450_s8  ;;  %v2800_v43 = vld [vmem:[#allocation2 + $0x171] sm:$0xff]  ;;  %v2805_v44 = vld [vmem:[#allocation2 + $0x169] sm:$0xff]  ;;  %v2841_v53 = vld [vmem:[#allocation2 + $0x180] sm:$0xff] }
  0x3e   : > { %651 = vrot.lane.b32.xlu0 %v2744_v19, %s2450_s8  ;;  %v2807_v45 = vld [vmem:[#allocation2 + $0xb2] sm:$0xff]  ;;  %v2813_v46 = vld [vmem:[#allocation2 + $0xaa] sm:$0xff]  ;;  %v2853_v56 = vld [vmem:[#allocation2 + $0x181] sm:$0xff] }
  0x3f   : > { %v2815_v47 = vld [vmem:[#allocation2 + $0x172] sm:$0xff]  ;;  %v2821_v48 = vld [vmem:[#allocation2 + $0x16a] sm:$0xff]  ;;  %v2861_v58 = vld [vmem:[#allocation2 + $0xc2] sm:$0xff] }
  0x40   : > { %v2823_v49 = vld [vmem:[#allocation2 + $0x158] sm:$0xff]  ;;  %v2825_v51 = vld [vmem:[#allocation2 + $0x150] sm:$0xff]  ;;  %v2835_v52 = vld [vmem:[#allocation2 + $0x188] sm:$0xff] }
  0x41   : > { %649 = vrot.lane.b32.xlu1 %v2748_v20, %s2450_s8  ;;  %556 = vst.msk [vmem:[#allocation3 + $0xe8] sm:$0xff] %vm416_vm0, %v2823_v49  ;;  %555 = vst.msk [vmem:[#allocation3 + $0xe0] sm:$0xff] %vm416_vm0, %v2825_v51  ;;  %v2847_v54 = vld [vmem:[#allocation2 + $0x189] sm:$0xff]  ;;  %v1556_v61 = vld [vmem:[#allocation2 + $0x1a0] sm:$0xff] }
  0x42   : > { %655 = vrot.lane.b32.xlu0 %v2761_v25, %s2450_s8  ;;  %v2855_v57 = vld [vmem:[#allocation2 + $0xca] sm:$0xff]  ;;  %v2869_v60 = vld [vmem:[#allocation2 + $0x182] sm:$0xff]  ;;  %v297_v63 = vld [vmem:[%s2564_s29 + $0xb8] sm:$0xff] }
  0x43   : > { %v2863_v59 = vld [vmem:[#allocation2 + $0x18a] sm:$0xff]  ;;  %v336_v5 = vmul.f32 %v2559_v1, %v297_v63  ;;  %v1749_v13 = vld [vmem:[#allocation2 + $0x1a1] sm:$0xff]  ;;  %v1748_v18 = vld [vmem:[#allocation2 + $0x199] sm:$0xff] }
  0x44   : > { %v296_v3 = vld [vmem:[%s2564_s29 + $0xb0] sm:$0xff]  ;;  %v1926_v24 = vld [vmem:[#allocation2 + $0xe2] sm:$0xff]  ;;  %v1925_v26 = vld [vmem:[#allocation2 + $0xda] sm:$0xff] }
  0x45   : > { %653 = vrot.lane.b32.xlu1 %v2780_v34, %s2450_s8  ;;  %v335_v6 = vmul.f32 %v2559_v1, %v296_v3  ;;  %v375_v7 = vadd.f32 %v2569_v2, %v336_v5  ;;  %v1942_v27 = vld [vmem:[#allocation2 + $0x1a2] sm:$0xff]  ;;  %v1941_v28 = vld [vmem:[#allocation2 + $0x19a] sm:$0xff]  ;;  %v2900_v31 = vld [vmem:[#allocation2 + $0x151] sm:$0xff] }
  0x46   : > { %659 = vrot.lane.b32.xlu0 %v2782_v35, %s2450_s8  ;;  %v2895_v29 = vld [vmem:[#allocation2 + $0x159] sm:$0xff] }
  0x47   : > { %v374_v8 = vadd.f32 %v2569_v2, %v335_v6  ;;  %v2902_v32 = vld [vmem:[#allocation2 + $0x9a] sm:$0xff] }
  0x48   : > { %v2911_v36 = vld [vmem:[#allocation2 + $0x15a] sm:$0xff] }
  0x49   : > { %657 = vrot.lane.b32.xlu1 %v2793_v38, %s2450_s8 }
  0x4a   : > { %663 = vrot.lane.b32.xlu0 %v579_v39, %s2450_s8  ;;  %v2918_v39 = vld [vmem:[#allocation2 + $0x152] sm:$0xff] }
  0x4d   : > { %661 = vrot.lane.b32.xlu1 %v578_v40, %s2450_s8 }
  0x4e   : > { %667 = vrot.lane.b32.xlu0 %v581_v41, %s2450_s8  ;;  %v2922_v41 = vld [vmem:[#allocation2 + $0x138] sm:$0xff] }
  0x4f   : > { %553 = vst.msk [vmem:[#allocation3 + $0xd0] sm:$0xff] %vm416_vm0, %v2922_v41 }
  0x51   : > { %665 = vrot.lane.b32.xlu1 %v580_v42, %s2450_s8 }
  0x52   : > { %685 = vrot.lane.b32.xlu0 %v2800_v43, %s2450_s8 }
  0x55   : > { %683 = vrot.lane.b32.xlu1 %v2805_v44, %s2450_s8 }
  0x56   : > { %846 = vrot.lane.b32.xlu0 %v2807_v45, %s2451_s9 }
  0x59   : > { %844 = vrot.lane.b32.xlu1 %v2813_v46, %s2451_s9 }
  0x5a   : > { %878 = vrot.lane.b32.xlu0 %v2815_v47, %s2451_s9 }
  0x5d   : > { %876 = vrot.lane.b32.xlu1 %v2821_v48, %s2451_s9 }
  0x5e   : > { %1039 = vrot.lane.b32.xlu0 %v2731_v15, %s2452_s10 }
  0x61   : > { %1037 = vrot.lane.b32.xlu1 %v2699_v0, %s2452_s10 }
  0x62   : > { %1071 = vrot.lane.b32.xlu0 %v2835_v52, %s2452_s10 }
  0x65   : > { %1069 = vrot.lane.b32.xlu1 %v2841_v53, %s2452_s10 }
  0x66   : > { %1232 = vrot.lane.b32.xlu0 %v2793_v38, %s2453_s11 }
  0x69   : > { %1230 = vrot.lane.b32.xlu1 %v2761_v25, %s2453_s11 }
  0x6a   : > { %1264 = vrot.lane.b32.xlu0 %v2847_v54, %s2453_s11 }
  0x6d   : > { %1262 = vrot.lane.b32.xlu1 %v2853_v56, %s2453_s11 }
  0x6e   : > { %1425 = vrot.lane.b32.xlu0 %v2855_v57, %s2454_s12 }
  0x71   : > { %1423 = vrot.lane.b32.xlu1 %v2861_v58, %s2454_s12 }
  0x72   : > { %1457 = vrot.lane.b32.xlu0 %v2863_v59, %s2454_s12 }
  0x75   : > { %1455 = vrot.lane.b32.xlu1 %v2869_v60, %s2454_s12 }
  0x76   : > { %1619 = vrot.lane.b32.xlu0 %v2735_v16, %s2455_s13  ;;  %v406_v16 = vmax.f32 %v374_v8, 0.0 }
  0x78   : > { %485 = vst.msk [vmem:[#allocation2 + $0x121] sm:$0xff] %vm416_vm0, %v406_v16 }
  0x79   : > { %1617 = vrot.lane.b32.xlu1 %v2702_v4, %s2455_s13  ;;  %v407_v4 = vmax.f32 %v375_v7, 0.0 }
  0x7a   : > { %1651 = vrot.lane.b32.xlu0 %v1556_v61, %s2455_s13 }
  0x7b   : > { %486 = vst.msk [vmem:[#allocation2 + $0x129] sm:$0xff] %vm416_vm0, %v407_v4 }
  0x7d   : > { %1649 = vrot.lane.b32.xlu1 %v1555_v62, %s2455_s13 }
  0x7e   : > { %1812 = vrot.lane.b32.xlu0 %v578_v40, %s2456_s14  ;;  %v2920_v40 = vld [vmem:[#allocation2 + $0x140] sm:$0xff] }
  0x7f   : > { %554 = vst.msk [vmem:[#allocation3 + $0xd8] sm:$0xff] %vm416_vm0, %v2920_v40 }
  0x81   : > { %1810 = vrot.lane.b32.xlu1 %v2782_v35, %s2456_s14  ;;  %v2909_v35 = vld [vmem:[#allocation2 + $0x92] sm:$0xff] }
  0x82   : > { %1844 = vrot.lane.b32.xlu0 %v1749_v13, %s2456_s14 }
  0x85   : > { %1842 = vrot.lane.b32.xlu1 %v1748_v18, %s2456_s14 }
  0x86   : > { %2005 = vrot.lane.b32.xlu0 %v1926_v24, %s2457_s15  ;;  %v624_v33 = vpop.permute.xlu0 %623 }
  0x87   : > { %720 = vst.msk [vmem:[#allocation3] sm:$0xff] %vm719_vm3, %v624_v33 }
  0x89   : > { %2003 = vrot.lane.b32.xlu1 %v1925_v26, %s2457_s15  ;;  %v295_v26 = vld [vmem:[%s2564_s29 + $0xa8] sm:$0xff] }
  0x8a   : > { %2037 = vrot.lane.b32.xlu0 %v1942_v27, %s2457_s15  ;;  %v334_v33 = vmul.f32 %v2559_v1, %v295_v26 }
  0x8d   : > { %2035 = vrot.lane.b32.xlu1 %v1941_v28, %s2457_s15 }
  0x8e   : > { %681 = vrot.lane.b32.xlu0 %v2895_v29, %s2450_s8 }
  0x91   : > { %679 = vrot.lane.b32.xlu1 %v2900_v31, %s2450_s8 }
  0x92   : > { %842 = vrot.lane.b32.xlu0 %v2902_v32, %s2451_s9 }
  0x95   : > { %840 = vrot.lane.b32.xlu1 %v2909_v35, %s2451_s9 }
  0x96   : > { %874 = vrot.lane.b32.xlu0 %v2911_v36, %s2451_s9 }
  0x98   : > { %v626_v37 = vpop.permute.xlu0 %625 }
  0x99   : > { %721 = vst.msk [vmem:[#allocation3 + $0x8] sm:$0xff] %vm719_vm3, %v626_v37  ;;  %872 = vrot.lane.b32.xlu1 %v2918_v39, %s2451_s9 }
  0x9a   : > { %1035 = vrot.lane.b32.xlu0 %v2704_v9, %s2452_s10 }
  0x9b   : > { %v628_v42 = vpop.permute.xlu1 %627 }
  0x9c   : > { %v632_v61 = vpop.permute.xlu0 %631  ;;  %722 = vst.msk [vmem:[#allocation3 + $0x10] sm:$0xff] %vm719_vm3, %v628_v42 }
  0x9d   : > { %724 = vst.msk [vmem:[#allocation3 + $0x20] sm:$0xff] %vm719_vm3, %v632_v61  ;;  %1033 = vrot.lane.b32.xlu1 %v2712_v10, %s2452_s10  ;;  %v3022_v61 = vld [vmem:[#allocation2 + $0x142] sm:$0xff] }
  0x9e   : > { %1067 = vrot.lane.b32.xlu0 %v2740_v17, %s2452_s10 }
  0x9f   : > { %v630_v62 = vpop.permute.xlu1 %629 }
  0xa0   : > { %v636_v63 = vpop.permute.xlu0 %635  ;;  %723 = vst.msk [vmem:[#allocation3 + $0x18] sm:$0xff] %vm719_vm3, %v630_v62 }
  0xa1   : > { %726 = vst.msk [vmem:[#allocation3 + $0x30] sm:$0xff] %vm719_vm3, %v636_v63  ;;  %1065 = vrot.lane.b32.xlu1 %v2750_v21, %s2452_s10 }
  0xa2   : > { %1228 = vrot.lane.b32.xlu0 %v2780_v34, %s2453_s11 }
  0xa3   : > { %v634_v3 = vpop.permute.xlu1 %633 }
  0xa4   : > { %v640_v5 = vpop.permute.xlu0 %639  ;;  %725 = vst.msk [vmem:[#allocation3 + $0x28] sm:$0xff] %vm719_vm3, %v634_v3  ;;  %v3030_v3 = vld [vmem:[#allocation2 + $0x13a] sm:$0xff] }
  0xa5   : > { %728 = vst.msk [vmem:[#allocation3 + $0x40] sm:$0xff] %vm719_vm3, %v640_v5  ;;  %1226 = vrot.lane.b32.xlu1 %v2744_v19, %s2453_s11 }
  0xa6   : > { %1260 = vrot.lane.b32.xlu0 %v2800_v43, %s2453_s11 }
  0xa7   : > { %v638_v6 = vpop.permute.xlu1 %637 }
  0xa8   : > { %v644_v7 = vpop.permute.xlu0 %643  ;;  %727 = vst.msk [vmem:[#allocation3 + $0x38] sm:$0xff] %vm719_vm3, %v638_v6 }
  0xa9   : > { %730 = vst.msk [vmem:[#allocation3 + $0x50] sm:$0xff] %vm719_vm3, %v644_v7  ;;  %1258 = vrot.lane.b32.xlu1 %v2805_v44, %s2453_s11  ;;  %v3034_v7 = vld [vmem:[#allocation2 + $0x120] sm:$0xff] }
  0xaa   : > { %1421 = vrot.lane.b32.xlu0 %v2807_v45, %s2454_s12  ;;  %551 = vst.msk [vmem:[#allocation3 + $0xc0] sm:$0xff] %vm416_vm0, %v3034_v7 }
  0xab   : > { %v642_v8 = vpop.permute.xlu1 %641 }
  0xac   : > { %v648_v13 = vpop.permute.xlu0 %647  ;;  %729 = vst.msk [vmem:[#allocation3 + $0x48] sm:$0xff] %vm719_vm3, %v642_v8  ;;  %v3036_v8 = vld [vmem:[#allocation2 + $0x128] sm:$0xff] }
  0xad   : > { %732 = vst.msk [vmem:[#allocation3 + $0x60] sm:$0xff] %vm719_vm3, %v648_v13  ;;  %1419 = vrot.lane.b32.xlu1 %v2813_v46, %s2454_s12 }
  0xae   : > { %1453 = vrot.lane.b32.xlu0 %v2815_v47, %s2454_s12  ;;  %552 = vst.msk [vmem:[#allocation3 + $0xc8] sm:$0xff] %vm416_vm0, %v3036_v8 }
  0xaf   : > { %v646_v4 = vpop.permute.xlu1 %645 }
  0xb0   : > { %v652_v16 = vpop.permute.xlu0 %651  ;;  %731 = vst.msk [vmem:[#allocation3 + $0x58] sm:$0xff] %vm719_vm3, %v646_v4 }
  0xb1   : > { %734 = vst.msk [vmem:[#allocation3 + $0x70] sm:$0xff] %vm719_vm3, %v652_v16  ;;  %1451 = vrot.lane.b32.xlu1 %v2821_v48, %s2454_s12 }
  0xb2   : > { %1615 = vrot.lane.b32.xlu0 %v2731_v15, %s2455_s13 }
  0xb3   : > { %v650_v18 = vpop.permute.xlu1 %649 }
  0xb4   : > { %v656_v24 = vpop.permute.xlu0 %655  ;;  %733 = vst.msk [vmem:[#allocation3 + $0x68] sm:$0xff] %vm719_vm3, %v650_v18 }
  0xb5   : > { %736 = vst.msk [vmem:[#allocation3 + $0x80] sm:$0xff] %vm719_vm3, %v656_v24  ;;  %1613 = vrot.lane.b32.xlu1 %v2699_v0, %s2455_s13  ;;  %v373_v0 = vadd.f32 %v2569_v2, %v334_v33 }
  0xb6   : > { %1647 = vrot.lane.b32.xlu0 %v2835_v52, %s2455_s13 }
  0xb7   : > { %v654_v27 = vpop.permute.xlu1 %653  ;;  %v405_v52 = vmax.f32 %v373_v0, 0.0 }
  0xb8   : > { %v660_v28 = vpop.permute.xlu0 %659  ;;  %735 = vst.msk [vmem:[#allocation3 + $0x78] sm:$0xff] %vm719_vm3, %v654_v27 }
  0xb9   : > { %738 = vst.msk [vmem:[#allocation3 + $0x90] sm:$0xff] %vm719_vm3, %v660_v28  ;;  %1645 = vrot.lane.b32.xlu1 %v2841_v53, %s2455_s13 }
  0xba   : > { %1808 = vrot.lane.b32.xlu0 %v2793_v38, %s2456_s14  ;;  %484 = vst.msk [vmem:[#allocation2 + $0x111] sm:$0xff] %vm416_vm0, %v405_v52 }
  0xbb   : > { %v658_v15 = vpop.permute.xlu1 %657 }
  0xbc   : > { %v664_v37 = vpop.permute.xlu0 %663  ;;  %737 = vst.msk [vmem:[#allocation3 + $0x88] sm:$0xff] %vm719_vm3, %v658_v15 }
  0xbd   : > { %740 = vst.msk [vmem:[#allocation3 + $0xa0] sm:$0xff] %vm719_vm3, %v664_v37  ;;  %1806 = vrot.lane.b32.xlu1 %v2761_v25, %s2456_s14  ;;  %v3002_v25 = vld [vmem:[#allocation2 + $0x141] sm:$0xff] }
  0xbe   : > { %1840 = vrot.lane.b32.xlu0 %v2847_v54, %s2456_s14 }
  0xbf   : > { %v662_v1 = vpop.permute.xlu1 %661 }
  0xc0   : > { %v668_v53 = vpop.permute.xlu0 %667  ;;  %739 = vst.msk [vmem:[#allocation3 + $0x98] sm:$0xff] %vm719_vm3, %v662_v1 }
  0xc1   : > { %742 = vst.msk [vmem:[#allocation3 + $0xb0] sm:$0xff] %vm719_vm3, %v668_v53  ;;  %1838 = vrot.lane.b32.xlu1 %v2853_v56, %s2456_s14 }
  0xc2   : > { %2001 = vrot.lane.b32.xlu0 %v2855_v57, %s2457_s15  ;;  %v3010_v57 = vld [vmem:[#allocation2 + $0x139] sm:$0xff] }
  0xc3   : > { %v666_v2 = vpop.permute.xlu1 %665 }
  0xc4   : > { %v686_v38 = vpop.permute.xlu0 %685  ;;  %741 = vst.msk [vmem:[#allocation3 + $0xa8] sm:$0xff] %vm719_vm3, %v666_v2 }
  0xc5   : > { %751 = vst.msk [vmem:[#allocation3 + $0xf8] sm:$0xff] %vm719_vm3, %v686_v38  ;;  %1999 = vrot.lane.b32.xlu1 %v2861_v58, %s2457_s15  ;;  %v3012_v58 = vld [vmem:[#allocation2 + $0x82] sm:$0xff] }
  0xc6   : > { %2033 = vrot.lane.b32.xlu0 %v2863_v59, %s2457_s15 }
  0xc7   : > { %v684_v54 = vpop.permute.xlu1 %683 }
  0xc8   : > { %v847_v56 = vpop.permute.xlu0 %846  ;;  %750 = vst.msk [vmem:[#allocation3 + $0xf0] sm:$0xff] %vm719_vm3, %v684_v54  ;;  %v3122_v54 = vld [vmem:[#allocation2 + $0x6a] sm:$0xff] }
  0xc9   : > { %928 = vst.msk [vmem:[#allocation3 + $0x78] sm:$0xff] %vm912_vm4, %v847_v56  ;;  %2031 = vrot.lane.b32.xlu1 %v2869_v60, %s2457_s15  ;;  %v3020_v60 = vld [vmem:[#allocation2 + $0x7a] sm:$0xff] }
  0xca   : > { %677 = vrot.lane.b32.xlu0 %v3002_v25, %s2450_s8 }
  0xcb   : > { %v845_v59 = vpop.permute.xlu1 %844 }
  0xcc   : > { %v879_v42 = vpop.permute.xlu0 %878  ;;  %927 = vst.msk [vmem:[#allocation3 + $0x70] sm:$0xff] %vm912_vm4, %v845_v59 }
  0xcd   : > { %944 = vst.msk [vmem:[#allocation3 + $0xf8] sm:$0xff] %vm912_vm4, %v879_v42  ;;  %675 = vrot.lane.b32.xlu1 %v3010_v57, %s2450_s8 }
  0xce   : > { %838 = vrot.lane.b32.xlu0 %v3012_v58, %s2451_s9 }
  0xcf   : > { %v877_v62 = vpop.permute.xlu1 %876 }
  0xd0   : > { %v1040_v63 = vpop.permute.xlu0 %1039  ;;  %943 = vst.msk [vmem:[#allocation3 + $0xf0] sm:$0xff] %vm912_vm4, %v877_v62 }
  0xd1   : > { %1121 = vst.msk [vmem:[#allocation3 + $0x78] sm:$0xff] %vm1105_vm5, %v1040_v63  ;;  %836 = vrot.lane.b32.xlu1 %v3020_v60, %s2451_s9  ;;  %v3132_v63 = vld [vmem:[#allocation2 + $0x62] sm:$0xff] }
  0xd2   : > { %870 = vrot.lane.b32.xlu0 %v3022_v61, %s2451_s9 }
  0xd3   : > { %v1038_v5 = vpop.permute.xlu1 %1037 }
  0xd4   : > { %v1072_v6 = vpop.permute.xlu0 %1071  ;;  %1120 = vst.msk [vmem:[#allocation3 + $0x70] sm:$0xff] %vm1105_vm5, %v1038_v5  ;;  %v3134_v5 = vld [vmem:[#allocation2 + $0x12a] sm:$0xff] }
  0xd5   : > { %1137 = vst.msk [vmem:[#allocation3 + $0xf8] sm:$0xff] %vm1105_vm5, %v1072_v6  ;;  %868 = vrot.lane.b32.xlu1 %v3030_v3, %s2451_s9 }
  0xd6   : > { %1031 = vrot.lane.b32.xlu0 %v2757_v23, %s2452_s10 }
  0xd7   : > { %v1070_v13 = vpop.permute.xlu1 %1069 }
  0xd8   : > { %v1233_v4 = vpop.permute.xlu0 %1232  ;;  %1136 = vst.msk [vmem:[#allocation3 + $0xf0] sm:$0xff] %vm1105_vm5, %v1070_v13 }
  0xd9   : > { %1314 = vst.msk [vmem:[#allocation3 + $0x78] sm:$0xff] %vm1298_vm6, %v1233_v4  ;;  %1029 = vrot.lane.b32.xlu1 %v2716_v12, %s2452_s10  ;;  %v3138_v4 = vld [vmem:[#allocation2 + $0x110] sm:$0xff] }
  0xda   : > { %1063 = vrot.lane.b32.xlu0 %v2823_v49, %s2452_s10  ;;  %550 = vst.msk [vmem:[#allocation3 + $0xb8] sm:$0xff] %vm416_vm0, %v3138_v4 }
  0xdb   : > { %v1231_v16 = vpop.permute.xlu1 %1230 }
  0xdc   : > { %v1265_v18 = vpop.permute.xlu0 %1264  ;;  %1313 = vst.msk [vmem:[#allocation3 + $0x70] sm:$0xff] %vm1298_vm6, %v1231_v16  ;;  %v3146_v16 = vld [vmem:[#allocation2 + $0x122] sm:$0xff] }
  0xdd   : > { %1330 = vst.msk [vmem:[#allocation3 + $0xf8] sm:$0xff] %vm1298_vm6, %v1265_v18  ;;  %1061 = vrot.lane.b32.xlu1 %v2825_v51, %s2452_s10 }
  0xde   : > { %1224 = vrot.lane.b32.xlu0 %v2748_v20, %s2453_s11 }
  0xdf   : > { %v1263_v24 = vpop.permute.xlu1 %1262 }
  0xe0   : > { %v1426_v26 = vpop.permute.xlu0 %1425  ;;  %1329 = vst.msk [vmem:[#allocation3 + $0xf0] sm:$0xff] %vm1298_vm6, %v1263_v24 }
  0xe1   : > { %1507 = vst.msk [vmem:[#allocation3 + $0x78] sm:$0xff] %vm1491_vm7, %v1426_v26  ;;  %1222 = vrot.lane.b32.xlu1 %v2729_v14, %s2453_s11 }
  0xe2   : > { %1256 = vrot.lane.b32.xlu0 %v2895_v29, %s2453_s11 }
  0xe3   : > { %v1424_v27 = vpop.permute.xlu1 %1423 }
  0xe4   : > { %v1458_v28 = vpop.permute.xlu0 %1457  ;;  %1506 = vst.msk [vmem:[#allocation3 + $0x70] sm:$0xff] %vm1491_vm7, %v1424_v27 }
  0xe5   : > { %1523 = vst.msk [vmem:[#allocation3 + $0xf8] sm:$0xff] %vm1491_vm7, %v1458_v28  ;;  %1254 = vrot.lane.b32.xlu1 %v2900_v31, %s2453_s11  ;;  %v3160_v28 = vld [vmem:[#allocation2 + $0x81] sm:$0xff] }
  0xe6   : > { %1417 = vrot.lane.b32.xlu0 %v2902_v32, %s2454_s12 }
  0xe7   : > { %v1456_v20 = vpop.permute.xlu1 %1455 }
  0xe8   : > { %v1620_v33 = vpop.permute.xlu0 %1619  ;;  %1522 = vst.msk [vmem:[#allocation3 + $0xf0] sm:$0xff] %vm1491_vm7, %v1456_v20 }
  0xe9   : > { %1701 = vst.msk [vmem:[#allocation3 + $0x78] sm:$0xff] %vm1685_vm8, %v1620_v33  ;;  %1415 = vrot.lane.b32.xlu1 %v2909_v35, %s2454_s12 }
  0xea   : > { %1449 = vrot.lane.b32.xlu0 %v2911_v36, %s2454_s12 }
  0xeb   : > { %v1618_v14 = vpop.permute.xlu1 %1617 }
  0xec   : > { %v1652_v0 = vpop.permute.xlu0 %1651  ;;  %1700 = vst.msk [vmem:[#allocation3 + $0x70] sm:$0xff] %vm1685_vm8, %v1618_v14  ;;  %v3168_v14 = vld [vmem:[#allocation2 + $0x79] sm:$0xff] }
  0xed   : > { %1717 = vst.msk [vmem:[#allocation3 + $0xf8] sm:$0xff] %vm1685_vm8, %v1652_v0  ;;  %1447 = vrot.lane.b32.xlu1 %v2918_v39, %s2454_s12 }
  0xee   : > { %1611 = vrot.lane.b32.xlu0 %v2704_v9, %s2455_s13 }
  0xef   : > { %v1650_v15 = vpop.permute.xlu1 %1649 }
  0xf0   : > { %v1813_v37 = vpop.permute.xlu0 %1812  ;;  %1716 = vst.msk [vmem:[#allocation3 + $0xf0] sm:$0xff] %vm1685_vm8, %v1650_v15 }
  0xf1   : > { %1894 = vst.msk [vmem:[#allocation3 + $0x78] sm:$0xff] %vm1878_vm9, %v1813_v37  ;;  %1609 = vrot.lane.b32.xlu1 %v2712_v10, %s2455_s13 }
  0xf2   : > { %1643 = vrot.lane.b32.xlu0 %v2740_v17, %s2455_s13 }
  0xf3   : > { %v1811_v52 = vpop.permute.xlu1 %1810 }
  0xf4   : > { %v1845_v1 = vpop.permute.xlu0 %1844  ;;  %1893 = vst.msk [vmem:[#allocation3 + $0x70] sm:$0xff] %vm1878_vm9, %v1811_v52 }
  0xf5   : > { %1910 = vst.msk [vmem:[#allocation3 + $0xf8] sm:$0xff] %vm1878_vm9, %v1845_v1  ;;  %1641 = vrot.lane.b32.xlu1 %v2750_v21, %s2455_s13 }
  0xf6   : > { %1804 = vrot.lane.b32.xlu0 %v2780_v34, %s2456_s14 }
  0xf7   : > { %v1843_v9 = vpop.permute.xlu1 %1842 }
  0xf8   : > { %v2006_v53 = vpop.permute.xlu0 %2005  ;;  %1909 = vst.msk [vmem:[#allocation3 + $0xf0] sm:$0xff] %vm1878_vm9, %v1843_v9 }
  0xf9   : > { %2087 = vst.msk [vmem:[#allocation3 + $0x78] sm:$0xff] %vm2071_vm10, %v2006_v53  ;;  %1802 = vrot.lane.b32.xlu1 %v2744_v19, %s2456_s14  ;;  %v3112_v19 = vld [vmem:[#allocation2 + $0x129] sm:$0xff] }
  0xfa   : > { %1836 = vrot.lane.b32.xlu0 %v2800_v43, %s2456_s14 }
  0xfb   : > { %v2004_v10 = vpop.permute.xlu1 %2003 }
  0xfc   : > { %v2038_v17 = vpop.permute.xlu0 %2037  ;;  %2086 = vst.msk [vmem:[#allocation3 + $0x70] sm:$0xff] %vm2071_vm10, %v2004_v10 }
  0xfd   : > { %2103 = vst.msk [vmem:[#allocation3 + $0xf8] sm:$0xff] %vm2071_vm10, %v2038_v17  ;;  %1834 = vrot.lane.b32.xlu1 %v2805_v44, %s2456_s14 }
  0xfe   : > { %1997 = vrot.lane.b32.xlu0 %v2807_v45, %s2457_s15 }
  0xff   : > { %v2036_v21 = vpop.permute.xlu1 %2035 }
 0x100   : > { %v682_v34 = vpop.permute.xlu0 %681  ;;  %2102 = vst.msk [vmem:[#allocation3 + $0xf0] sm:$0xff] %vm2071_vm10, %v2036_v21  ;;  %v2119_v38 = vld [vmem:[#allocation3 + $0x78] sm:$0xff] }
 0x101   : > { %749 = vst.msk [vmem:[#allocation3 + $0xe8] sm:$0xff] %vm719_vm3, %v682_v34  ;;  %1995 = vrot.lane.b32.xlu1 %v2813_v46, %s2457_s15  ;;  %v3120_v46 = vld [vmem:[#allocation2 + $0x121] sm:$0xff]  ;;  %v1727_v34 = vld [vmem:[#allocation2 + $0x99] sm:$0xff] }
 0x102   : > { %2029 = vrot.lane.b32.xlu0 %v2815_v47, %s2457_s15 }
 0x103   : > { %v680_v43 = vpop.permute.xlu1 %679  ;;  %v2118_v44 = vld [vmem:[#allocation3 + $0x70] sm:$0xff] }
 0x104   : > { %v843_v2 = vpop.permute.xlu0 %842  ;;  %748 = vst.msk [vmem:[#allocation3 + $0xe0] sm:$0xff] %vm719_vm3, %v680_v43  ;;  %v2135_v45 = vld [vmem:[#allocation3 + $0xf8] sm:$0xff]  ;;  %v2143_v47 = vpack.c.bf16 %v2119_v38, %v2118_v44 }
 0x105   : > { %926 = vst.msk [vmem:[#allocation3 + $0x68] sm:$0xff] %vm912_vm4, %v843_v2  ;;  %2027 = vrot.lane.b32.xlu1 %v2821_v48, %s2457_s15 }
 0x106   : > { %673 = vrot.lane.b32.xlu0 %v3112_v19, %s2450_s8  ;;  %v2179_v48 = vsel %vm2153_vm11, %v2143_v47, 0 }
 0x107   : > { %v841_v56 = vpop.permute.xlu1 %840  ;;  %v2134_v59 = vld [vmem:[#allocation3 + $0xf0] sm:$0xff] }
 0x108   : > { %v875_v42 = vpop.permute.xlu0 %874  ;;  %925 = vst.msk [vmem:[#allocation3 + $0x60] sm:$0xff] %vm912_vm4, %v841_v56  ;;  %v2151_v62 = vpack.c.bf16 %v2135_v45, %v2134_v59 }
 0x109   : > { %942 = vst.msk [vmem:[#allocation3 + $0xe8] sm:$0xff] %vm912_vm4, %v875_v42  ;;  %671 = vrot.lane.b32.xlu1 %v3120_v46, %s2450_s8  ;;  %v3232_v42 = vld [vmem:[#allocation2 + $0x10a] sm:$0xff] }
 0x10a   : > { %834 = vrot.lane.b32.xlu0 %v3122_v54, %s2451_s9  ;;  %2416 = vmatprep.subr.msk.bf16.mxu0 %vm2153_vm11, %v2151_v62 }
 0x10b   : > { %2399 = vmatpush3.bf16.xpose.msra.mxu0 %v2179_v48  ;;  %v873_v6 = vpop.permute.xlu1 %872 }
 0x10c   : > { %v1036_v13 = vpop.permute.xlu0 %1035  ;;  %941 = vst.msk [vmem:[#allocation3 + $0xe0] sm:$0xff] %vm912_vm4, %v873_v6 }
 0x10d   : > { %1119 = vst.msk [vmem:[#allocation3 + $0x68] sm:$0xff] %vm1105_vm5, %v1036_v13  ;;  %832 = vrot.lane.b32.xlu1 %v3132_v63, %s2451_s9 }
 0x10e   : > { %866 = vrot.lane.b32.xlu0 %v3134_v5, %s2451_s9 }
 0x10f   : > { %v1034_v18 = vpop.permute.xlu1 %1033 }
 0x110   : > { %v1068_v24 = vpop.permute.xlu0 %1067  ;;  %1118 = vst.msk [vmem:[#allocation3 + $0x60] sm:$0xff] %vm1105_vm5, %v1034_v18  ;;  %v3242_v18 = vld [vmem:[#allocation2 + $0x52] sm:$0xff] }
 0x111   : > { %1135 = vst.msk [vmem:[#allocation3 + $0xe8] sm:$0xff] %vm1105_vm5, %v1068_v24  ;;  %864 = vrot.lane.b32.xlu1 %v3146_v16, %s2451_s9 }
 0x112   : > { %1027 = vrot.lane.b32.xlu0 %v2755_v22, %s2452_s10 }
 0x113   : > { %v1066_v26 = vpop.permute.xlu1 %1065 }
 0x114   : > { %v1229_v27 = vpop.permute.xlu0 %1228  ;;  %1134 = vst.msk [vmem:[#allocation3 + $0xe0] sm:$0xff] %vm1105_vm5, %v1066_v26 }
 0x115   : > { %1312 = vst.msk [vmem:[#allocation3 + $0x68] sm:$0xff] %vm1298_vm6, %v1229_v27  ;;  %1025 = vrot.lane.b32.xlu1 %v2685_v55, %s2452_s10  ;;  %v3250_v27 = vld [vmem:[#allocation2 + $0x112] sm:$0xff] }
 0x116   : > { %1059 = vrot.lane.b32.xlu0 %v2920_v40, %s2452_s10 }
 0x117   : > { %v1227_v20 = vpop.permute.xlu1 %1226 }
 0x118   : > { %v1261_v33 = vpop.permute.xlu0 %1260  ;;  %1311 = vst.msk [vmem:[#allocation3 + $0x60] sm:$0xff] %vm1298_vm6, %v1227_v20 }
 0x119   : > { %1328 = vst.msk [vmem:[#allocation3 + $0xe8] sm:$0xff] %vm1298_vm6, %v1261_v33  ;;  %1057 = vrot.lane.b32.xlu1 %v2922_v41, %s2452_s10 }
 0x11a   : > { %1220 = vrot.lane.b32.xlu0 %v3160_v28, %s2453_s11 }
 0x11b   : > { %v1259_v0 = vpop.permute.xlu1 %1258 }
 0x11c   : > { %v1422_v15 = vpop.permute.xlu0 %1421  ;;  %1327 = vst.msk [vmem:[#allocation3 + $0xe0] sm:$0xff] %vm1298_vm6, %v1259_v0  ;;  %v3258_v0 = vld [vmem:[#allocation2 + $0x61] sm:$0xff] }
 0x11d   : > { %1505 = vst.msk [vmem:[#allocation3 + $0x68] sm:$0xff] %vm1491_vm7, %v1422_v15  ;;  %1218 = vrot.lane.b32.xlu1 %v3168_v14, %s2453_s11 }
 0x11e   : > { %1252 = vrot.lane.b32.xlu0 %v3002_v25, %s2453_s11 }
 0x11f   : > { %v1420_v37 = vpop.permute.xlu1 %1419 }
 0x120   : > { %v1454_v52 = vpop.permute.xlu0 %1453  ;;  %1504 = vst.msk [vmem:[#allocation3 + $0x60] sm:$0xff] %vm1491_vm7, %v1420_v37 }
 0x121   : > { %1521 = vst.msk [vmem:[#allocation3 + $0xe8] sm:$0xff] %vm1491_vm7, %v1454_v52  ;;  %1250 = vrot.lane.b32.xlu1 %v3010_v57, %s2453_s11 }
 0x122   : > { %1413 = vrot.lane.b32.xlu0 %v3012_v58, %s2454_s12 }
 0x123   : > { %v1452_v1 = vpop.permute.xlu1 %1451 }
 0x124   : > { %v1616_v9 = vpop.permute.xlu0 %1615  ;;  %1520 = vst.msk [vmem:[#allocation3 + $0xe0] sm:$0xff] %vm1491_vm7, %v1452_v1  ;;  %v3272_v1 = vld [vmem:[#allocation2 + $0x69] sm:$0xff] }
 0x125   : > { %1699 = vst.msk [vmem:[#allocation3 + $0x68] sm:$0xff] %vm1685_vm8, %v1616_v9  ;;  %1411 = vrot.lane.b32.xlu1 %v3020_v60, %s2454_s12 }
 0x126   : > { %1445 = vrot.lane.b32.xlu0 %v3022_v61, %s2454_s12 }
 0x127   : > { %v1614_v53 = vpop.permute.xlu1 %1613 }
 0x128   : > { %v1648_v10 = vpop.permute.xlu0 %1647  ;;  %1698 = vst.msk [vmem:[#allocation3 + $0x60] sm:$0xff] %vm1685_vm8, %v1614_v53 }
 0x129   : > { %1715 = vst.msk [vmem:[#allocation3 + $0xe8] sm:$0xff] %vm1685_vm8, %v1648_v10  ;;  %1443 = vrot.lane.b32.xlu1 %v3030_v3, %s2454_s12 }
 0x12a   : > { %1607 = vrot.lane.b32.xlu0 %v2757_v23, %s2455_s13  ;;  %v1726_v23 = vld [vmem:[#allocation2 + $0x91] sm:$0xff] }
 0x12b   : > { %v1646_v17 = vpop.permute.xlu1 %1645 }
 0x12c   : > { %v1809_v21 = vpop.permute.xlu0 %1808  ;;  %1714 = vst.msk [vmem:[#allocation3 + $0xe0] sm:$0xff] %vm1685_vm8, %v1646_v17 }
 0x12d   : > { %1892 = vst.msk [vmem:[#allocation3 + $0x68] sm:$0xff] %vm1878_vm9, %v1809_v21  ;;  %1605 = vrot.lane.b32.xlu1 %v2716_v12, %s2455_s13 }
 0x12e   : > { %1639 = vrot.lane.b32.xlu0 %v2823_v49, %s2455_s13 }
 0x12f   : > { %v1807_v43 = vpop.permute.xlu1 %1806 }
 0x130   : > { %v1841_v2 = vpop.permute.xlu0 %1840  ;;  %1891 = vst.msk [vmem:[#allocation3 + $0x60] sm:$0xff] %vm1878_vm9, %v1807_v43 }
 0x131   : > { %1908 = vst.msk [vmem:[#allocation3 + $0xe8] sm:$0xff] %vm1878_vm9, %v1841_v2  ;;  %1637 = vrot.lane.b32.xlu1 %v2825_v51, %s2455_s13 }
 0x132   : > { %1800 = vrot.lane.b32.xlu0 %v1727_v34, %s2456_s14 }
 0x133   : > { %v1839_v44 = vpop.permute.xlu1 %1838 }
 0x134   : > { %v2002_v38 = vpop.permute.xlu0 %2001  ;;  %1907 = vst.msk [vmem:[#allocation3 + $0xe0] sm:$0xff] %vm1878_vm9, %v1839_v44 }
 0x135   : > { %2085 = vst.msk [vmem:[#allocation3 + $0x68] sm:$0xff] %vm2071_vm10, %v2002_v38  ;;  %1798 = vrot.lane.b32.xlu1 %v1726_v23, %s2456_s14 }
 0x136   : > { %1832 = vrot.lane.b32.xlu0 %v2895_v29, %s2456_s14  ;;  %v3222_v29 = vld [vmem:[#allocation2 + $0x4a] sm:$0xff] }
 0x137   : > { %v2000_v12 = vpop.permute.xlu1 %1999 }
 0x138   : > { %v2034_v49 = vpop.permute.xlu0 %2033  ;;  %2084 = vst.msk [vmem:[#allocation3 + $0x60] sm:$0xff] %vm2071_vm10, %v2000_v12 }
 0x139   : > { %2101 = vst.msk [vmem:[#allocation3 + $0xe8] sm:$0xff] %vm2071_vm10, %v2034_v49  ;;  %1830 = vrot.lane.b32.xlu1 %v2900_v31, %s2456_s14 }
 0x13a   : > { %1993 = vrot.lane.b32.xlu0 %v2902_v32, %s2457_s15 }
 0x13b   : > { %v2032_v51 = vpop.permute.xlu1 %2031 }
 0x13c   : > { %v678_v45 = vpop.permute.xlu0 %677  ;;  %2100 = vst.msk [vmem:[#allocation3 + $0xe0] sm:$0xff] %vm2071_vm10, %v2032_v51  ;;  %v2117_v59 = vld [vmem:[#allocation3 + $0x68] sm:$0xff] }
 0x13d   : > { %747 = vst.msk [vmem:[#allocation3 + $0xd8] sm:$0xff] %vm719_vm3, %v678_v45  ;;  %1991 = vrot.lane.b32.xlu1 %v2909_v35, %s2457_s15  ;;  %v3230_v35 = vld [vmem:[#allocation2 + $0x111] sm:$0xff] }
 0x13e   : > { %2025 = vrot.lane.b32.xlu0 %v2911_v36, %s2457_s15 }
 0x13f   : > { %v676_v47 = vpop.permute.xlu1 %675  ;;  %v2116_v31 = vld [vmem:[#allocation3 + $0x60] sm:$0xff] }
 0x140   : > { %v839_v56 = vpop.permute.xlu0 %838  ;;  %746 = vst.msk [vmem:[#allocation3 + $0xd0] sm:$0xff] %vm719_vm3, %v676_v47  ;;  %v2133_v32 = vld [vmem:[#allocation3 + $0xe8] sm:$0xff]  ;;  %v2142_v36 = vpack.c.bf16 %v2117_v59, %v2116_v31  ;;  %v3340_v47 = vld [vmem:[#allocation2 + $0x48] sm:$0xff] }
 0x141   : > { %924 = vst.msk [vmem:[#allocation3 + $0x58] sm:$0xff] %vm912_vm4, %v839_v56  ;;  %2023 = vrot.lane.b32.xlu1 %v2918_v39, %s2457_s15 }
 0x142   : > { %828 = vrot.lane.b32.xlu0 %v3222_v29, %s2451_s9  ;;  %v2176_v39 = vsel %vm2153_vm11, %v2142_v36, 0  ;;  %v3350_v36 = vld [vmem:[#allocation2 + $0xfa] sm:$0xff] }
 0x143   : > { %v837_v62 = vpop.permute.xlu1 %836  ;;  %v2132_v48 = vld [vmem:[#allocation3 + $0xe0] sm:$0xff] }
 0x144   : > { %v871_v6 = vpop.permute.xlu0 %870  ;;  %923 = vst.msk [vmem:[#allocation3 + $0x50] sm:$0xff] %vm912_vm4, %v837_v62  ;;  %v2150_v13 = vpack.c.bf16 %v2133_v32, %v2132_v48 }
 0x145   : > { %940 = vst.msk [vmem:[#allocation3 + $0xd8] sm:$0xff] %vm912_vm4, %v871_v6  ;;  %669 = vrot.lane.b32.xlu1 %v3230_v35, %s2450_s8  ;;  %v3358_v6 = vld [vmem:[#allocation2 + $0x50] sm:$0xff] }
 0x146   : > { %860 = vrot.lane.b32.xlu0 %v3232_v42, %s2451_s9  ;;  %2417 = vmatprep.subr.msk.bf16.mxu0 %vm2153_vm11, %v2150_v13  ;;  %v3360_v13 = vld [vmem:[#allocation2 + $0x49] sm:$0xff] }
 0x147   : > { %2401 = vmatpush3.bf16.xpose.msra.mxu0 %v2176_v39  ;;  %v869_v24 = vpop.permute.xlu1 %868 }
 0x148   : > { %v1032_v26 = vpop.permute.xlu0 %1031  ;;  %939 = vst.msk [vmem:[#allocation3 + $0xd0] sm:$0xff] %vm912_vm4, %v869_v24 }
 0x149   : > { %1117 = vst.msk [vmem:[#allocation3 + $0x58] sm:$0xff] %vm1105_vm5, %v1032_v26  ;;  %830 = vrot.lane.b32.xlu1 %v3242_v18, %s2451_s9  ;;  %v3368_v26 = vld [vmem:[#allocation2 + $0x109] sm:$0xff] }
 0x14a   : > { %1021 = vrot.lane.b32.xlu0 %v2671_v50, %s2452_s10 }
 0x14b   : > { %v1030_v20 = vpop.permute.xlu1 %1029 }
 0x14c   : > { %v1064_v33 = vpop.permute.xlu0 %1063  ;;  %1116 = vst.msk [vmem:[#allocation3 + $0x50] sm:$0xff] %vm1105_vm5, %v1030_v20 }
 0x14d   : > { %1133 = vst.msk [vmem:[#allocation3 + $0xd8] sm:$0xff] %vm1105_vm5, %v1064_v33  ;;  %862 = vrot.lane.b32.xlu1 %v3250_v27, %s2451_s9  ;;  %v3376_v33 = vld [vmem:[#allocation2 + $0x51] sm:$0xff] }
 0x14e   : > { %1053 = vrot.lane.b32.xlu0 %v3034_v7, %s2452_s10 }
 0x14f   : > { %v1062_v15 = vpop.permute.xlu1 %1061 }
 0x150   : > { %v1225_v37 = vpop.permute.xlu0 %1224  ;;  %1132 = vst.msk [vmem:[#allocation3 + $0xd0] sm:$0xff] %vm1105_vm5, %v1062_v15 }
 0x151   : > { %1310 = vst.msk [vmem:[#allocation3 + $0x58] sm:$0xff] %vm1298_vm6, %v1225_v37  ;;  %1023 = vrot.lane.b32.xlu1 %v2714_v11, %s2452_s10 }
 0x152   : > { %1214 = vrot.lane.b32.xlu0 %v3258_v0, %s2453_s11 }
 0x153   : > { %v1223_v50 = vpop.permute.xlu1 %1222 }
 0x154   : > { %v1257_v52 = vpop.permute.xlu0 %1256  ;;  %1309 = vst.msk [vmem:[#allocation3 + $0x50] sm:$0xff] %vm1298_vm6, %v1223_v50 }
 0x155   : > { %1326 = vst.msk [vmem:[#allocation3 + $0xd8] sm:$0xff] %vm1298_vm6, %v1257_v52  ;;  %1055 = vrot.lane.b32.xlu1 %v3036_v8, %s2452_s10 }
 0x156   : > { %1246 = vrot.lane.b32.xlu0 %v3120_v46, %s2453_s11 }
 0x157   : > { %v1255_v9 = vpop.permute.xlu1 %1254 }
 0x158   : > { %v1418_v53 = vpop.permute.xlu0 %1417  ;;  %1325 = vst.msk [vmem:[#allocation3 + $0xd0] sm:$0xff] %vm1298_vm6, %v1255_v9  ;;  %v1529_v9 = vld [vmem:[#allocation2 + $0x60] sm:$0xff] }
 0x159   : > { %1503 = vst.msk [vmem:[#allocation3 + $0x58] sm:$0xff] %vm1491_vm7, %v1418_v53  ;;  %1216 = vrot.lane.b32.xlu1 %v3272_v1, %s2453_s11 }
 0x15a   : > { %1407 = vrot.lane.b32.xlu0 %v3132_v63, %s2454_s12 }
 0x15b   : > { %v1416_v11 = vpop.permute.xlu1 %1415 }
 0x15c   : > { %v1450_v10 = vpop.permute.xlu0 %1449  ;;  %1502 = vst.msk [vmem:[#allocation3 + $0x50] sm:$0xff] %vm1491_vm7, %v1416_v11 }
 0x15d   : > { %1519 = vst.msk [vmem:[#allocation3 + $0xd8] sm:$0xff] %vm1491_vm7, %v1450_v10  ;;  %1248 = vrot.lane.b32.xlu1 %v3112_v19, %s2453_s11 }
 0x15e   : > { %1439 = vrot.lane.b32.xlu0 %v3146_v16, %s2454_s12 }
 0x15f   : > { %v1448_v17 = vpop.permute.xlu1 %1447 }
 0x160   : > { %v1612_v21 = vpop.permute.xlu0 %1611  ;;  %1518 = vst.msk [vmem:[#allocation3 + $0xd0] sm:$0xff] %vm1491_vm7, %v1448_v17 }
 0x161   : > { %1697 = vst.msk [vmem:[#allocation3 + $0x58] sm:$0xff] %vm1685_vm8, %v1612_v21  ;;  %1409 = vrot.lane.b32.xlu1 %v3122_v54, %s2454_s12  ;;  %v1530_v21 = vld [vmem:[#allocation2 + $0x68] sm:$0xff] }
 0x162   : > { %1601 = vrot.lane.b32.xlu0 %v2685_v55, %s2455_s13 }
 0x163   : > { %v1610_v34 = vpop.permute.xlu1 %1609 }
 0x164   : > { %v1644_v43 = vpop.permute.xlu0 %1643  ;;  %1696 = vst.msk [vmem:[#allocation3 + $0x50] sm:$0xff] %vm1685_vm8, %v1610_v34 }
 0x165   : > { %1713 = vst.msk [vmem:[#allocation3 + $0xd8] sm:$0xff] %vm1685_vm8, %v1644_v43  ;;  %1441 = vrot.lane.b32.xlu1 %v3134_v5, %s2454_s12 }
 0x166   : > { %1633 = vrot.lane.b32.xlu0 %v2922_v41, %s2455_s13 }
 0x167   : > { %v1642_v2 = vpop.permute.xlu1 %1641 }
 0x168   : > { %v1805_v23 = vpop.permute.xlu0 %1804  ;;  %1712 = vst.msk [vmem:[#allocation3 + $0xd0] sm:$0xff] %vm1685_vm8, %v1642_v2 }
 0x169   : > { %1890 = vst.msk [vmem:[#allocation3 + $0x58] sm:$0xff] %vm1878_vm9, %v1805_v23  ;;  %1603 = vrot.lane.b32.xlu1 %v2755_v22, %s2455_s13 }
 0x16a   : > { %1794 = vrot.lane.b32.xlu0 %v3168_v14, %s2456_s14 }
 0x16b   : > { %v1803_v55 = vpop.permute.xlu1 %1802 }
 0x16c   : > { %v1837_v44 = vpop.permute.xlu0 %1836  ;;  %1889 = vst.msk [vmem:[#allocation3 + $0x50] sm:$0xff] %vm1878_vm9, %v1803_v55 }
 0x16d   : > { %1906 = vst.msk [vmem:[#allocation3 + $0xd8] sm:$0xff] %vm1878_vm9, %v1837_v44  ;;  %1635 = vrot.lane.b32.xlu1 %v2920_v40, %s2455_s13  ;;  %v3322_v40 = vld [vmem:[#allocation2 + $0x32] sm:$0xff] }
 0x16e   : > { %1826 = vrot.lane.b32.xlu0 %v3010_v57, %s2456_s14 }
 0x16f   : > { %v1835_v41 = vpop.permute.xlu1 %1834 }
 0x170   : > { %v1998_v38 = vpop.permute.xlu0 %1997  ;;  %1905 = vst.msk [vmem:[#allocation3 + $0xd0] sm:$0xff] %vm1878_vm9, %v1835_v41 }
 0x171   : > { %2083 = vst.msk [vmem:[#allocation3 + $0x58] sm:$0xff] %vm2071_vm10, %v1998_v38  ;;  %1796 = vrot.lane.b32.xlu1 %v3160_v28, %s2456_s14 }
 0x172   : > { %1987 = vrot.lane.b32.xlu0 %v3020_v60, %s2457_s15  ;;  %v3330_v60 = vld [vmem:[#allocation2 + $0xf2] sm:$0xff] }
 0x173   : > { %v1996_v22 = vpop.permute.xlu1 %1995 }
 0x174   : > { %v2030_v14 = vpop.permute.xlu0 %2029  ;;  %2082 = vst.msk [vmem:[#allocation3 + $0x50] sm:$0xff] %vm2071_vm10, %v1996_v22 }
 0x175   : > { %2099 = vst.msk [vmem:[#allocation3 + $0xd8] sm:$0xff] %vm2071_vm10, %v2030_v14  ;;  %1828 = vrot.lane.b32.xlu1 %v3002_v25, %s2456_s14 }
 0x176   : > { %2019 = vrot.lane.b32.xlu0 %v3030_v3, %s2457_s15 }
 0x177   : > { %v2028_v57 = vpop.permute.xlu1 %2027 }
 0x178   : > { %v674_v12 = vpop.permute.xlu0 %673  ;;  %2098 = vst.msk [vmem:[#allocation3 + $0xd0] sm:$0xff] %vm2071_vm10, %v2028_v57  ;;  %v2115_v3 = vld [vmem:[#allocation3 + $0x58] sm:$0xff] }
 0x179   : > { %745 = vst.msk [vmem:[#allocation3 + $0xc8] sm:$0xff] %vm719_vm3, %v674_v12  ;;  %1989 = vrot.lane.b32.xlu1 %v3012_v58, %s2457_s15  ;;  %v3338_v58 = vld [vmem:[#allocation2 + $0x3a] sm:$0xff] }
 0x17a   : > { %824 = vrot.lane.b32.xlu0 %v3322_v40, %s2451_s9 }
 0x17b   : > { %v672_v25 = vpop.permute.xlu1 %671  ;;  %v2114_v49 = vld [vmem:[#allocation3 + $0x50] sm:$0xff] }
 0x17c   : > { %v835_v28 = vpop.permute.xlu0 %834  ;;  %744 = vst.msk [vmem:[#allocation3 + $0xc0] sm:$0xff] %vm719_vm3, %v672_v25  ;;  %v2131_v51 = vld [vmem:[#allocation3 + $0xd8] sm:$0xff]  ;;  %v2141_v45 = vpack.c.bf16 %v2115_v3, %v2114_v49 }
 0x17d   : > { %922 = vst.msk [vmem:[#allocation3 + $0x48] sm:$0xff] %vm912_vm4, %v835_v28  ;;  %2021 = vrot.lane.b32.xlu1 %v3022_v61, %s2457_s15  ;;  %v3452_v28 = vld [vmem:[#allocation2 + $0xf0] sm:$0xff] }
 0x17e   : > { %856 = vrot.lane.b32.xlu0 %v3330_v60, %s2451_s9  ;;  %v2173_v61 = vsel %vm2153_vm11, %v2141_v45, 0 }
 0x17f   : > { %v833_v56 = vpop.permute.xlu1 %832  ;;  %v2130_v31 = vld [vmem:[#allocation3 + $0xd0] sm:$0xff] }
 0x180   : > { %v867_v59 = vpop.permute.xlu0 %866  ;;  %921 = vst.msk [vmem:[#allocation3 + $0x40] sm:$0xff] %vm912_vm4, %v833_v56  ;;  %v2149_v32 = vpack.c.bf16 %v2131_v51, %v2130_v31  ;;  %v3462_v31 = vld [vmem:[#allocation2 + $0x38] sm:$0xff] }
 0x181   : > { %938 = vst.msk [vmem:[#allocation3 + $0xc8] sm:$0xff] %vm912_vm4, %v867_v59  ;;  %826 = vrot.lane.b32.xlu1 %v3338_v58, %s2451_s9  ;;  %v3464_v59 = vld [vmem:[#allocation2 + $0x31] sm:$0xff] }
 0x182   : > { %1017 = vrot.lane.b32.xlu0 %v3340_v47, %s2452_s10  ;;  %2418 = vmatprep.subr.msk.bf16.mxu0 %vm2153_vm11, %v2149_v32 }
 0x183   : > { %2403 = vmatpush3.bf16.xpose.msra.mxu0 %v2173_v61  ;;  %v865_v62 = vpop.permute.xlu1 %864 }
 0x184   : > { %v1028_v48 = vpop.permute.xlu0 %1027  ;;  %937 = vst.msk [vmem:[#allocation3 + $0xc0] sm:$0xff] %vm912_vm4, %v865_v62  ;;  %v3472_v62 = vld [vmem:[#allocation2 + $0xf8] sm:$0xff] }
 0x185   : > { %1115 = vst.msk [vmem:[#allocation3 + $0x48] sm:$0xff] %vm1105_vm5, %v1028_v48  ;;  %858 = vrot.lane.b32.xlu1 %v3350_v36, %s2451_s9  ;;  %v3474_v48 = vld [vmem:[#allocation2 + $0xf1] sm:$0xff] }
 0x186   : > { %1049 = vrot.lane.b32.xlu0 %v2776_v30, %s2452_s10 }
 0x187   : > { %v1026_v39 = vpop.permute.xlu1 %1025 }
 0x188   : > { %v1060_v24 = vpop.permute.xlu0 %1059  ;;  %1114 = vst.msk [vmem:[#allocation3 + $0x40] sm:$0xff] %vm1105_vm5, %v1026_v39 }
 0x189   : > { %1131 = vst.msk [vmem:[#allocation3 + $0xc8] sm:$0xff] %vm1105_vm5, %v1060_v24  ;;  %1019 = vrot.lane.b32.xlu1 %v3358_v6, %s2452_s10 }
 0x18a   : > { %1210 = vrot.lane.b32.xlu0 %v3360_v13, %s2453_s11 }
 0x18b   : > { %v1058_v20 = vpop.permute.xlu1 %1057 }
 0x18c   : > { %v1221_v30 = vpop.permute.xlu0 %1220  ;;  %1130 = vst.msk [vmem:[#allocation3 + $0xc0] sm:$0xff] %vm1105_vm5, %v1058_v20  ;;  %v3482_v20 = vld [vmem:[#allocation2 + $0x39] sm:$0xff] }
 0x18d   : > { %1308 = vst.msk [vmem:[#allocation3 + $0x48] sm:$0xff] %vm1298_vm6, %v1221_v30  ;;  %1051 = vrot.lane.b32.xlu1 %v3138_v4, %s2452_s10 }
 0x18e   : > { %1242 = vrot.lane.b32.xlu0 %v3368_v26, %s2453_s11 }
 0x18f   : > { %v1219_v15 = vpop.permute.xlu1 %1218 }
 0x190   : > { %v1253_v37 = vpop.permute.xlu0 %1252  ;;  %1307 = vst.msk [vmem:[#allocation3 + $0x40] sm:$0xff] %vm1298_vm6, %v1219_v15 }
 0x191   : > { %1324 = vst.msk [vmem:[#allocation3 + $0xc8] sm:$0xff] %vm1298_vm6, %v1253_v37  ;;  %1212 = vrot.lane.b32.xlu1 %v3376_v33, %s2453_s11  ;;  %v3490_v37 = vld [vmem:[#allocation2 + $0xf9] sm:$0xff] }
 0x192   : > { %1403 = vrot.lane.b32.xlu0 %v3222_v29, %s2454_s12 }
 0x193   : > { %v1251_v50 = vpop.permute.xlu1 %1250 }
 0x194   : > { %v1414_v52 = vpop.permute.xlu0 %1413  ;;  %1323 = vst.msk [vmem:[#allocation3 + $0xc0] sm:$0xff] %vm1298_vm6, %v1251_v50 }
 0x195   : > { %1501 = vst.msk [vmem:[#allocation3 + $0x48] sm:$0xff] %vm1491_vm7, %v1414_v52  ;;  %1244 = vrot.lane.b32.xlu1 %v3230_v35, %s2453_s11 }
 0x196   : > { %1435 = vrot.lane.b32.xlu0 %v3232_v42, %s2454_s12 }
 0x197   : > { %v1412_v53 = vpop.permute.xlu1 %1411 }
 0x198   : > { %v1446_v11 = vpop.permute.xlu0 %1445  ;;  %1500 = vst.msk [vmem:[#allocation3 + $0x40] sm:$0xff] %vm1491_vm7, %v1412_v53 }
 0x199   : > { %1517 = vst.msk [vmem:[#allocation3 + $0xc8] sm:$0xff] %vm1491_vm7, %v1446_v11  ;;  %1405 = vrot.lane.b32.xlu1 %v3242_v18, %s2454_s12  ;;  %v1543_v11 = vld [vmem:[#allocation2 + $0x108] sm:$0xff] }
 0x19a   : > { %1597 = vrot.lane.b32.xlu0 %v1529_v9, %s2455_s13 }
 0x19b   : > { %v1444_v10 = vpop.permute.xlu1 %1443 }
 0x19c   : > { %v1608_v17 = vpop.permute.xlu0 %1607  ;;  %1516 = vst.msk [vmem:[#allocation3 + $0xc0] sm:$0xff] %vm1491_vm7, %v1444_v10 }
 0x19d   : > { %1695 = vst.msk [vmem:[#allocation3 + $0x48] sm:$0xff] %vm1685_vm8, %v1608_v17  ;;  %1437 = vrot.lane.b32.xlu1 %v3250_v27, %s2454_s12 }
 0x19e   : > { %1629 = vrot.lane.b32.xlu0 %v3034_v7, %s2455_s13 }
 0x19f   : > { %v1606_v34 = vpop.permute.xlu1 %1605 }
 0x1a0   : > { %v1640_v43 = vpop.permute.xlu0 %1639  ;;  %1694 = vst.msk [vmem:[#allocation3 + $0x40] sm:$0xff] %vm1685_vm8, %v1606_v34 }
 0x1a1   : > { %1711 = vst.msk [vmem:[#allocation3 + $0xc8] sm:$0xff] %vm1685_vm8, %v1640_v43  ;;  %1599 = vrot.lane.b32.xlu1 %v1530_v21, %s2455_s13 }
 0x1a2   : > { %1790 = vrot.lane.b32.xlu0 %v3258_v0, %s2456_s14 }
 0x1a3   : > { %v1638_v2 = vpop.permute.xlu1 %1637 }
 0x1a4   : > { %v1801_v23 = vpop.permute.xlu0 %1800  ;;  %1710 = vst.msk [vmem:[#allocation3 + $0xc0] sm:$0xff] %vm1685_vm8, %v1638_v2 }
 0x1a5   : > { %1888 = vst.msk [vmem:[#allocation3 + $0x48] sm:$0xff] %vm1878_vm9, %v1801_v23  ;;  %1631 = vrot.lane.b32.xlu1 %v3036_v8, %s2455_s13  ;;  %v3424_v8 = vld [vmem:[#allocation2 + $0x1a] sm:$0xff] }
 0x1a6   : > { %1822 = vrot.lane.b32.xlu0 %v3120_v46, %s2456_s14 }
 0x1a7   : > { %v1799_v7 = vpop.permute.xlu1 %1798 }
 0x1a8   : > { %v1833_v55 = vpop.permute.xlu0 %1832  ;;  %1887 = vst.msk [vmem:[#allocation3 + $0x40] sm:$0xff] %vm1878_vm9, %v1799_v7 }
 0x1a9   : > { %1904 = vst.msk [vmem:[#allocation3 + $0xc8] sm:$0xff] %vm1878_vm9, %v1833_v55  ;;  %1792 = vrot.lane.b32.xlu1 %v3272_v1, %s2456_s14 }
 0x1aa   : > { %1983 = vrot.lane.b32.xlu0 %v3132_v63, %s2457_s15  ;;  %v3432_v63 = vld [vmem:[#allocation2 + $0xda] sm:$0xff] }
 0x1ab   : > { %v1831_v0 = vpop.permute.xlu1 %1830 }
 0x1ac   : > { %v1994_v44 = vpop.permute.xlu0 %1993  ;;  %1903 = vst.msk [vmem:[#allocation3 + $0xc0] sm:$0xff] %vm1878_vm9, %v1831_v0 }
 0x1ad   : > { %2081 = vst.msk [vmem:[#allocation3 + $0x48] sm:$0xff] %vm2071_vm10, %v1994_v44  ;;  %1824 = vrot.lane.b32.xlu1 %v3112_v19, %s2456_s14 }
 0x1ae   : > { %2015 = vrot.lane.b32.xlu0 %v3146_v16, %s2457_s15  ;;  %v3440_v16 = vld [vmem:[#allocation2 + $0x22] sm:$0xff] }
 0x1af   : > { %v1992_v46 = vpop.permute.xlu1 %1991 }
 0x1b0   : > { %v2026_v41 = vpop.permute.xlu0 %2025  ;;  %2080 = vst.msk [vmem:[#allocation3 + $0x40] sm:$0xff] %vm2071_vm10, %v1992_v46  ;;  %v961_v46 = vld [vmem:[#allocation2 + $0xd8] sm:$0xff] }
 0x1b1   : > { %2097 = vst.msk [vmem:[#allocation3 + $0xc8] sm:$0xff] %vm2071_vm10, %v2026_v41  ;;  %1985 = vrot.lane.b32.xlu1 %v3122_v54, %s2457_s15  ;;  %v3442_v54 = vld [vmem:[#allocation2 + $0x30] sm:$0xff] }
 0x1b2   : > { %820 = vrot.lane.b32.xlu0 %v3424_v8, %s2451_s9 }
 0x1b3   : > { %v2024_v19 = vpop.permute.xlu1 %2023 }
 0x1b4   : > { %v829_v1 = vpop.permute.xlu0 %828  ;;  %2096 = vst.msk [vmem:[#allocation3 + $0xc0] sm:$0xff] %vm2071_vm10, %v2024_v19  ;;  %v2113_v57 = vld [vmem:[#allocation3 + $0x48] sm:$0xff] }
 0x1b5   : > { %919 = vst.msk [vmem:[#allocation3 + $0x30] sm:$0xff] %vm912_vm4, %v829_v1  ;;  %2017 = vrot.lane.b32.xlu1 %v3134_v5, %s2457_s15  ;;  %v3450_v5 = vld [vmem:[#allocation2 + $0xe2] sm:$0xff] }
 0x1b6   : > { %852 = vrot.lane.b32.xlu0 %v3432_v63, %s2451_s9 }
 0x1b7   : > { %v670_v38 = vpop.permute.xlu1 %669  ;;  %v2112_v14 = vld [vmem:[#allocation3 + $0x40] sm:$0xff] }
 0x1b8   : > { %v861_v22 = vpop.permute.xlu0 %860  ;;  %743 = vst.msk [vmem:[#allocation3 + $0xb8] sm:$0xff] %vm719_vm3, %v670_v38  ;;  %v2129_v12 = vld [vmem:[#allocation3 + $0xc8] sm:$0xff]  ;;  %v2140_v25 = vpack.c.bf16 %v2113_v57, %v2112_v14 }
 0x1b9   : > { %935 = vst.msk [vmem:[#allocation3 + $0xb0] sm:$0xff] %vm912_vm4, %v861_v22  ;;  %822 = vrot.lane.b32.xlu1 %v3440_v16, %s2451_s9  ;;  %v946_v22 = vld [vmem:[#allocation2 + $0x20] sm:$0xff] }
 0x1ba   : > { %1013 = vrot.lane.b32.xlu0 %v3442_v54, %s2452_s10  ;;  %v2170_v56 = vsel %vm2153_vm11, %v2140_v25, 0  ;;  %v1138_v57 = vld [vmem:[#allocation2 + $0x19] sm:$0xff] }
 0x1bb   : > { %v831_v49 = vpop.permute.xlu1 %830  ;;  %v2128_v3 = vld [vmem:[#allocation3 + $0xc0] sm:$0xff] }
 0x1bc   : > { %v1022_v51 = vpop.permute.xlu0 %1021  ;;  %920 = vst.msk [vmem:[#allocation3 + $0x38] sm:$0xff] %vm912_vm4, %v831_v49  ;;  %v2148_v45 = vpack.c.bf16 %v2129_v12, %v2128_v3 }
 0x1bd   : > { %1112 = vst.msk [vmem:[#allocation3 + $0x30] sm:$0xff] %vm1105_vm5, %v1022_v51  ;;  %854 = vrot.lane.b32.xlu1 %v3450_v5, %s2451_s9 }
 0x1be   : > { %1045 = vrot.lane.b32.xlu0 %v3452_v28, %s2452_s10  ;;  %2419 = vmatprep.subr.msk.bf16.mxu0 %vm2153_vm11, %v2148_v45  ;;  %v962_v45 = vld [vmem:[#allocation2 + $0xe0] sm:$0xff] }
 0x1bf   : > { %2405 = vmatpush3.bf16.xpose.msra.mxu0 %v2170_v56  ;;  %v863_v32 = vpop.permute.xlu1 %862  ;;  %v1154_v56 = vld [vmem:[#allocation2 + $0xd9] sm:$0xff] }
 0x1c0   : > { %v1054_v61 = vpop.permute.xlu0 %1053  ;;  %936 = vst.msk [vmem:[#allocation3 + $0xb8] sm:$0xff] %vm912_vm4, %v863_v32 }
 0x1c1   : > { %1128 = vst.msk [vmem:[#allocation3 + $0xb0] sm:$0xff] %vm1105_vm5, %v1054_v61  ;;  %1015 = vrot.lane.b32.xlu1 %v3462_v31, %s2452_s10 }
 0x1c2   : > { %1206 = vrot.lane.b32.xlu0 %v3464_v59, %s2453_s11 }
 0x1c3   : > { %v1024_v39 = vpop.permute.xlu1 %1023 }
 0x1c4   : > { %v1215_v24 = vpop.permute.xlu0 %1214  ;;  %1113 = vst.msk [vmem:[#allocation3 + $0x38] sm:$0xff] %vm1105_vm5, %v1024_v39  ;;  %v1139_v39 = vld [vmem:[#allocation2 + $0x21] sm:$0xff] }
 0x1c5   : > { %1305 = vst.msk [vmem:[#allocation3 + $0x30] sm:$0xff] %vm1298_vm6, %v1215_v24  ;;  %1047 = vrot.lane.b32.xlu1 %v3472_v62, %s2452_s10 }
 0x1c6   : > { %1238 = vrot.lane.b32.xlu0 %v3474_v48, %s2453_s11 }
 0x1c7   : > { %v1056_v30 = vpop.permute.xlu1 %1055 }
 0x1c8   : > { %v1247_v15 = vpop.permute.xlu0 %1246  ;;  %1129 = vst.msk [vmem:[#allocation3 + $0xb8] sm:$0xff] %vm1105_vm5, %v1056_v30 }
 0x1c9   : > { %1321 = vst.msk [vmem:[#allocation3 + $0xb0] sm:$0xff] %vm1298_vm6, %v1247_v15  ;;  %1208 = vrot.lane.b32.xlu1 %v3482_v20, %s2453_s11  ;;  %v1155_v15 = vld [vmem:[#allocation2 + $0xe1] sm:$0xff] }
 0x1ca   : > { %1399 = vrot.lane.b32.xlu0 %v3322_v40, %s2454_s12 }
 0x1cb   : > { %v1217_v50 = vpop.permute.xlu1 %1216 }
 0x1cc   : > { %v1408_v52 = vpop.permute.xlu0 %1407  ;;  %1306 = vst.msk [vmem:[#allocation3 + $0x38] sm:$0xff] %vm1298_vm6, %v1217_v50 }
 0x1cd   : > { %1498 = vst.msk [vmem:[#allocation3 + $0x30] sm:$0xff] %vm1491_vm7, %v1408_v52  ;;  %1240 = vrot.lane.b32.xlu1 %v3490_v37, %s2453_s11 }
 0x1ce   : > { %1431 = vrot.lane.b32.xlu0 %v3330_v60, %s2454_s12 }
 0x1cf   : > { %v1249_v9 = vpop.permute.xlu1 %1248 }
 0x1d0   : > { %v1440_v53 = vpop.permute.xlu0 %1439  ;;  %1322 = vst.msk [vmem:[#allocation3 + $0xb8] sm:$0xff] %vm1298_vm6, %v1249_v9 }
 0x1d1   : > { %1514 = vst.msk [vmem:[#allocation3 + $0xb0] sm:$0xff] %vm1491_vm7, %v1440_v53  ;;  %1401 = vrot.lane.b32.xlu1 %v3338_v58, %s2454_s12 }
 0x1d2   : > { %1593 = vrot.lane.b32.xlu0 %v3340_v47, %s2455_s13 }
 0x1d3   : > { %v1410_v10 = vpop.permute.xlu1 %1409 }
 0x1d4   : > { %v1602_v17 = vpop.permute.xlu0 %1601  ;;  %1499 = vst.msk [vmem:[#allocation3 + $0x38] sm:$0xff] %vm1491_vm7, %v1410_v10 }
 0x1d5   : > { %1692 = vst.msk [vmem:[#allocation3 + $0x30] sm:$0xff] %vm1685_vm8, %v1602_v17  ;;  %1433 = vrot.lane.b32.xlu1 %v3350_v36, %s2454_s12  ;;  %v3614_v17 = vld [vmem:[%s3703_s3] sm:$0xf] }
 0x1d6   : > { %1625 = vrot.lane.b32.xlu0 %v1543_v11, %s2455_s13  ;;  %2414 = vmatprep.mubr.msk.bf16.mxu0 %vm2153_vm11, %v3614_v17 }
 0x1d7   : > { %v1442_v21 = vpop.permute.xlu1 %1441 }
 0x1d8   : > { %v1634_v34 = vpop.permute.xlu0 %1633  ;;  %1515 = vst.msk [vmem:[#allocation3 + $0xb8] sm:$0xff] %vm1491_vm7, %v1442_v21 }
 0x1d9   : > { %1708 = vst.msk [vmem:[#allocation3 + $0xb0] sm:$0xff] %vm1685_vm8, %v1634_v34  ;;  %1595 = vrot.lane.b32.xlu1 %v3358_v6, %s2455_s13 }
 0x1da   : > { %1786 = vrot.lane.b32.xlu0 %v3360_v13, %s2456_s14 }
 0x1db   : > { %v1604_v47 = vpop.permute.xlu1 %1603 }
 0x1dc   : > { %v1795_v43 = vpop.permute.xlu0 %1794  ;;  %1693 = vst.msk [vmem:[#allocation3 + $0x38] sm:$0xff] %vm1685_vm8, %v1604_v47 }
 0x1dd   : > { %1885 = vst.msk [vmem:[#allocation3 + $0x30] sm:$0xff] %vm1878_vm9, %v1795_v43  ;;  %1627 = vrot.lane.b32.xlu1 %v3138_v4, %s2455_s13  ;;  %v752_v4 = vld [vmem:[#allocation2 + $0x2] sm:$0xff] }
 0x1de   : > { %1818 = vrot.lane.b32.xlu0 %v3368_v26, %s2456_s14 }
 0x1df   : > { %v1636_v2 = vpop.permute.xlu1 %1635 }
 0x1e0   : > { %v1827_v23 = vpop.permute.xlu0 %1826  ;;  %1709 = vst.msk [vmem:[#allocation3 + $0xb8] sm:$0xff] %vm1685_vm8, %v1636_v2 }
 0x1e1   : > { %1901 = vst.msk [vmem:[#allocation3 + $0xb0] sm:$0xff] %vm1878_vm9, %v1827_v23  ;;  %1788 = vrot.lane.b32.xlu1 %v3376_v33, %s2456_s14 }
 0x1e2   : > { %1979 = vrot.lane.b32.xlu0 %v3222_v29, %s2457_s15  ;;  %v768_v29 = vld [vmem:[#allocation2 + $0xc2] sm:$0xff] }
 0x1e3   : > { %v1797_v6 = vpop.permute.xlu1 %1796 }
 0x1e4   : > { %v1988_v13 = vpop.permute.xlu0 %1987  ;;  %1886 = vst.msk [vmem:[#allocation3 + $0x38] sm:$0xff] %vm1878_vm9, %v1797_v6 }
 0x1e5   : > { %2078 = vst.msk [vmem:[#allocation3 + $0x30] sm:$0xff] %vm2071_vm10, %v1988_v13  ;;  %1820 = vrot.lane.b32.xlu1 %v3230_v35, %s2456_s14  ;;  %v753_v35 = vld [vmem:[#allocation2 + $0xa] sm:$0xff] }
 0x1e6   : > { %2011 = vrot.lane.b32.xlu0 %v3232_v42, %s2457_s15  ;;  %v945_v42 = vld [vmem:[#allocation2 + $0x18] sm:$0xff] }
 0x1e7   : > { %v1829_v26 = vpop.permute.xlu1 %1828 }
 0x1e8   : > { %v2020_v7 = vpop.permute.xlu0 %2019  ;;  %1902 = vst.msk [vmem:[#allocation3 + $0xb8] sm:$0xff] %vm1878_vm9, %v1829_v26 }
 0x1e9   : > { %2094 = vst.msk [vmem:[#allocation3 + $0xb0] sm:$0xff] %vm2071_vm10, %v2020_v7  ;;  %1981 = vrot.lane.b32.xlu1 %v3242_v18, %s2457_s15  ;;  %v769_v18 = vld [vmem:[#allocation2 + $0xca] sm:$0xff] }
 0x1ea   : > { %816 = vrot.lane.b32.xlu0 %v752_v4, %s2451_s9 }
 0x1eb   : > { %v1990_v33 = vpop.permute.xlu1 %1989 }
 0x1ec   : > { %v825_v55 = vpop.permute.xlu0 %824  ;;  %2079 = vst.msk [vmem:[#allocation3 + $0x38] sm:$0xff] %vm2071_vm10, %v1990_v33  ;;  %v2110_v1 = vld [vmem:[#allocation3 + $0x30] sm:$0xff] }
 0x1ed   : > { %917 = vst.msk [vmem:[#allocation3 + $0x20] sm:$0xff] %vm912_vm4, %v825_v55  ;;  %2013 = vrot.lane.b32.xlu1 %v3250_v27, %s2457_s15 }
 0x1ee   : > { %848 = vrot.lane.b32.xlu0 %v768_v29, %s2451_s9 }
 0x1ef   : > { %v2022_v0 = vpop.permute.xlu1 %2021 }
 0x1f0   : > { %v857_v44 = vpop.permute.xlu0 %856  ;;  %2095 = vst.msk [vmem:[#allocation3 + $0xb8] sm:$0xff] %vm2071_vm10, %v2022_v0  ;;  %v2126_v38 = vld [vmem:[#allocation3 + $0xb0] sm:$0xff] }
 0x1f1   : > { %933 = vst.msk [vmem:[#allocation3 + $0xa0] sm:$0xff] %vm912_vm4, %v857_v44  ;;  %818 = vrot.lane.b32.xlu1 %v753_v35, %s2451_s9 }
 0x1f2   : > { %1009 = vrot.lane.b32.xlu0 %v945_v42, %s2452_s10 }
 0x1f3   : > { %v827_v41 = vpop.permute.xlu1 %826  ;;  %v2111_v27 = vld [vmem:[#allocation3 + $0x38] sm:$0xff] }
 0x1f4   : > { %v1018_v19 = vpop.permute.xlu0 %1017  ;;  %918 = vst.msk [vmem:[#allocation3 + $0x28] sm:$0xff] %vm912_vm4, %v827_v41  ;;  %v2139_v14 = vpack.c.bf16 %v2111_v27, %v2110_v1 }
 0x1f5   : > { %1110 = vst.msk [vmem:[#allocation3 + $0x20] sm:$0xff] %vm1105_vm5, %v1018_v19  ;;  %850 = vrot.lane.b32.xlu1 %v769_v18, %s2451_s9 }
 0x1f6   : > { %1041 = vrot.lane.b32.xlu0 %v961_v46, %s2452_s10  ;;  %v2167_v51 = vsel %vm2153_vm11, %v2139_v14, 0 }
 0x1f7   : > { %v859_v12 = vpop.permute.xlu1 %858  ;;  %v2127_v25 = vld [vmem:[#allocation3 + $0xb8] sm:$0xff] }
 0x1f8   : > { %v1050_v49 = vpop.permute.xlu0 %1049  ;;  %934 = vst.msk [vmem:[#allocation3 + $0xa8] sm:$0xff] %vm912_vm4, %v859_v12  ;;  %v2147_v3 = vpack.c.bf16 %v2127_v25, %v2126_v38 }
 0x1f9   : > { %1126 = vst.msk [vmem:[#allocation3 + $0xa0] sm:$0xff] %vm1105_vm5, %v1050_v49  ;;  %1011 = vrot.lane.b32.xlu1 %v946_v22, %s2452_s10 }
 0x1fa   : > { %1202 = vrot.lane.b32.xlu0 %v1138_v57, %s2453_s11  ;;  %2420 = vmatprep.subr.msk.bf16.mxu0 %vm2153_vm11, %v2147_v3 }
 0x1fb   : > { %2407 = vmatpush3.bf16.xpose.msra.mxu0 %v2167_v51  ;;  %v1020_v32 = vpop.permute.xlu1 %1019 }
 0x1fc   : > { %v1211_v61 = vpop.permute.xlu0 %1210  ;;  %1111 = vst.msk [vmem:[#allocation3 + $0x28] sm:$0xff] %vm1105_vm5, %v1020_v32 }
 0x1fd   : > { %1303 = vst.msk [vmem:[#allocation3 + $0x20] sm:$0xff] %vm1298_vm6, %v1211_v61  ;;  %1043 = vrot.lane.b32.xlu1 %v962_v45, %s2452_s10 }
 0x1fe   : > { %1234 = vrot.lane.b32.xlu0 %v1154_v56, %s2453_s11 }
 0x1ff   : > { %v1052_v24 = vpop.permute.xlu1 %1051 }
 0x200   : > { %v1243_v30 = vpop.permute.xlu0 %1242  ;;  %1127 = vst.msk [vmem:[#allocation3 + $0xa8] sm:$0xff] %vm1105_vm5, %v1052_v24 }
 0x201   : > { %1319 = vst.msk [vmem:[#allocation3 + $0xa0] sm:$0xff] %vm1298_vm6, %v1243_v30  ;;  %1204 = vrot.lane.b32.xlu1 %v1139_v39, %s2453_s11 }
 0x202   : > { %1395 = vrot.lane.b32.xlu0 %v3424_v8, %s2454_s12 }
 0x203   : > { %v1213_v50 = vpop.permute.xlu1 %1212 }
 0x204   : > { %v1404_v52 = vpop.permute.xlu0 %1403  ;;  %1304 = vst.msk [vmem:[#allocation3 + $0x28] sm:$0xff] %vm1298_vm6, %v1213_v50 }
 0x205   : > { %1496 = vst.msk [vmem:[#allocation3 + $0x20] sm:$0xff] %vm1491_vm7, %v1404_v52  ;;  %1236 = vrot.lane.b32.xlu1 %v1155_v15, %s2453_s11 }
 0x206   : > { %1427 = vrot.lane.b32.xlu0 %v3432_v63, %s2454_s12 }
 0x207   : > { %v1245_v9 = vpop.permute.xlu1 %1244 }
 0x208   : > { %v1436_v53 = vpop.permute.xlu0 %1435  ;;  %1320 = vst.msk [vmem:[#allocation3 + $0xa8] sm:$0xff] %vm1298_vm6, %v1245_v9 }
 0x209   : > { %1512 = vst.msk [vmem:[#allocation3 + $0xa0] sm:$0xff] %vm1491_vm7, %v1436_v53  ;;  %1397 = vrot.lane.b32.xlu1 %v3440_v16, %s2454_s12 }
 0x20a   : > { %1589 = vrot.lane.b32.xlu0 %v3442_v54, %s2455_s13 }
 0x20b   : > { %v1406_v8 = vpop.permute.xlu1 %1405 }
 0x20c   : > { %v1598_v11 = vpop.permute.xlu0 %1597  ;;  %1497 = vst.msk [vmem:[#allocation3 + $0x28] sm:$0xff] %vm1491_vm7, %v1406_v8 }
 0x20d   : > { %1690 = vst.msk [vmem:[#allocation3 + $0x20] sm:$0xff] %vm1685_vm8, %v1598_v11  ;;  %1429 = vrot.lane.b32.xlu1 %v3450_v5, %s2454_s12 }
 0x20e   : > { %1621 = vrot.lane.b32.xlu0 %v3452_v28, %s2455_s13 }
 0x20f   : > { %v1438_v63 = vpop.permute.xlu1 %1437 }
 0x210   : > { %v1630_v10 = vpop.permute.xlu0 %1629  ;;  %1513 = vst.msk [vmem:[#allocation3 + $0xa8] sm:$0xff] %vm1491_vm7, %v1438_v63 }
 0x211   : > { %1706 = vst.msk [vmem:[#allocation3 + $0xa0] sm:$0xff] %vm1685_vm8, %v1630_v10  ;;  %1591 = vrot.lane.b32.xlu1 %v3462_v31, %s2455_s13 }
 0x212   : > { %1782 = vrot.lane.b32.xlu0 %v3464_v59, %s2456_s14 }
 0x213   : > { %v1600_v16 = vpop.permute.xlu1 %1599 }
 0x214   : > { %v1791_v54 = vpop.permute.xlu0 %1790  ;;  %1691 = vst.msk [vmem:[#allocation3 + $0x28] sm:$0xff] %vm1685_vm8, %v1600_v16 }
 0x215   : > { %1883 = vst.msk [vmem:[#allocation3 + $0x20] sm:$0xff] %vm1878_vm9, %v1791_v54  ;;  %1623 = vrot.lane.b32.xlu1 %v3472_v62, %s2455_s13 }
 0x216   : > { %1814 = vrot.lane.b32.xlu0 %v3474_v48, %s2456_s14 }
 0x217   : > { %v1632_v5 = vpop.permute.xlu1 %1631 }
 0x218   : > { %v1823_v28 = vpop.permute.xlu0 %1822  ;;  %1707 = vst.msk [vmem:[#allocation3 + $0xa8] sm:$0xff] %vm1685_vm8, %v1632_v5 }
 0x219   : > { %1899 = vst.msk [vmem:[#allocation3 + $0xa0] sm:$0xff] %vm1878_vm9, %v1823_v28  ;;  %1784 = vrot.lane.b32.xlu1 %v3482_v20, %s2456_s14 }
 0x21a   : > { %1975 = vrot.lane.b32.xlu0 %v3322_v40, %s2457_s15 }
 0x21b   : > { %v1793_v31 = vpop.permute.xlu1 %1792 }
 0x21c   : > { %v1984_v59 = vpop.permute.xlu0 %1983  ;;  %1884 = vst.msk [vmem:[#allocation3 + $0x28] sm:$0xff] %vm1878_vm9, %v1793_v31 }
 0x21d   : > { %2076 = vst.msk [vmem:[#allocation3 + $0x20] sm:$0xff] %vm2071_vm10, %v1984_v59  ;;  %1816 = vrot.lane.b32.xlu1 %v3490_v37, %s2456_s14 }
 0x21e   : > { %2007 = vrot.lane.b32.xlu0 %v3330_v60, %s2457_s15 }
 0x21f   : > { %v1825_v62 = vpop.permute.xlu1 %1824 }
 0x220   : > { %v2016_v48 = vpop.permute.xlu0 %2015  ;;  %1900 = vst.msk [vmem:[#allocation3 + $0xa8] sm:$0xff] %vm1878_vm9, %v1825_v62 }
 0x221   : > { %2092 = vst.msk [vmem:[#allocation3 + $0xa0] sm:$0xff] %vm2071_vm10, %v2016_v48  ;;  %1977 = vrot.lane.b32.xlu1 %v3338_v58, %s2457_s15 }
 0x223   : > { %v1986_v40 = vpop.permute.xlu1 %1985 }
 0x224   : > { %v821_v20 = vpop.permute.xlu0 %820  ;;  %2077 = vst.msk [vmem:[#allocation3 + $0x28] sm:$0xff] %vm2071_vm10, %v1986_v40  ;;  %v2108_v34 = vld [vmem:[#allocation3 + $0x20] sm:$0xff] }
 0x225   : > { %915 = vst.msk [vmem:[#allocation3 + $0x10] sm:$0xff] %vm912_vm4, %v821_v20  ;;  %2009 = vrot.lane.b32.xlu1 %v3350_v36, %s2457_s15 }
 0x227   : > { %v2018_v60 = vpop.permute.xlu1 %2017 }
 0x228   : > { %v853_v37 = vpop.permute.xlu0 %852  ;;  %2093 = vst.msk [vmem:[#allocation3 + $0xa8] sm:$0xff] %vm2071_vm10, %v2018_v60  ;;  %v2124_v43 = vld [vmem:[#allocation3 + $0xa0] sm:$0xff] }
 0x229   : > { %931 = vst.msk [vmem:[#allocation3 + $0x90] sm:$0xff] %vm912_vm4, %v853_v37 }
 0x22b   : > { %v823_v58 = vpop.permute.xlu1 %822  ;;  %v2109_v47 = vld [vmem:[#allocation3 + $0x28] sm:$0xff] }
 0x22c   : > { %v1014_v21 = vpop.permute.xlu0 %1013  ;;  %916 = vst.msk [vmem:[#allocation3 + $0x18] sm:$0xff] %vm912_vm4, %v823_v58  ;;  %v2138_v2 = vpack.c.bf16 %v2109_v47, %v2108_v34 }
 0x22d   : > { %1108 = vst.msk [vmem:[#allocation3 + $0x10] sm:$0xff] %vm1105_vm5, %v1014_v21 }
 0x22e   : > { %v2164_v4 = vsel %vm2153_vm11, %v2138_v2, 0 }
 0x22f   : > { %v855_v23 = vpop.permute.xlu1 %854  ;;  %v2125_v6 = vld [vmem:[#allocation3 + $0xa8] sm:$0xff] }
 0x230   : > { %v1046_v13 = vpop.permute.xlu0 %1045  ;;  %932 = vst.msk [vmem:[#allocation3 + $0x98] sm:$0xff] %vm912_vm4, %v855_v23  ;;  %v2146_v36 = vpack.c.bf16 %v2125_v6, %v2124_v43 }
 0x231   : > { %1124 = vst.msk [vmem:[#allocation3 + $0x90] sm:$0xff] %vm1105_vm5, %v1046_v13 }
 0x232   : > { %2421 = vmatprep.subr.msk.bf16.mxu0 %vm2153_vm11, %v2146_v36 }
 0x233   : > { %2409 = vmatpush3.bf16.xpose.msra.mxu0 %v2164_v4  ;;  %v1016_v26 = vpop.permute.xlu1 %1015 }
 0x234   : > { %v1207_v7 = vpop.permute.xlu0 %1206  ;;  %1109 = vst.msk [vmem:[#allocation3 + $0x18] sm:$0xff] %vm1105_vm5, %v1016_v26 }
 0x235   : > { %1301 = vst.msk [vmem:[#allocation3 + $0x10] sm:$0xff] %vm1298_vm6, %v1207_v7 }
 0x237   : > { %v1048_v29 = vpop.permute.xlu1 %1047 }
 0x238   : > { %v1239_v33 = vpop.permute.xlu0 %1238  ;;  %1125 = vst.msk [vmem:[#allocation3 + $0x98] sm:$0xff] %vm1105_vm5, %v1048_v29 }
 0x239   : > { %1317 = vst.msk [vmem:[#allocation3 + $0x90] sm:$0xff] %vm1298_vm6, %v1239_v33 }
 0x23b   : > { %v1209_v55 = vpop.permute.xlu1 %1208 }
 0x23c   : > { %v1400_v35 = vpop.permute.xlu0 %1399  ;;  %1302 = vst.msk [vmem:[#allocation3 + $0x18] sm:$0xff] %vm1298_vm6, %v1209_v55 }
 0x23d   : > { %1494 = vst.msk [vmem:[#allocation3 + $0x10] sm:$0xff] %vm1491_vm7, %v1400_v35 }
 0x23f   : > { %v1241_v42 = vpop.permute.xlu1 %1240 }
 0x240   : > { %v1432_v0 = vpop.permute.xlu0 %1431  ;;  %1318 = vst.msk [vmem:[#allocation3 + $0x98] sm:$0xff] %vm1298_vm6, %v1241_v42 }
 0x241   : > { %1510 = vst.msk [vmem:[#allocation3 + $0x90] sm:$0xff] %vm1491_vm7, %v1432_v0 }
 0x243   : > { %v1402_v44 = vpop.permute.xlu1 %1401 }
 0x244   : > { %v1594_v18 = vpop.permute.xlu0 %1593  ;;  %1495 = vst.msk [vmem:[#allocation3 + $0x18] sm:$0xff] %vm1491_vm7, %v1402_v44 }
 0x245   : > { %1688 = vst.msk [vmem:[#allocation3 + $0x10] sm:$0xff] %vm1685_vm8, %v1594_v18 }
 0x247   : > { %v1434_v46 = vpop.permute.xlu1 %1433 }
 0x248   : > { %v1626_v41 = vpop.permute.xlu0 %1625  ;;  %1511 = vst.msk [vmem:[#allocation3 + $0x98] sm:$0xff] %vm1491_vm7, %v1434_v46 }
 0x249   : > { %1704 = vst.msk [vmem:[#allocation3 + $0x90] sm:$0xff] %vm1685_vm8, %v1626_v41 }
 0x24b   : > { %v1596_v19 = vpop.permute.xlu1 %1595 }
 0x24c   : > { %v1787_v1 = vpop.permute.xlu0 %1786  ;;  %1689 = vst.msk [vmem:[#allocation3 + $0x18] sm:$0xff] %vm1685_vm8, %v1596_v19 }
 0x24d   : > { %1881 = vst.msk [vmem:[#allocation3 + $0x10] sm:$0xff] %vm1878_vm9, %v1787_v1 }
 0x24f   : > { %v1628_v27 = vpop.permute.xlu1 %1627 }
 0x250   : > { %v1819_v38 = vpop.permute.xlu0 %1818  ;;  %1705 = vst.msk [vmem:[#allocation3 + $0x98] sm:$0xff] %vm1685_vm8, %v1628_v27 }
 0x251   : > { %1897 = vst.msk [vmem:[#allocation3 + $0x90] sm:$0xff] %vm1878_vm9, %v1819_v38 }
 0x253   : > { %v1789_v22 = vpop.permute.xlu1 %1788 }
 0x254   : > { %v1980_v14 = vpop.permute.xlu0 %1979  ;;  %1882 = vst.msk [vmem:[#allocation3 + $0x18] sm:$0xff] %vm1878_vm9, %v1789_v22 }
 0x255   : > { %2074 = vst.msk [vmem:[#allocation3 + $0x10] sm:$0xff] %vm2071_vm10, %v1980_v14 }
 0x257   : > { %v1821_v57 = vpop.permute.xlu1 %1820 }
 0x258   : > { %v2012_v12 = vpop.permute.xlu0 %2011  ;;  %1898 = vst.msk [vmem:[#allocation3 + $0x98] sm:$0xff] %vm1878_vm9, %v1821_v57 }
 0x259   : > { %2090 = vst.msk [vmem:[#allocation3 + $0x90] sm:$0xff] %vm2071_vm10, %v2012_v12 }
 0x25b   : > { %v1982_v25 = vpop.permute.xlu1 %1981 }
 0x25c   : > { %v817_v49 = vpop.permute.xlu0 %816  ;;  %2075 = vst.msk [vmem:[#allocation3 + $0x18] sm:$0xff] %vm2071_vm10, %v1982_v25  ;;  %v2106_v32 = vld [vmem:[#allocation3 + $0x10] sm:$0xff] }
 0x25d   : > { %913 = vst.msk [vmem:[#allocation3] sm:$0xff] %vm912_vm4, %v817_v49 }
 0x25f   : > { %v2014_v3 = vpop.permute.xlu1 %2013 }
 0x260   : > { %v849_v51 = vpop.permute.xlu0 %848  ;;  %2091 = vst.msk [vmem:[#allocation3 + $0x98] sm:$0xff] %vm2071_vm10, %v2014_v3  ;;  %v2122_v39 = vld [vmem:[#allocation3 + $0x90] sm:$0xff] }
 0x261   : > { %929 = vst.msk [vmem:[#allocation3 + $0x80] sm:$0xff] %vm912_vm4, %v849_v51 }
 0x263   : > { %v819_v45 = vpop.permute.xlu1 %818  ;;  %v2107_v61 = vld [vmem:[#allocation3 + $0x18] sm:$0xff] }
 0x264   : > { %v1010_v56 = vpop.permute.xlu0 %1009  ;;  %914 = vst.msk [vmem:[#allocation3 + $0x8] sm:$0xff] %vm912_vm4, %v819_v45  ;;  %v2137_v24 = vpack.c.bf16 %v2107_v61, %v2106_v32 }
 0x265   : > { %1106 = vst.msk [vmem:[#allocation3] sm:$0xff] %vm1105_vm5, %v1010_v56 }
 0x266   : > { %v2161_v9 = vsel %vm2153_vm11, %v2137_v24, 0 }
 0x267   : > { %v851_v30 = vpop.permute.xlu1 %850  ;;  %v2123_v15 = vld [vmem:[#allocation3 + $0x98] sm:$0xff] }
 0x268   : > { %v1042_v50 = vpop.permute.xlu0 %1041  ;;  %930 = vst.msk [vmem:[#allocation3 + $0x88] sm:$0xff] %vm912_vm4, %v851_v30  ;;  %v2145_v52 = vpack.c.bf16 %v2123_v15, %v2122_v39 }
 0x269   : > { %1122 = vst.msk [vmem:[#allocation3 + $0x80] sm:$0xff] %vm1105_vm5, %v1042_v50 }
 0x26a   : > { %2422 = vmatprep.subr.msk.bf16.mxu0 %vm2153_vm11, %v2145_v52 }
 0x26b   : > { %v1012_v53 = vpop.permute.xlu1 %1011  ;;  %2411 = vmatpush3.bf16.xpose.msra.mxu0 %v2161_v9 }
 0x26c   : > { %v1203_v8 = vpop.permute.xlu0 %1202  ;;  %1107 = vst.msk [vmem:[#allocation3 + $0x8] sm:$0xff] %vm1105_vm5, %v1012_v53 }
 0x26d   : > { %1299 = vst.msk [vmem:[#allocation3] sm:$0xff] %vm1298_vm6, %v1203_v8 }
 0x26f   : > { %v1044_v11 = vpop.permute.xlu1 %1043 }
 0x270   : > { %v1235_v63 = vpop.permute.xlu0 %1234  ;;  %1123 = vst.msk [vmem:[#allocation3 + $0x88] sm:$0xff] %vm1105_vm5, %v1044_v11 }
 0x271   : > { %1315 = vst.msk [vmem:[#allocation3 + $0x80] sm:$0xff] %vm1298_vm6, %v1235_v63 }
 0x273   : > { %v1205_v10 = vpop.permute.xlu1 %1204 }
 0x274   : > { %v1396_v16 = vpop.permute.xlu0 %1395  ;;  %1300 = vst.msk [vmem:[#allocation3 + $0x8] sm:$0xff] %vm1298_vm6, %v1205_v10 }
 0x275   : > { %1492 = vst.msk [vmem:[#allocation3] sm:$0xff] %vm1491_vm7, %v1396_v16 }
 0x277   : > { %v1237_v54 = vpop.permute.xlu1 %1236 }
 0x278   : > { %v1428_v5 = vpop.permute.xlu0 %1427  ;;  %1316 = vst.msk [vmem:[#allocation3 + $0x88] sm:$0xff] %vm1298_vm6, %v1237_v54 }
 0x279   : > { %1508 = vst.msk [vmem:[#allocation3 + $0x80] sm:$0xff] %vm1491_vm7, %v1428_v5 }
 0x27b   : > { %v1398_v28 = vpop.permute.xlu1 %1397 }
 0x27c   : > { %v1590_v31 = vpop.permute.xlu0 %1589  ;;  %1493 = vst.msk [vmem:[#allocation3 + $0x8] sm:$0xff] %vm1491_vm7, %v1398_v28 }
 0x27d   : > { %1686 = vst.msk [vmem:[#allocation3] sm:$0xff] %vm1685_vm8, %v1590_v31 }
 0x27f   : > { %v1430_v59 = vpop.permute.xlu1 %1429 }
 0x280   : > { %v1622_v62 = vpop.permute.xlu0 %1621  ;;  %1509 = vst.msk [vmem:[#allocation3 + $0x88] sm:$0xff] %vm1491_vm7, %v1430_v59 }
 0x281   : > { %1702 = vst.msk [vmem:[#allocation3 + $0x80] sm:$0xff] %vm1685_vm8, %v1622_v62 }
 0x283   : > { %v1592_v48 = vpop.permute.xlu1 %1591 }
 0x284   : > { %v1783_v40 = vpop.permute.xlu0 %1782  ;;  %1687 = vst.msk [vmem:[#allocation3 + $0x8] sm:$0xff] %vm1685_vm8, %v1592_v48 }
 0x285   : > { %1879 = vst.msk [vmem:[#allocation3] sm:$0xff] %vm1878_vm9, %v1783_v40 }
 0x287   : > { %v1624_v20 = vpop.permute.xlu1 %1623 }
 0x288   : > { %v1815_v60 = vpop.permute.xlu0 %1814  ;;  %1703 = vst.msk [vmem:[#allocation3 + $0x88] sm:$0xff] %vm1685_vm8, %v1624_v20 }
 0x289   : > { %1895 = vst.msk [vmem:[#allocation3 + $0x80] sm:$0xff] %vm1878_vm9, %v1815_v60 }
 0x28b   : > { %v1785_v37 = vpop.permute.xlu1 %1784 }
 0x28c   : > { %v1976_v58 = vpop.permute.xlu0 %1975  ;;  %1880 = vst.msk [vmem:[#allocation3 + $0x8] sm:$0xff] %vm1878_vm9, %v1785_v37 }
 0x28d   : > { %2072 = vst.msk [vmem:[#allocation3] sm:$0xff] %vm2071_vm10, %v1976_v58 }
 0x28f   : > { %v1817_v21 = vpop.permute.xlu1 %1816 }
 0x290   : > { %v2008_v34 = vpop.permute.xlu0 %2007  ;;  %1896 = vst.msk [vmem:[#allocation3 + $0x88] sm:$0xff] %vm1878_vm9, %v1817_v21 }
 0x291   : > { %2088 = vst.msk [vmem:[#allocation3 + $0x80] sm:$0xff] %vm2071_vm10, %v2008_v34 }
 0x293   : > { %v1978_v47 = vpop.permute.xlu1 %1977 }
 0x294   : > { %2073 = vst.msk [vmem:[#allocation3 + $0x8] sm:$0xff] %vm2071_vm10, %v1978_v47  ;;  %v2104_v2 = vld [vmem:[#allocation3] sm:$0xff] }
 0x297   : > { %v2010_v43 = vpop.permute.xlu1 %2009 }
 0x298   : > { %2089 = vst.msk [vmem:[#allocation3 + $0x88] sm:$0xff] %vm2071_vm10, %v2010_v43  ;;  %v2120_v6 = vld [vmem:[#allocation3 + $0x80] sm:$0xff] }
 0x29b   : > { %v2105_v23 = vld [vmem:[#allocation3 + $0x8] sm:$0xff] }
 0x29c   : > { %v2136_v13 = vpack.c.bf16 %v2105_v23, %v2104_v2 }
 0x29e   : > { %v2158_v26 = vsel %vm2153_vm11, %v2136_v13, 0 }
 0x29f   : > { %v2121_v36 = vld [vmem:[#allocation3 + $0x88] sm:$0xff] }
 0x2a0   : > { %v2144_v4 = vpack.c.bf16 %v2121_v36, %v2120_v6 }
 0x2a2   : > { %2423 = vmatprep.subr.msk.bf16.mxu0 %vm2153_vm11, %v2144_v4 }
 0x2a3   : > { %2413 = vmatpush3.bf16.xpose.msra.mxu0 %v2158_v26 }
 0x2aa   : > { %2415 = vmatmul.mubr.msk.bf16.vlgmr.msra.gmra.mxu0 %vm2153_vm11, %v3614_v17 }
 0x36a   : > { %v2239_v7 = vpop.f32.mrf.mxu0 }
 0x36b   : > { %2246 = vst [vmem:[%s264_s23] sm:$0xff] %v2239_v7 }
 0x36c   : > { %v2241_v29 = vpop.f32.mrf.mxu0 }
 0x36d   : > { %2247 = vst [vmem:[%s264_s23 + $0x8] sm:$0xff] %v2241_v29  ;;  %v2248_v33 = vadd.f32 %v2241_v29, %v2239_v7 }
 0x36e   : > { %v2243_v55 = vpop.f32.mrf.mxu0 }
 0x36f   : > { %2249 = vadd.xlane.f32.xlu0 %v2248_v33 }
 0x370   : > { %v2244_v35 = vpop.f32.mrf.mxu0 }
 0x3f8   : > { %v2250_v42 = vpop.xlane.xlu0 %2249 }
 0x3f9   : > { %v2252_v17 = vmul.f32 0.00390625, %v2250_v42 }
 0x3fb   : > { %v2253_v0 = vsub.f32 %v2239_v7, %v2252_v17  ;;  %v2254_v44 = vsub.f32 %v2241_v29, %v2252_v17  ;;  %2256 = vst.msk [vmem:[%s268_s27] sm:$0xff] %vm2255_vm12, %v2252_v17 }
 0x3fd   : > { %v2257_v18 = vmul.f32 %v2253_v0, %v2253_v0  ;;  %v2258_v46 = vmul.f32 %v2254_v44, %v2254_v44 }
 0x3ff   : > { %v2259_v41 = vadd.f32 %v2258_v46, %v2257_v18 }
 0x401   : > { %2260 = vadd.xlane.f32.xlu1 %v2259_v41 }
 0x48a   : > { %v2261_v19 = vpop.xlane.xlu1 %2260 }
 0x48b   : > { %2262 = vst.msk [vmem:[%s272_s30] sm:$0xff] %vm2255_vm12, %v2261_v19 }
 0x48c PF: > { %s17_s21 = sadd.s32 1, %s2447_s21  }
 0x48d   : > { %p14_p4 = scmp.ge.s32.totalorder %s17_s21, 4  }
 0x48f   :  { %16 = sbr.rel (!%p14_p4) target bundleno = 1 (0x1), region = 93 }

// kernel: double_conv.3
= control target key start
LH: loop header
LB: loop body
LE: loop exit
PB: predicated region body
PF: predicated region fallthrough
CT: control target
= control target key end

     0   :  { %s2868_s21 = smov 0   ;;  %s4243_s0 = inlined_call_operand.vmem [shape: f32[2,256,4], index: 0, kind: input, shape index: {}]   ;;  %s4244_s1 = inlined_call_operand.vmem [shape: f32[1,4], index: 1, kind: input, shape index: {}]   ;;  %s4245_s2 = inlined_call_operand.vmem [shape: f32[1,4], index: 2, kind: input, shape index: {}]   ;;  %s4246_s3 = inlined_call_operand.vmem [shape: bf16[36,8], index: 3, kind: input, shape index: {}]   ;;  %s4247_s4 = inlined_call_operand.vmem [shape: f32[2,256,8], index: 4, kind: output, shape index: {0}]   ;;  %s4248_s5 = inlined_call_operand.vmem [shape: f32[2,1,8], index: 5, kind: output, shape index: {1}]   ;;  %s4249_s6 = inlined_call_operand.vmem [shape: f32[2,1,8], index: 6, kind: output, shape index: {2}]  }
   0x1 LB: > { %s2695_s22 = sadd.s32 4294967295, %s2822_s21   ;;  %p2699_p0 = scmp.ge.s32.totalorder %s2822_s21, 1  ;;  %s2822_s21 = sphi %s2868_s21, %s17_s21  }
   0x2   : > { %p217_p1 = scmp.lt.s32.totalorder %s2822_s21, 3 }
   0x4   : > { %p218_p2 = pnand %p2699_p0, %p217_p1 }
   0x5   : > { %p2878_p3 = scmp.lt.s32.totalorder (!%p218_p2), %s2695_s22, 1  ;;  %s2825_s8 = smov (!%p218_p2), 4  }
   0x6   : > { %221 = sbr.rel (%p218_p2) target bundleno = 975 (0x3cf), region = 36  ;;  %s2826_s9 = smov (!%p218_p2), 8  }
   0x7   : > { %s2827_s10 = smov (!%p218_p2), 12   ;;  %s2828_s11 = smov (!%p218_p2), 16  }
   0x8   : > { %s2829_s12 = smov (!%p218_p2), 20   ;;  %s2830_s13 = smov (!%p218_p2), 24  }
   0x9   : > { %s2831_s14 = smov (!%p218_p2), 28   ;;  %s2832_s19 = smov (!%p218_p2), 32  }
   0xb   : > { %vm380_vm0 = vcmask 31744   ;;  %vm389_vm1 = vcmask 24576   ;;  %vm383_vm2 = vcmask 25600   ;;  %v2824_v0 = vmov 0.0   ;;  %s4252_s22 = smov (!%p2878_p3, %s2695_s22), 1 }
   0xc   : > { %381 = vst.msk [vmem:[#allocation2] sm:$0xff] %vm380_vm0, %v2824_v0  ;;  %382 = vst.msk [vmem:[#allocation2 + $0x8] sm:$0xff] %vm380_vm0, %v2824_v0  ;;  %v2933_v1 = vld [vmem:[%s4244_s1] ss:$0 sm:$0xff]  ;;  %s2727_s26 = sshll.u32 %s4252_s22, 8  ;;  %vm683_vm3 = vcmask 64544  }
   0xd   : > { %386 = vst.msk [vmem:[#allocation2 + $0x198] sm:$0xff] %vm380_vm0, %v2824_v0  ;;  %387 = vst.msk [vmem:[#allocation2 + $0x1a0] sm:$0xff] %vm380_vm0, %v2824_v0  ;;  %s2941_s29 = scalar_lea.vmem %s4243_s0, %s2727_s26  ;;  %v2946_v2 = vld [vmem:[%s4245_s2] ss:$0 sm:$0xff]  ;;  %vm2185_vm4 = vcmask 1041408   ;;  %vm876_vm5 = vcmask 97344   ;;  %s3765_s7 = scalar_lea.vmem %s4247_s4, %s2727_s26 }
   0xe   : > { %391 = vst.msk [vmem:[#allocation2 + $0x18] sm:$0x1] %vm389_vm1, %v2824_v0  ;;  %392 = vst.msk [vmem:[#allocation2 + $0x30] sm:$0x1] %vm389_vm1, %v2824_v0  ;;  %v270_v3 = vld [vmem:[%s2941_s29] sm:$0xff]  ;;  %v271_v4 = vld [vmem:[%s2941_s29 + $0x8] sm:$0xff] }
   0xf   : > { %393 = vst.msk [vmem:[#allocation2 + $0x48] sm:$0x1] %vm389_vm1, %v2824_v0  ;;  %394 = vst.msk [vmem:[#allocation2 + $0x60] sm:$0x1] %vm389_vm1, %v2824_v0  ;;  %v272_v5 = vld [vmem:[%s2941_s29 + $0x10] sm:$0xff]  ;;  %v309_v6 = vmul.f32 %v2933_v1, %v270_v3  ;;  %v310_v7 = vmul.f32 %v2933_v1, %v271_v4  ;;  %v273_v9 = vld [vmem:[%s2941_s29 + $0x18] sm:$0xff] }
  0x10   : > { %395 = vst.msk [vmem:[#allocation2 + $0x78] sm:$0x1] %vm389_vm1, %v2824_v0  ;;  %396 = vst.msk [vmem:[#allocation2 + $0x90] sm:$0x1] %vm389_vm1, %v2824_v0  ;;  %v311_v8 = vmul.f32 %v2933_v1, %v272_v5  ;;  %v274_v10 = vld [vmem:[%s2941_s29 + $0x20] sm:$0xff]  ;;  %v275_v11 = vld [vmem:[%s2941_s29 + $0x28] sm:$0xff]  ;;  %v312_v14 = vmul.f32 %v2933_v1, %v273_v9 }
  0x11   : > { %397 = vst.msk [vmem:[#allocation2 + $0xa8] sm:$0x1] %vm389_vm1, %v2824_v0  ;;  %398 = vst.msk [vmem:[#allocation2 + $0xc0] sm:$0x1] %vm389_vm1, %v2824_v0  ;;  %v313_v15 = vmul.f32 %v2933_v1, %v274_v10  ;;  %v314_v16 = vmul.f32 %v2933_v1, %v275_v11  ;;  %v276_v17 = vld [vmem:[%s2941_s29 + $0x30] sm:$0xff]  ;;  %v348_v18 = vadd.f32 %v2946_v2, %v309_v6  ;;  %v277_v22 = vld [vmem:[%s2941_s29 + $0x38] sm:$0xff] }
  0x12   : > { %399 = vst.msk [vmem:[#allocation2 + $0xd8] sm:$0x1] %vm389_vm1, %v2824_v0  ;;  %400 = vst.msk [vmem:[#allocation2 + $0xf0] sm:$0x1] %vm389_vm1, %v2824_v0  ;;  %v349_v19 = vadd.f32 %v2946_v2, %v310_v7  ;;  %v350_v20 = vadd.f32 %v2946_v2, %v311_v8  ;;  %v315_v21 = vmul.f32 %v2933_v1, %v276_v17  ;;  %v278_v23 = vld [vmem:[%s2941_s29 + $0x40] sm:$0xff]  ;;  %v279_v24 = vld [vmem:[%s2941_s29 + $0x48] sm:$0xff] }
  0x13   : > { %401 = vst.msk [vmem:[#allocation2 + $0x108] sm:$0x1] %vm389_vm1, %v2824_v0  ;;  %402 = vst.msk [vmem:[#allocation2 + $0x120] sm:$0x1] %vm389_vm1, %v2824_v0  ;;  %v523_v12 = vld [vmem:[#allocation2 + $0x1] sm:$0xff]  ;;  %v351_v25 = vadd.f32 %v2946_v2, %v312_v14  ;;  %v352_v26 = vadd.f32 %v2946_v2, %v313_v15  ;;  %v353_v27 = vadd.f32 %v2946_v2, %v314_v16  ;;  %v280_v29 = vld [vmem:[%s2941_s29 + $0x50] sm:$0xff] }
  0x14   : > { %403 = vst.msk [vmem:[#allocation2 + $0x138] sm:$0x1] %vm389_vm1, %v2824_v0  ;;  %404 = vst.msk [vmem:[#allocation2 + $0x150] sm:$0x1] %vm389_vm1, %v2824_v0  ;;  %587 = vrot.lane.b32.xlu0 %v523_v12, %s2825_s8  ;;  %v316_v28 = vmul.f32 %v2933_v1, %v277_v22  ;;  %v281_v30 = vld [vmem:[%s2941_s29 + $0x58] sm:$0xff]  ;;  %v282_v31 = vld [vmem:[%s2941_s29 + $0x60] sm:$0xff]  ;;  %v354_v32 = vadd.f32 %v2946_v2, %v315_v21  ;;  %v317_v33 = vmul.f32 %v2933_v1, %v278_v23 }
  0x15   : > { %405 = vst.msk [vmem:[#allocation2 + $0x168] sm:$0x1] %vm389_vm1, %v2824_v0  ;;  %406 = vst.msk [vmem:[#allocation2 + $0x180] sm:$0x1] %vm389_vm1, %v2824_v0  ;;  %v318_v34 = vmul.f32 %v2933_v1, %v279_v24  ;;  %v319_v35 = vmul.f32 %v2933_v1, %v280_v29  ;;  %v283_v36 = vld [vmem:[%s2941_s29 + $0x68] sm:$0xff]  ;;  %v284_v37 = vld [vmem:[%s2941_s29 + $0x70] sm:$0xff]  ;;  %v320_v40 = vmul.f32 %v2933_v1, %v281_v30 }
  0x16   : > { %409 = vst.msk [vmem:[#allocation2 + $0x29] sm:$0x1] %vm389_vm1, %v2824_v0  ;;  %410 = vst.msk [vmem:[#allocation2 + $0x41] sm:$0x1] %vm389_vm1, %v2824_v0  ;;  %v285_v38 = vld [vmem:[%s2941_s29 + $0x78] sm:$0xff]  ;;  %v355_v39 = vadd.f32 %v2946_v2, %v316_v28  ;;  %v321_v41 = vmul.f32 %v2933_v1, %v282_v31  ;;  %v322_v42 = vmul.f32 %v2933_v1, %v283_v36  ;;  %v286_v43 = vld [vmem:[%s2941_s29 + $0x80] sm:$0xff] }
  0x17   : > { %411 = vst.msk [vmem:[#allocation2 + $0x59] sm:$0x1] %vm389_vm1, %v2824_v0  ;;  %412 = vst.msk [vmem:[#allocation2 + $0x71] sm:$0x1] %vm389_vm1, %v2824_v0  ;;  %v287_v44 = vld [vmem:[%s2941_s29 + $0x88] sm:$0xff]  ;;  %v288_v45 = vld [vmem:[%s2941_s29 + $0x90] sm:$0xff]  ;;  %v356_v46 = vadd.f32 %v2946_v2, %v317_v33  ;;  %v357_v47 = vadd.f32 %v2946_v2, %v318_v34  ;;  %v358_v48 = vadd.f32 %v2946_v2, %v319_v35 }
  0x18   : > { %413 = vst.msk [vmem:[#allocation2 + $0x89] sm:$0x1] %vm389_vm1, %v2824_v0  ;;  %414 = vst.msk [vmem:[#allocation2 + $0xa1] sm:$0x1] %vm389_vm1, %v2824_v0  ;;  %v323_v49 = vmul.f32 %v2933_v1, %v284_v37  ;;  %v289_v50 = vld [vmem:[%s2941_s29 + $0x98] sm:$0xff]  ;;  %v290_v51 = vld [vmem:[%s2941_s29 + $0xa0] sm:$0xff]  ;;  %v359_v53 = vadd.f32 %v2946_v2, %v320_v40  ;;  %v360_v54 = vadd.f32 %v2946_v2, %v321_v41 }
  0x19   : > { %415 = vst.msk [vmem:[#allocation2 + $0xb9] sm:$0x1] %vm389_vm1, %v2824_v0  ;;  %416 = vst.msk [vmem:[#allocation2 + $0xd1] sm:$0x1] %vm389_vm1, %v2824_v0  ;;  %v291_v52 = vld [vmem:[%s2941_s29 + $0xa8] sm:$0xff]  ;;  %v361_v55 = vadd.f32 %v2946_v2, %v322_v42  ;;  %v324_v56 = vmul.f32 %v2933_v1, %v285_v38  ;;  %v292_v57 = vld [vmem:[%s2941_s29 + $0xb0] sm:$0xff]  ;;  %v325_v59 = vmul.f32 %v2933_v1, %v286_v43 }
  0x1a   : > { %417 = vst.msk [vmem:[#allocation2 + $0xe9] sm:$0x1] %vm389_vm1, %v2824_v0  ;;  %418 = vst.msk [vmem:[#allocation2 + $0x101] sm:$0x1] %vm389_vm1, %v2824_v0  ;;  %v362_v58 = vadd.f32 %v2946_v2, %v323_v49  ;;  %v326_v60 = vmul.f32 %v2933_v1, %v287_v44  ;;  %v327_v61 = vmul.f32 %v2933_v1, %v288_v45  ;;  %v293_v62 = vld [vmem:[%s2941_s29 + $0xb8] sm:$0xff]  ;;  %v294_v63 = vld [vmem:[%s2941_s29 + $0xc0] sm:$0xff] }
  0x1b   : > { %419 = vst.msk [vmem:[#allocation2 + $0x119] sm:$0x1] %vm389_vm1, %v2824_v0  ;;  %420 = vst.msk [vmem:[#allocation2 + $0x131] sm:$0x1] %vm389_vm1, %v2824_v0  ;;  %v328_v3 = vmul.f32 %v2933_v1, %v289_v50  ;;  %v329_v4 = vmul.f32 %v2933_v1, %v290_v51  ;;  %v330_v5 = vmul.f32 %v2933_v1, %v291_v52  ;;  %v295_v6 = vld [vmem:[%s2941_s29 + $0xc8] sm:$0xff]  ;;  %v296_v7 = vld [vmem:[%s2941_s29 + $0xd0] sm:$0xff] }
  0x1c   : > { %421 = vst.msk [vmem:[#allocation2 + $0x149] sm:$0x1] %vm389_vm1, %v2824_v0  ;;  %422 = vst.msk [vmem:[#allocation2 + $0x161] sm:$0x1] %vm389_vm1, %v2824_v0  ;;  %v297_v8 = vld [vmem:[%s2941_s29 + $0xd8] sm:$0xff]  ;;  %v364_v9 = vadd.f32 %v2946_v2, %v325_v59  ;;  %v365_v10 = vadd.f32 %v2946_v2, %v326_v60  ;;  %v366_v11 = vadd.f32 %v2946_v2, %v327_v61  ;;  %v460_v15 = vld [vmem:[#allocation2 + $0x8] sm:$0xff] }
  0x1d   : > { %423 = vst.msk [vmem:[#allocation2 + $0x179] sm:$0x1] %vm389_vm1, %v2824_v0  ;;  %424 = vst.msk [vmem:[#allocation2 + $0x191] sm:$0x1] %vm389_vm1, %v2824_v0  ;;  %v331_v12 = vmul.f32 %v2933_v1, %v292_v57  ;;  %v332_v21 = vmul.f32 %v2933_v1, %v293_v62  ;;  %v299_v22 = vld [vmem:[%s2941_s29 + $0xe8] sm:$0xff]  ;;  %v333_v24 = vmul.f32 %v2933_v1, %v294_v63  ;;  %vm1069_vm6 = vcmask 130144  }
  0x1e   : > { %384 = vst.msk [vmem:[#allocation2 + $0x10] sm:$0x3] %vm383_vm2, %v2824_v0  ;;  %388 = vst.msk [vmem:[#allocation2 + $0x1a8] sm:$0x3] %vm383_vm2, %v2824_v0  ;;  %v335_v29 = vmul.f32 %v2933_v1, %v296_v7  ;;  %v336_v30 = vmul.f32 %v2933_v1, %v297_v8  ;;  %v338_v34 = vmul.f32 %v2933_v1, %v299_v22  ;;  %vm1262_vm7 = vcmask 162944  }
  0x1f   : > { %390 = vst.msk [vmem:[#allocation2] sm:$0x1] %vm389_vm1, %v2824_v0  ;;  %407 = vst.msk [vmem:[#allocation2 + $0x198] sm:$0x1] %vm389_vm1, %v2824_v0  ;;  %v370_v23 = vadd.f32 %v2946_v2, %v331_v12  ;;  %v371_v28 = vadd.f32 %v2946_v2, %v332_v21  ;;  %vm1455_vm8 = vcmask 195744   ;;  %vm1649_vm9 = vcmask 228544  }
  0x20   : > { %408 = vst.msk [vmem:[#allocation2 + $0x11] sm:$0x1] %vm389_vm1, %v2824_v0  ;;  %425 = vst.msk [vmem:[#allocation2 + $0x1a9] sm:$0x1] %vm389_vm1, %v2824_v0  ;;  %v363_v0 = vadd.f32 %v2946_v2, %v324_v56  ;;  %v374_v35 = vadd.f32 %v2946_v2, %v335_v29  ;;  %v375_v36 = vadd.f32 %v2946_v2, %v336_v30  ;;  %vm1842_vm10 = vcmask 261344  }
  0x21   : > { %427 = vst.msk [vmem:[#allocation2 + $0x19] sm:$0xff] %vm380_vm0, %v348_v18  ;;  %428 = vst.msk [vmem:[#allocation2 + $0x21] sm:$0xff] %vm380_vm0, %v349_v19  ;;  %v367_v18 = vadd.f32 %v2946_v2, %v328_v3  ;;  %v368_v19 = vadd.f32 %v2946_v2, %v329_v4  ;;  %vm2035_vm11 = vcmask 294144   ;;  %vm2136_vm12 = vcmask 293888  }
  0x22   : > { %429 = vst.msk [vmem:[#allocation2 + $0x31] sm:$0xff] %vm380_vm0, %v350_v20  ;;  %430 = vst.msk [vmem:[#allocation2 + $0x39] sm:$0xff] %vm380_vm0, %v351_v25  ;;  %v369_v20 = vadd.f32 %v2946_v2, %v330_v5  ;;  %v334_v25 = vmul.f32 %v2933_v1, %v295_v6  ;;  %vm2350_vm13 = vcmask 64512   ;;  %vm2486_vm14 = vcmask 57344  }
  0x23   : > { %431 = vst.msk [vmem:[#allocation2 + $0x49] sm:$0xff] %vm380_vm0, %v352_v26  ;;  %432 = vst.msk [vmem:[#allocation2 + $0x51] sm:$0xff] %vm380_vm0, %v353_v27 }
  0x24   : > { %433 = vst.msk [vmem:[#allocation2 + $0x61] sm:$0xff] %vm380_vm0, %v354_v32  ;;  %434 = vst.msk [vmem:[#allocation2 + $0x69] sm:$0xff] %vm380_vm0, %v355_v39  ;;  %v372_v32 = vadd.f32 %v2946_v2, %v333_v24  ;;  %v373_v33 = vadd.f32 %v2946_v2, %v334_v25 }
  0x25   : > { %v524_v13 = vld [vmem:[#allocation2 + $0x9] sm:$0xff]  ;;  %435 = vst.msk [vmem:[#allocation2 + $0x79] sm:$0xff] %vm380_vm0, %v356_v46  ;;  %436 = vst.msk [vmem:[#allocation2 + $0x81] sm:$0xff] %vm380_vm0, %v357_v47 }
  0x26   : > { %589 = vrot.lane.b32.xlu0 %v524_v13, %s2825_s8  ;;  %437 = vst.msk [vmem:[#allocation2 + $0x91] sm:$0xff] %vm380_vm0, %v358_v48  ;;  %438 = vst.msk [vmem:[#allocation2 + $0x99] sm:$0xff] %vm380_vm0, %v359_v53  ;;  %v298_v13 = vld [vmem:[%s2941_s29 + $0xe0] sm:$0xff] }
  0x27   : > { %439 = vst.msk [vmem:[#allocation2 + $0xa9] sm:$0xff] %vm380_vm0, %v360_v54  ;;  %440 = vst.msk [vmem:[#allocation2 + $0xb1] sm:$0xff] %vm380_vm0, %v361_v55  ;;  %v459_v14 = vld [vmem:[#allocation2] sm:$0xff]  ;;  %v337_v31 = vmul.f32 %v2933_v1, %v298_v13  ;;  %v377_v1 = vadd.f32 %v2946_v2, %v338_v34 }
  0x28   : > { %441 = vst.msk [vmem:[#allocation2 + $0xc1] sm:$0xff] %vm380_vm0, %v362_v58  ;;  %v3036_v16 = vld [vmem:[#allocation2 + $0x19] sm:$0xff]  ;;  %442 = vst.msk [vmem:[#allocation2 + $0xc9] sm:$0xff] %vm380_vm0, %v363_v0  ;;  %v3058_v26 = vld [vmem:[#allocation2 + $0x21] sm:$0xff] }
  0x29   : > { %v3038_v17 = vld [vmem:[#allocation2 + $0x31] sm:$0xff]  ;;  %491 = vst.msk [vmem:[#allocation3] sm:$0xff] %vm380_vm0, %v459_v14  ;;  %492 = vst.msk [vmem:[#allocation3 + $0x8] sm:$0xff] %vm380_vm0, %v460_v15  ;;  %591 = vrot.lane.b32.xlu1 %v3036_v16, %s2825_s8  ;;  %v376_v37 = vadd.f32 %v2946_v2, %v337_v31  ;;  %v3084_v38 = vld [vmem:[#allocation2 + $0x39] sm:$0xff] }
  0x2a   : > { %595 = vrot.lane.b32.xlu0 %v3038_v17, %s2825_s8  ;;  %443 = vst.msk [vmem:[#allocation2 + $0xd9] sm:$0xff] %vm380_vm0, %v364_v9  ;;  %444 = vst.msk [vmem:[#allocation2 + $0xe1] sm:$0xff] %vm380_vm0, %v365_v10  ;;  %v3060_v27 = vld [vmem:[#allocation2 + $0x49] sm:$0xff]  ;;  %v3094_v40 = vld [vmem:[#allocation2 + $0x51] sm:$0xff] }
  0x2b   : > { %445 = vst.msk [vmem:[#allocation2 + $0xf1] sm:$0xff] %vm380_vm0, %v366_v11  ;;  %446 = vst.msk [vmem:[#allocation2 + $0xf9] sm:$0xff] %vm380_vm0, %v367_v18  ;;  %v3086_v39 = vld [vmem:[#allocation2 + $0x61] sm:$0xff]  ;;  %v3100_v41 = vld [vmem:[#allocation2 + $0x18] sm:$0xff] }
  0x2c   : > { %447 = vst.msk [vmem:[#allocation2 + $0x109] sm:$0xff] %vm380_vm0, %v368_v19  ;;  %448 = vst.msk [vmem:[#allocation2 + $0x111] sm:$0xff] %vm380_vm0, %v369_v20  ;;  %v3098_v2 = vld [vmem:[#allocation2 + $0x79] sm:$0xff]  ;;  %v3104_v43 = vld [vmem:[#allocation2 + $0x30] sm:$0xff] }
  0x2d   : > { %449 = vst.msk [vmem:[#allocation2 + $0x121] sm:$0xff] %vm380_vm0, %v370_v23  ;;  %450 = vst.msk [vmem:[#allocation2 + $0x129] sm:$0xff] %vm380_vm0, %v371_v28  ;;  %593 = vrot.lane.b32.xlu1 %v3058_v26, %s2825_s8  ;;  %v3102_v42 = vld [vmem:[#allocation2 + $0x20] sm:$0xff]  ;;  %v3106_v44 = vld [vmem:[#allocation2 + $0x38] sm:$0xff] }
  0x2e   : > { %599 = vrot.lane.b32.xlu0 %v3060_v27, %s2825_s8  ;;  %451 = vst.msk [vmem:[#allocation2 + $0x139] sm:$0xff] %vm380_vm0, %v372_v32  ;;  %452 = vst.msk [vmem:[#allocation2 + $0x141] sm:$0xff] %vm380_vm0, %v373_v33  ;;  %v3112_v45 = vld [vmem:[#allocation2 + $0x48] sm:$0xff]  ;;  %v3126_v47 = vld [vmem:[#allocation2 + $0x91] sm:$0xff] }
  0x2f   : > { %453 = vst.msk [vmem:[#allocation2 + $0x151] sm:$0xff] %vm380_vm0, %v374_v35  ;;  %454 = vst.msk [vmem:[#allocation2 + $0x159] sm:$0xff] %vm380_vm0, %v375_v36  ;;  %v3120_v46 = vld [vmem:[#allocation2 + $0x69] sm:$0xff]  ;;  %v3130_v49 = vld [vmem:[#allocation2 + $0x60] sm:$0xff] }
  0x30   : > { %455 = vst.msk [vmem:[#allocation2 + $0x169] sm:$0xff] %vm380_vm0, %v376_v37  ;;  %456 = vst.msk [vmem:[#allocation2 + $0x171] sm:$0xff] %vm380_vm0, %v377_v1  ;;  %v3128_v48 = vld [vmem:[#allocation2 + $0x50] sm:$0xff]  ;;  %v3136_v50 = vld [vmem:[#allocation2 + $0x68] sm:$0xff] }
  0x31   : > { %597 = vrot.lane.b32.xlu1 %v3084_v38, %s2825_s8  ;;  %493 = vst.msk [vmem:[#allocation3 + $0x10] sm:$0xff] %vm380_vm0, %v3100_v41  ;;  %494 = vst.msk [vmem:[#allocation3 + $0x18] sm:$0xff] %vm380_vm0, %v3102_v42  ;;  %v3138_v51 = vld [vmem:[#allocation2 + $0x78] sm:$0xff]  ;;  %v3140_v52 = vld [vmem:[#allocation2 + $0x80] sm:$0xff] }
  0x32   : > { %603 = vrot.lane.b32.xlu0 %v3086_v39, %s2825_s8  ;;  %495 = vst.msk [vmem:[#allocation3 + $0x20] sm:$0xff] %vm380_vm0, %v3104_v43  ;;  %496 = vst.msk [vmem:[#allocation3 + $0x28] sm:$0xff] %vm380_vm0, %v3106_v44  ;;  %v3148_v53 = vld [vmem:[#allocation2 + $0x90] sm:$0xff]  ;;  %v3150_v54 = vld [vmem:[#allocation2 + $0x98] sm:$0xff] }
  0x33   : > { %497 = vst.msk [vmem:[#allocation3 + $0x30] sm:$0xff] %vm380_vm0, %v3112_v45  ;;  %498 = vst.msk [vmem:[#allocation3 + $0x38] sm:$0xff] %vm380_vm0, %v3128_v48  ;;  %v3152_v55 = vld [vmem:[#allocation2 + $0xa8] sm:$0xff]  ;;  %v3164_v56 = vld [vmem:[#allocation2 + $0xb0] sm:$0xff] }
  0x34   : > { %499 = vst.msk [vmem:[#allocation3 + $0x40] sm:$0xff] %vm380_vm0, %v3130_v49  ;;  %500 = vst.msk [vmem:[#allocation3 + $0x48] sm:$0xff] %vm380_vm0, %v3136_v50  ;;  %v3166_v57 = vld [vmem:[#allocation2 + $0xc0] sm:$0xff]  ;;  %v3168_v58 = vld [vmem:[#allocation2 + $0xc8] sm:$0xff] }
  0x35   : > { %601 = vrot.lane.b32.xlu1 %v3094_v40, %s2825_s8  ;;  %501 = vst.msk [vmem:[#allocation3 + $0x50] sm:$0xff] %vm380_vm0, %v3138_v51  ;;  %502 = vst.msk [vmem:[#allocation3 + $0x58] sm:$0xff] %vm380_vm0, %v3140_v52  ;;  %v3170_v59 = vld [vmem:[#allocation2 + $0x81] sm:$0xff]  ;;  %v3172_v60 = vld [vmem:[#allocation2 + $0xa9] sm:$0xff] }
  0x36   : > { %607 = vrot.lane.b32.xlu0 %v3098_v2, %s2825_s8  ;;  %503 = vst.msk [vmem:[#allocation3 + $0x60] sm:$0xff] %vm380_vm0, %v3148_v53  ;;  %504 = vst.msk [vmem:[#allocation3 + $0x68] sm:$0xff] %vm380_vm0, %v3150_v54  ;;  %v3184_v61 = vld [vmem:[#allocation2 + $0xd8] sm:$0xff]  ;;  %v3186_v62 = vld [vmem:[#allocation2 + $0xe0] sm:$0xff] }
  0x37   : > { %505 = vst.msk [vmem:[#allocation3 + $0x70] sm:$0xff] %vm380_vm0, %v3152_v55  ;;  %506 = vst.msk [vmem:[#allocation3 + $0x78] sm:$0xff] %vm380_vm0, %v3164_v56  ;;  %v3188_v63 = vld [vmem:[#allocation2 + $0x99] sm:$0xff]  ;;  %v539_v0 = vld [vmem:[#allocation2 + $0xc1] sm:$0xff] }
  0x38   : > { %507 = vst.msk [vmem:[#allocation3 + $0x80] sm:$0xff] %vm380_vm0, %v3166_v57  ;;  %508 = vst.msk [vmem:[#allocation3 + $0x88] sm:$0xff] %vm380_vm0, %v3168_v58  ;;  %v3197_v3 = vld [vmem:[#allocation2 + $0xf0] sm:$0xff]  ;;  %v3199_v4 = vld [vmem:[#allocation2 + $0xf8] sm:$0xff] }
  0x39   : > { %605 = vrot.lane.b32.xlu1 %v3120_v46, %s2825_s8  ;;  %509 = vst.msk [vmem:[#allocation3 + $0x90] sm:$0xff] %vm380_vm0, %v3184_v61  ;;  %510 = vst.msk [vmem:[#allocation3 + $0x98] sm:$0xff] %vm380_vm0, %v3186_v62  ;;  %v3201_v5 = vld [vmem:[#allocation2 + $0xb1] sm:$0xff]  ;;  %v541_v6 = vld [vmem:[#allocation2 + $0xd9] sm:$0xff] }
  0x3a   : > { %611 = vrot.lane.b32.xlu0 %v3126_v47, %s2825_s8  ;;  %511 = vst.msk [vmem:[#allocation3 + $0xa0] sm:$0xff] %vm380_vm0, %v3197_v3  ;;  %512 = vst.msk [vmem:[#allocation3 + $0xa8] sm:$0xff] %vm380_vm0, %v3199_v4  ;;  %v3210_v7 = vld [vmem:[#allocation2 + $0x108] sm:$0xff]  ;;  %v3212_v8 = vld [vmem:[#allocation2 + $0x110] sm:$0xff] }
  0x3b   : > { %v540_v9 = vld [vmem:[#allocation2 + $0xc9] sm:$0xff]  ;;  %v543_v10 = vld [vmem:[#allocation2 + $0xf1] sm:$0xff]  ;;  %513 = vst.msk [vmem:[#allocation3 + $0xb0] sm:$0xff] %vm380_vm0, %v3210_v7  ;;  %514 = vst.msk [vmem:[#allocation3 + $0xb8] sm:$0xff] %vm380_vm0, %v3212_v8 }
  0x3c   : > { %v3220_v11 = vld [vmem:[#allocation2 + $0x120] sm:$0xff]  ;;  %v3222_v12 = vld [vmem:[#allocation2 + $0x128] sm:$0xff]  ;;  %v3230_v15 = vld [vmem:[#allocation2 + $0x138] sm:$0xff] }
  0x3d   : > { %609 = vrot.lane.b32.xlu1 %v3170_v59, %s2825_s8  ;;  %v542_v13 = vld [vmem:[#allocation2 + $0xe1] sm:$0xff]  ;;  %v545_v14 = vld [vmem:[#allocation2 + $0x109] sm:$0xff]  ;;  %515 = vst.msk [vmem:[#allocation3 + $0xc0] sm:$0xff] %vm380_vm0, %v3220_v11  ;;  %516 = vst.msk [vmem:[#allocation3 + $0xc8] sm:$0xff] %vm380_vm0, %v3222_v12 }
  0x3e   : > { %615 = vrot.lane.b32.xlu0 %v3172_v60, %s2825_s8  ;;  %v3232_v18 = vld [vmem:[#allocation2 + $0x140] sm:$0xff]  ;;  %517 = vst.msk [vmem:[#allocation3 + $0xd0] sm:$0xff] %vm380_vm0, %v3230_v15  ;;  %v487_v21 = vld [vmem:[#allocation2 + $0x150] sm:$0xff]  ;;  %v488_v22 = vld [vmem:[#allocation2 + $0x158] sm:$0xff] }
  0x3f   : > { %v544_v19 = vld [vmem:[#allocation2 + $0xf9] sm:$0xff]  ;;  %v547_v20 = vld [vmem:[#allocation2 + $0x121] sm:$0xff]  ;;  %518 = vst.msk [vmem:[#allocation3 + $0xd8] sm:$0xff] %vm380_vm0, %v3232_v18  ;;  %v546_v23 = vld [vmem:[#allocation2 + $0x111] sm:$0xff] }
  0x40   : > { %v549_v24 = vld [vmem:[#allocation2 + $0x139] sm:$0xff]  ;;  %519 = vst.msk [vmem:[#allocation3 + $0xe0] sm:$0xff] %vm380_vm0, %v487_v21  ;;  %520 = vst.msk [vmem:[#allocation3 + $0xe8] sm:$0xff] %vm380_vm0, %v488_v22  ;;  %v489_v25 = vld [vmem:[#allocation2 + $0x168] sm:$0xff] }
  0x41   : > { %613 = vrot.lane.b32.xlu1 %v3188_v63, %s2825_s8  ;;  %v490_v28 = vld [vmem:[#allocation2 + $0x170] sm:$0xff]  ;;  %521 = vst.msk [vmem:[#allocation3 + $0xf0] sm:$0xff] %vm380_vm0, %v489_v25  ;;  %v550_v31 = vld [vmem:[#allocation2 + $0x141] sm:$0xff]  ;;  %v552_v33 = vld [vmem:[#allocation2 + $0x159] sm:$0xff] }
  0x42   : > { %619 = vrot.lane.b32.xlu0 %v539_v0, %s2825_s8  ;;  %v548_v29 = vld [vmem:[#allocation2 + $0x129] sm:$0xff]  ;;  %v551_v30 = vld [vmem:[#allocation2 + $0x151] sm:$0xff]  ;;  %522 = vst.msk [vmem:[#allocation3 + $0xf8] sm:$0xff] %vm380_vm0, %v490_v28  ;;  %v718_v36 = vld [vmem:[#allocation2 + $0x1a] sm:$0xff] }
  0x43   : > { %v553_v32 = vld [vmem:[#allocation2 + $0x169] sm:$0xff]  ;;  %v554_v35 = vld [vmem:[#allocation2 + $0x171] sm:$0xff]  ;;  %v2813_v21 = vld [vmem:[%s4246_s3] sm:$0xff]  }
  0x44   : > { %v716_v34 = vld [vmem:[#allocation2 + $0x2] sm:$0xff]  ;;  %v717_v37 = vld [vmem:[#allocation2 + $0xa] sm:$0xff]  ;;  %v720_v1 = vld [vmem:[#allocation2 + $0x32] sm:$0xff] }
  0x45   : > { %617 = vrot.lane.b32.xlu1 %v3201_v5, %s2825_s8  ;;  %v719_v0 = vld [vmem:[#allocation2 + $0x22] sm:$0xff] }
  0x46   : > { %623 = vrot.lane.b32.xlu0 %v541_v6, %s2825_s8  ;;  %v3256_v6 = vld [vmem:[#allocation2 + $0x4a] sm:$0xff] }
  0x49   : > { %621 = vrot.lane.b32.xlu1 %v540_v9, %s2825_s8  ;;  %v3261_v9 = vld [vmem:[#allocation2 + $0x3a] sm:$0xff] }
  0x4a   : > { %627 = vrot.lane.b32.xlu0 %v543_v10, %s2825_s8  ;;  %v3263_v10 = vld [vmem:[#allocation2 + $0x62] sm:$0xff] }
  0x4d   : > { %625 = vrot.lane.b32.xlu1 %v542_v13, %s2825_s8  ;;  %v3269_v13 = vld [vmem:[#allocation2 + $0x52] sm:$0xff] }
  0x4e   : > { %631 = vrot.lane.b32.xlu0 %v545_v14, %s2825_s8  ;;  %v3275_v14 = vld [vmem:[#allocation2 + $0x6a] sm:$0xff] }
  0x51   : > { %629 = vrot.lane.b32.xlu1 %v544_v19, %s2825_s8 }
  0x52   : > { %635 = vrot.lane.b32.xlu0 %v547_v20, %s2825_s8 }
  0x55   : > { %633 = vrot.lane.b32.xlu1 %v546_v23, %s2825_s8 }
  0x56   : > { %639 = vrot.lane.b32.xlu0 %v549_v24, %s2825_s8 }
  0x59   : > { %637 = vrot.lane.b32.xlu1 %v548_v29, %s2825_s8 }
  0x5a   : > { %643 = vrot.lane.b32.xlu0 %v551_v30, %s2825_s8 }
  0x5d   : > { %641 = vrot.lane.b32.xlu1 %v550_v31, %s2825_s8 }
  0x5e   : > { %647 = vrot.lane.b32.xlu0 %v553_v32, %s2825_s8 }
  0x61   : > { %645 = vrot.lane.b32.xlu1 %v552_v33, %s2825_s8 }
  0x62   : > { %780 = vrot.lane.b32.xlu0 %v716_v34, %s2826_s9 }
  0x65   : > { %649 = vrot.lane.b32.xlu1 %v554_v35, %s2825_s8 }
  0x66   : > { %784 = vrot.lane.b32.xlu0 %v718_v36, %s2826_s9 }
  0x69   : > { %782 = vrot.lane.b32.xlu1 %v717_v37, %s2826_s9 }
  0x6a   : > { %788 = vrot.lane.b32.xlu0 %v720_v1, %s2826_s9 }
  0x6d   : > { %786 = vrot.lane.b32.xlu1 %v719_v0, %s2826_s9 }
  0x6e   : > { %792 = vrot.lane.b32.xlu0 %v3256_v6, %s2826_s9 }
  0x71   : > { %790 = vrot.lane.b32.xlu1 %v3261_v9, %s2826_s9 }
  0x72   : > { %796 = vrot.lane.b32.xlu0 %v3263_v10, %s2826_s9 }
  0x75   : > { %794 = vrot.lane.b32.xlu1 %v3269_v13, %s2826_s9 }
  0x76   : > { %973 = vrot.lane.b32.xlu0 %v3100_v41, %s2827_s10  ;;  %v2811_v41 = vld [vmem:[%s4246_s3 + $0x10] ss:$0 sps:$4 sm:$0x33]  }
  0x77   : > { %2792 = vmatprep.subr.msk.bf16.mxu0 %vm2185_vm4, %v2811_v41  ;;  %2793 = vmatprep.subr.msk.bf16.mxu1 %vm2185_vm4, %v2811_v41 }
  0x79   : > { %798 = vrot.lane.b32.xlu1 %v3275_v14, %s2826_s9 }
  0x7a   : > { %977 = vrot.lane.b32.xlu0 %v3104_v43, %s2827_s10 }
  0x7d   : > { %975 = vrot.lane.b32.xlu1 %v3102_v42, %s2827_s10  ;;  %v2187_v42 = vsel %vm2185_vm4, %v2811_v41, 0 }
  0x7e   : > { %1166 = vrot.lane.b32.xlu0 %v3036_v16, %s2828_s11  ;;  %2749 = vmatpush3.bf16.msra.mxu0 %v2187_v42 }
  0x7f   : > { %2789 = vmatpush3.bf16.msra.mxu1 %v2187_v42 }
  0x81   : > { %979 = vrot.lane.b32.xlu1 %v3106_v44, %s2827_s10 }
  0x82   : > { %1170 = vrot.lane.b32.xlu0 %v3038_v17, %s2828_s11 }
  0x85   : > { %1168 = vrot.lane.b32.xlu1 %v3058_v26, %s2828_s11 }
  0x86   : > { %1359 = vrot.lane.b32.xlu0 %v718_v36, %s2829_s12  ;;  %v588_v16 = vpop.permute.xlu0 %587 }
  0x87   : > { %684 = vst.msk [vmem:[#allocation3] sm:$0xff] %vm683_vm3, %v588_v16 }
  0x89   : > { %1172 = vrot.lane.b32.xlu1 %v3084_v38, %s2828_s11 }
  0x8a   : > { %1363 = vrot.lane.b32.xlu0 %v720_v1, %s2829_s12 }
  0x8d   : > { %1361 = vrot.lane.b32.xlu1 %v719_v0, %s2829_s12 }
  0x8e   : > { %1553 = vrot.lane.b32.xlu0 %v3104_v43, %s2830_s13 }
  0x91   : > { %1365 = vrot.lane.b32.xlu1 %v3261_v9, %s2829_s12 }
  0x92   : > { %1557 = vrot.lane.b32.xlu0 %v3112_v45, %s2830_s13 }
  0x95   : > { %1555 = vrot.lane.b32.xlu1 %v3106_v44, %s2830_s13 }
  0x96   : > { %1746 = vrot.lane.b32.xlu0 %v3038_v17, %s2831_s14  ;;  %v2812_v17 = vld [vmem:[%s4246_s3 + $0x8] sm:$0xff]  }
  0x97   : > { %2750 = vmatprep.subr.bf16.mxu0 %v2812_v17  ;;  %2787 = vmatprep.subr.bf16.mxu1 %v2812_v17 }
  0x98   : > { %v590_v26 = vpop.permute.xlu0 %589  ;;  %2751 = vmatpush3.bf16.msra.mxu0 %v2812_v17  ;;  %2790 = vmatpush3.bf16.msra.mxu1 %v2812_v17 }
  0x99   : > { %685 = vst.msk [vmem:[#allocation3 + $0x8] sm:$0xff] %vm683_vm3, %v590_v26  ;;  %1559 = vrot.lane.b32.xlu1 %v3128_v48, %s2830_s13  ;;  %2752 = vmatprep.subr.bf16.mxu0 %v2813_v21 }
  0x9a   : > { %1750 = vrot.lane.b32.xlu0 %v3060_v27, %s2831_s14  ;;  %2788 = vmatprep.subr.bf16.mxu1 %v2813_v21 }
  0x9b   : > { %v592_v43 = vpop.permute.xlu1 %591 }
  0x9c   : > { %v596_v44 = vpop.permute.xlu0 %595  ;;  %686 = vst.msk [vmem:[#allocation3 + $0x10] sm:$0xff] %vm683_vm3, %v592_v43  ;;  %2753 = vmatpush3.bf16.msra.mxu0 %v2813_v21  ;;  %2791 = vmatpush3.bf16.msra.mxu1 %v2813_v21 }
  0x9d   : > { %688 = vst.msk [vmem:[#allocation3 + $0x20] sm:$0xff] %vm683_vm3, %v596_v44  ;;  %1748 = vrot.lane.b32.xlu1 %v3084_v38, %s2831_s14 }
  0x9e   : > { %1939 = vrot.lane.b32.xlu0 %v720_v1, %s2832_s19 }
  0x9f   : > { %v594_v19 = vpop.permute.xlu1 %593 }
  0xa0   : > { %v600_v20 = vpop.permute.xlu0 %599  ;;  %687 = vst.msk [vmem:[#allocation3 + $0x18] sm:$0xff] %vm683_vm3, %v594_v19 }
  0xa1   : > { %690 = vst.msk [vmem:[#allocation3 + $0x30] sm:$0xff] %vm683_vm3, %v600_v20  ;;  %1752 = vrot.lane.b32.xlu1 %v3094_v40, %s2831_s14 }
  0xa2   : > { %1943 = vrot.lane.b32.xlu0 %v3256_v6, %s2832_s19 }
  0xa3   : > { %v598_v38 = vpop.permute.xlu1 %597 }
  0xa4   : > { %v604_v22 = vpop.permute.xlu0 %603  ;;  %689 = vst.msk [vmem:[#allocation3 + $0x28] sm:$0xff] %vm683_vm3, %v598_v38 }
  0xa5   : > { %692 = vst.msk [vmem:[#allocation3 + $0x40] sm:$0xff] %vm683_vm3, %v604_v22  ;;  %1941 = vrot.lane.b32.xlu1 %v3261_v9, %s2832_s19 }
  0xa6   : > { %981 = vrot.lane.b32.xlu0 %v3112_v45, %s2827_s10 }
  0xa7   : > { %v602_v23 = vpop.permute.xlu1 %601 }
  0xa8   : > { %v608_v24 = vpop.permute.xlu0 %607  ;;  %691 = vst.msk [vmem:[#allocation3 + $0x38] sm:$0xff] %vm683_vm3, %v602_v23 }
  0xa9   : > { %694 = vst.msk [vmem:[#allocation3 + $0x50] sm:$0xff] %vm683_vm3, %v608_v24  ;;  %1945 = vrot.lane.b32.xlu1 %v3269_v13, %s2832_s19 }
  0xaa   : > { %985 = vrot.lane.b32.xlu0 %v3130_v49, %s2827_s10 }
  0xab   : > { %v606_v25 = vpop.permute.xlu1 %605 }
  0xac   : > { %v612_v28 = vpop.permute.xlu0 %611  ;;  %693 = vst.msk [vmem:[#allocation3 + $0x48] sm:$0xff] %vm683_vm3, %v606_v25 }
  0xad   : > { %696 = vst.msk [vmem:[#allocation3 + $0x60] sm:$0xff] %vm683_vm3, %v612_v28  ;;  %983 = vrot.lane.b32.xlu1 %v3128_v48, %s2827_s10 }
  0xae   : > { %1174 = vrot.lane.b32.xlu0 %v3060_v27, %s2828_s11 }
  0xaf   : > { %v610_v45 = vpop.permute.xlu1 %609 }
  0xb0   : > { %v616_v29 = vpop.permute.xlu0 %615  ;;  %695 = vst.msk [vmem:[#allocation3 + $0x58] sm:$0xff] %vm683_vm3, %v610_v45 }
  0xb1   : > { %698 = vst.msk [vmem:[#allocation3 + $0x70] sm:$0xff] %vm683_vm3, %v616_v29  ;;  %987 = vrot.lane.b32.xlu1 %v3136_v50, %s2827_s10 }
  0xb2   : > { %1178 = vrot.lane.b32.xlu0 %v3086_v39, %s2828_s11 }
  0xb3   : > { %v614_v30 = vpop.permute.xlu1 %613 }
  0xb4   : > { %v620_v31 = vpop.permute.xlu0 %619  ;;  %697 = vst.msk [vmem:[#allocation3 + $0x68] sm:$0xff] %vm683_vm3, %v614_v30 }
  0xb5   : > { %700 = vst.msk [vmem:[#allocation3 + $0x80] sm:$0xff] %vm683_vm3, %v620_v31  ;;  %1176 = vrot.lane.b32.xlu1 %v3094_v40, %s2828_s11 }
  0xb6   : > { %1367 = vrot.lane.b32.xlu0 %v3256_v6, %s2829_s12 }
  0xb7   : > { %v618_v27 = vpop.permute.xlu1 %617 }
  0xb8   : > { %v624_v48 = vpop.permute.xlu0 %623  ;;  %699 = vst.msk [vmem:[#allocation3 + $0x78] sm:$0xff] %vm683_vm3, %v618_v27 }
  0xb9   : > { %702 = vst.msk [vmem:[#allocation3 + $0x90] sm:$0xff] %vm683_vm3, %v624_v48  ;;  %1180 = vrot.lane.b32.xlu1 %v3120_v46, %s2828_s11 }
  0xba   : > { %1371 = vrot.lane.b32.xlu0 %v3263_v10, %s2829_s12 }
  0xbb   : > { %v622_v32 = vpop.permute.xlu1 %621 }
  0xbc   : > { %v628_v33 = vpop.permute.xlu0 %627  ;;  %701 = vst.msk [vmem:[#allocation3 + $0x88] sm:$0xff] %vm683_vm3, %v622_v32 }
  0xbd   : > { %704 = vst.msk [vmem:[#allocation3 + $0xa0] sm:$0xff] %vm683_vm3, %v628_v33  ;;  %1369 = vrot.lane.b32.xlu1 %v3269_v13, %s2829_s12 }
  0xbe   : > { %1561 = vrot.lane.b32.xlu0 %v3130_v49, %s2830_s13 }
  0xbf   : > { %v626_v40 = vpop.permute.xlu1 %625 }
  0xc0   : > { %v632_v34 = vpop.permute.xlu0 %631  ;;  %703 = vst.msk [vmem:[#allocation3 + $0x98] sm:$0xff] %vm683_vm3, %v626_v40 }
  0xc1   : > { %706 = vst.msk [vmem:[#allocation3 + $0xb0] sm:$0xff] %vm683_vm3, %v632_v34  ;;  %1373 = vrot.lane.b32.xlu1 %v3275_v14, %s2829_s12  ;;  %v1114_v34 = vld [vmem:[#allocation2 + $0xa9] sm:$0xff] }
  0xc2   : > { %1565 = vrot.lane.b32.xlu0 %v3138_v51, %s2830_s13 }
  0xc3   : > { %v630_v35 = vpop.permute.xlu1 %629 }
  0xc4   : > { %v636_v36 = vpop.permute.xlu0 %635  ;;  %705 = vst.msk [vmem:[#allocation3 + $0xa8] sm:$0xff] %vm683_vm3, %v630_v35 }
  0xc5   : > { %708 = vst.msk [vmem:[#allocation3 + $0xc0] sm:$0xff] %vm683_vm3, %v636_v36  ;;  %1563 = vrot.lane.b32.xlu1 %v3136_v50, %s2830_s13 }
  0xc6   : > { %1754 = vrot.lane.b32.xlu0 %v3086_v39, %s2831_s14  ;;  %v1881_v39 = vld [vmem:[#allocation2 + $0x7a] sm:$0xff] }
  0xc7   : > { %v634_v49 = vpop.permute.xlu1 %633 }
  0xc8   : > { %v640_v37 = vpop.permute.xlu0 %639  ;;  %707 = vst.msk [vmem:[#allocation3 + $0xb8] sm:$0xff] %vm683_vm3, %v634_v49 }
  0xc9   : > { %710 = vst.msk [vmem:[#allocation3 + $0xd0] sm:$0xff] %vm683_vm3, %v640_v37  ;;  %1567 = vrot.lane.b32.xlu1 %v3140_v52, %s2830_s13 }
  0xca   : > { %1758 = vrot.lane.b32.xlu0 %v3098_v2, %s2831_s14 }
  0xcb   : > { %v638_v1 = vpop.permute.xlu1 %637 }
  0xcc   : > { %v644_v0 = vpop.permute.xlu0 %643  ;;  %709 = vst.msk [vmem:[#allocation3 + $0xc8] sm:$0xff] %vm683_vm3, %v638_v1 }
  0xcd   : > { %712 = vst.msk [vmem:[#allocation3 + $0xe0] sm:$0xff] %vm683_vm3, %v644_v0  ;;  %1756 = vrot.lane.b32.xlu1 %v3120_v46, %s2831_s14  ;;  %v1882_v46 = vld [vmem:[#allocation2 + $0x82] sm:$0xff] }
  0xce   : > { %1947 = vrot.lane.b32.xlu0 %v3263_v10, %s2832_s19 }
  0xcf   : > { %v642_v50 = vpop.permute.xlu1 %641 }
  0xd0   : > { %v648_v6 = vpop.permute.xlu0 %647  ;;  %711 = vst.msk [vmem:[#allocation3 + $0xd8] sm:$0xff] %vm683_vm3, %v642_v50 }
  0xd1   : > { %714 = vst.msk [vmem:[#allocation3 + $0xf0] sm:$0xff] %vm683_vm3, %v648_v6  ;;  %1760 = vrot.lane.b32.xlu1 %v3170_v59, %s2831_s14 }
  0xd2   : > { %1951 = vrot.lane.b32.xlu0 %v1881_v39, %s2832_s19 }
  0xd3   : > { %v646_v9 = vpop.permute.xlu1 %645 }
  0xd4   : > { %v781_v13 = vpop.permute.xlu0 %780  ;;  %713 = vst.msk [vmem:[#allocation3 + $0xe8] sm:$0xff] %vm683_vm3, %v646_v9  ;;  %v1117_v9 = vld [vmem:[#allocation2 + $0xc9] sm:$0xff] }
  0xd5   : > { %877 = vst.msk [vmem:[#allocation3] sm:$0xff] %vm876_vm5, %v781_v13  ;;  %1949 = vrot.lane.b32.xlu1 %v3275_v14, %s2832_s19  ;;  %v1309_v13 = vld [vmem:[#allocation2 + $0xc2] sm:$0xff] }
  0xd6   : > { %800 = vrot.lane.b32.xlu0 %v1881_v39, %s2826_s9 }
  0xd7   : > { %v650_v10 = vpop.permute.xlu1 %649 }
  0xd8   : > { %v785_v16 = vpop.permute.xlu0 %784  ;;  %715 = vst.msk [vmem:[#allocation3 + $0xf8] sm:$0xff] %vm683_vm3, %v650_v10 }
  0xd9   : > { %879 = vst.msk [vmem:[#allocation3 + $0x10] sm:$0xff] %vm876_vm5, %v785_v16  ;;  %1953 = vrot.lane.b32.xlu1 %v1882_v46, %s2832_s19 }
  0xda   : > { %989 = vrot.lane.b32.xlu0 %v3138_v51, %s2827_s10 }
  0xdb   : > { %v783_v26 = vpop.permute.xlu1 %782 }
  0xdc   : > { %v789_v41 = vpop.permute.xlu0 %788  ;;  %878 = vst.msk [vmem:[#allocation3 + $0x8] sm:$0xff] %vm876_vm5, %v783_v26 }
  0xdd   : > { %881 = vst.msk [vmem:[#allocation3 + $0x20] sm:$0xff] %vm876_vm5, %v789_v41  ;;  %802 = vrot.lane.b32.xlu1 %v1882_v46, %s2826_s9 }
  0xde   : > { %993 = vrot.lane.b32.xlu0 %v3148_v53, %s2827_s10 }
  0xdf   : > { %v787_v14 = vpop.permute.xlu1 %786 }
  0xe0   : > { %v793_v42 = vpop.permute.xlu0 %792  ;;  %880 = vst.msk [vmem:[#allocation3 + $0x18] sm:$0xff] %vm876_vm5, %v787_v14  ;;  %v1310_v14 = vld [vmem:[#allocation2 + $0xca] sm:$0xff] }
  0xe1   : > { %883 = vst.msk [vmem:[#allocation3 + $0x30] sm:$0xff] %vm876_vm5, %v793_v42  ;;  %991 = vrot.lane.b32.xlu1 %v3140_v52, %s2827_s10 }
  0xe2   : > { %1182 = vrot.lane.b32.xlu0 %v3098_v2, %s2828_s11  ;;  %v1305_v2 = vld [vmem:[#allocation2 + $0x92] sm:$0xff] }
  0xe3   : > { %v791_v51 = vpop.permute.xlu1 %790 }
  0xe4   : > { %v797_v43 = vpop.permute.xlu0 %796  ;;  %882 = vst.msk [vmem:[#allocation3 + $0x28] sm:$0xff] %vm876_vm5, %v791_v51 }
  0xe5   : > { %885 = vst.msk [vmem:[#allocation3 + $0x40] sm:$0xff] %vm876_vm5, %v797_v43  ;;  %995 = vrot.lane.b32.xlu1 %v3150_v54, %s2827_s10 }
  0xe6   : > { %1186 = vrot.lane.b32.xlu0 %v3126_v47, %s2828_s11 }
  0xe7   : > { %v795_v44 = vpop.permute.xlu1 %794 }
  0xe8   : > { %v974_v17 = vpop.permute.xlu0 %973  ;;  %884 = vst.msk [vmem:[#allocation3 + $0x38] sm:$0xff] %vm876_vm5, %v795_v44 }
  0xe9   : > { %1070 = vst.msk [vmem:[#allocation3] sm:$0xff] %vm1069_vm6, %v974_v17  ;;  %1184 = vrot.lane.b32.xlu1 %v3170_v59, %s2828_s11  ;;  %v1306_v59 = vld [vmem:[#allocation2 + $0x9a] sm:$0xff] }
  0xea   : > { %1375 = vrot.lane.b32.xlu0 %v1881_v39, %s2829_s12 }
  0xeb   : > { %v799_v52 = vpop.permute.xlu1 %798 }
  0xec   : > { %v978_v19 = vpop.permute.xlu0 %977  ;;  %886 = vst.msk [vmem:[#allocation3 + $0x48] sm:$0xff] %vm876_vm5, %v799_v52 }
  0xed   : > { %1072 = vst.msk [vmem:[#allocation3 + $0x10] sm:$0xff] %vm1069_vm6, %v978_v19  ;;  %1188 = vrot.lane.b32.xlu1 %v3188_v63, %s2828_s11 }
  0xee   : > { %1379 = vrot.lane.b32.xlu0 %v1305_v2, %s2829_s12 }
  0xef   : > { %v976_v20 = vpop.permute.xlu1 %975 }
  0xf0   : > { %v1167_v21 = vpop.permute.xlu0 %1166  ;;  %1071 = vst.msk [vmem:[#allocation3 + $0x8] sm:$0xff] %vm1069_vm6, %v976_v20  ;;  %v1889_v20 = vld [vmem:[#allocation2 + $0xda] sm:$0xff] }
  0xf1   : > { %1263 = vst.msk [vmem:[#allocation3] sm:$0xff] %vm1262_vm7, %v1167_v21  ;;  %1377 = vrot.lane.b32.xlu1 %v1882_v46, %s2829_s12 }
  0xf2   : > { %1569 = vrot.lane.b32.xlu0 %v3148_v53, %s2830_s13 }
  0xf3   : > { %v980_v38 = vpop.permute.xlu1 %979 }
  0xf4   : > { %v1171_v22 = vpop.permute.xlu0 %1170  ;;  %1073 = vst.msk [vmem:[#allocation3 + $0x18] sm:$0xff] %vm1069_vm6, %v980_v38 }
  0xf5   : > { %1265 = vst.msk [vmem:[#allocation3 + $0x10] sm:$0xff] %vm1262_vm7, %v1171_v22  ;;  %1381 = vrot.lane.b32.xlu1 %v1306_v59, %s2829_s12 }
  0xf6   : > { %1573 = vrot.lane.b32.xlu0 %v3152_v55, %s2830_s13 }
  0xf7   : > { %v1169_v23 = vpop.permute.xlu1 %1168 }
  0xf8   : > { %v1360_v24 = vpop.permute.xlu0 %1359  ;;  %1264 = vst.msk [vmem:[#allocation3 + $0x8] sm:$0xff] %vm1262_vm7, %v1169_v23  ;;  %v1890_v23 = vld [vmem:[#allocation2 + $0xe2] sm:$0xff] }
  0xf9   : > { %1456 = vst.msk [vmem:[#allocation3] sm:$0xff] %vm1455_vm8, %v1360_v24  ;;  %1571 = vrot.lane.b32.xlu1 %v3150_v54, %s2830_s13 }
  0xfa   : > { %1762 = vrot.lane.b32.xlu0 %v3126_v47, %s2831_s14  ;;  %v1885_v47 = vld [vmem:[#allocation2 + $0xaa] sm:$0xff] }
  0xfb   : > { %v1173_v53 = vpop.permute.xlu1 %1172 }
  0xfc   : > { %v1364_v25 = vpop.permute.xlu0 %1363  ;;  %1266 = vst.msk [vmem:[#allocation3 + $0x18] sm:$0xff] %vm1262_vm7, %v1173_v53 }
  0xfd   : > { %1458 = vst.msk [vmem:[#allocation3 + $0x10] sm:$0xff] %vm1455_vm8, %v1364_v25  ;;  %1575 = vrot.lane.b32.xlu1 %v3164_v56, %s2830_s13 }
  0xfe   : > { %1766 = vrot.lane.b32.xlu0 %v3172_v60, %s2831_s14 }
  0xff   : > { %v1362_v28 = vpop.permute.xlu1 %1361 }
 0x100   : > { %v1554_v45 = vpop.permute.xlu0 %1553  ;;  %1457 = vst.msk [vmem:[#allocation3 + $0x8] sm:$0xff] %vm1455_vm8, %v1362_v28 }
 0x101   : > { %1650 = vst.msk [vmem:[#allocation3] sm:$0xff] %vm1649_vm9, %v1554_v45  ;;  %1764 = vrot.lane.b32.xlu1 %v3188_v63, %s2831_s14  ;;  %v1886_v63 = vld [vmem:[#allocation2 + $0xb2] sm:$0xff] }
 0x102   : > { %1955 = vrot.lane.b32.xlu0 %v1305_v2, %s2832_s19 }
 0x103   : > { %v1366_v54 = vpop.permute.xlu1 %1365 }
 0x104   : > { %v1558_v29 = vpop.permute.xlu0 %1557  ;;  %1459 = vst.msk [vmem:[#allocation3 + $0x18] sm:$0xff] %vm1455_vm8, %v1366_v54 }
 0x105   : > { %1652 = vst.msk [vmem:[#allocation3 + $0x10] sm:$0xff] %vm1649_vm9, %v1558_v29  ;;  %1768 = vrot.lane.b32.xlu1 %v3201_v5, %s2831_s14 }
 0x106   : > { %1959 = vrot.lane.b32.xlu0 %v1885_v47, %s2832_s19 }
 0x107   : > { %v1556_v60 = vpop.permute.xlu1 %1555 }
 0x108   : > { %v1747_v30 = vpop.permute.xlu0 %1746  ;;  %1651 = vst.msk [vmem:[#allocation3 + $0x8] sm:$0xff] %vm1649_vm9, %v1556_v60 }
 0x109   : > { %1843 = vst.msk [vmem:[#allocation3] sm:$0xff] %vm1842_vm10, %v1747_v30  ;;  %1957 = vrot.lane.b32.xlu1 %v1306_v59, %s2832_s19 }
 0x10a   : > { %804 = vrot.lane.b32.xlu0 %v1305_v2, %s2826_s9 }
 0x10b   : > { %v1560_v31 = vpop.permute.xlu1 %1559 }
 0x10c   : > { %v1751_v27 = vpop.permute.xlu0 %1750  ;;  %1653 = vst.msk [vmem:[#allocation3 + $0x18] sm:$0xff] %vm1649_vm9, %v1560_v31  ;;  %v1120_v31 = vld [vmem:[#allocation2 + $0xf1] sm:$0xff] }
 0x10d   : > { %1845 = vst.msk [vmem:[#allocation3 + $0x10] sm:$0xff] %vm1842_vm10, %v1751_v27  ;;  %1961 = vrot.lane.b32.xlu1 %v1886_v63, %s2832_s19 }
 0x10e   : > { %808 = vrot.lane.b32.xlu0 %v1885_v47, %s2826_s9 }
 0x10f   : > { %v1749_v48 = vpop.permute.xlu1 %1748 }
 0x110   : > { %v1940_v32 = vpop.permute.xlu0 %1939  ;;  %1844 = vst.msk [vmem:[#allocation3 + $0x8] sm:$0xff] %vm1842_vm10, %v1749_v48 }
 0x111   : > { %2036 = vst.msk [vmem:[#allocation3] sm:$0xff] %vm2035_vm11, %v1940_v32  ;;  %806 = vrot.lane.b32.xlu1 %v1306_v59, %s2826_s9 }
 0x112   : > { %997 = vrot.lane.b32.xlu0 %v3152_v55, %s2827_s10  ;;  %v1116_v55 = vld [vmem:[#allocation2 + $0xc1] sm:$0xff] }
 0x113   : > { %v1753_v33 = vpop.permute.xlu1 %1752 }
 0x114   : > { %v1944_v40 = vpop.permute.xlu0 %1943  ;;  %1846 = vst.msk [vmem:[#allocation3 + $0x18] sm:$0xff] %vm1842_vm10, %v1753_v33 }
 0x115   : > { %2038 = vst.msk [vmem:[#allocation3 + $0x10] sm:$0xff] %vm2035_vm11, %v1944_v40  ;;  %810 = vrot.lane.b32.xlu1 %v1886_v63, %s2826_s9 }
 0x116   : > { %1001 = vrot.lane.b32.xlu0 %v3166_v57, %s2827_s10 }
 0x117   : > { %v1942_v35 = vpop.permute.xlu1 %1941 }
 0x118   : > { %v982_v36 = vpop.permute.xlu0 %981  ;;  %2037 = vst.msk [vmem:[#allocation3 + $0x8] sm:$0xff] %vm2035_vm11, %v1942_v35  ;;  %v2068_v1 = vld [vmem:[#allocation3] sm:$0xff] }
 0x119   : > { %1074 = vst.msk [vmem:[#allocation3 + $0x20] sm:$0xff] %vm1069_vm6, %v982_v36  ;;  %999 = vrot.lane.b32.xlu1 %v3164_v56, %s2827_s10  ;;  %v1313_v35 = vld [vmem:[#allocation2 + $0xf2] sm:$0xff] }
 0x11a   : > { %1190 = vrot.lane.b32.xlu0 %v1114_v34, %s2828_s11  ;;  %v1121_v34 = vld [vmem:[#allocation2 + $0xf9] sm:$0xff] }
 0x11b   : > { %v1946_v49 = vpop.permute.xlu1 %1945 }
 0x11c   : > { %v986_v37 = vpop.permute.xlu0 %985  ;;  %2039 = vst.msk [vmem:[#allocation3 + $0x18] sm:$0xff] %vm2035_vm11, %v1946_v49  ;;  %v2070_v6 = vld [vmem:[#allocation3 + $0x10] sm:$0xff] }
 0x11d   : > { %1076 = vst.msk [vmem:[#allocation3 + $0x30] sm:$0xff] %vm1069_vm6, %v986_v37  ;;  %1003 = vrot.lane.b32.xlu1 %v3168_v58, %s2827_s10 }
 0x11e   : > { %1194 = vrot.lane.b32.xlu0 %v1116_v55, %s2828_s11 }
 0x11f   : > { %v984_v0 = vpop.permute.xlu1 %983  ;;  %v2069_v39 = vld [vmem:[#allocation3 + $0x8] sm:$0xff] }
 0x120   : > { %v1175_v50 = vpop.permute.xlu0 %1174  ;;  %1075 = vst.msk [vmem:[#allocation3 + $0x28] sm:$0xff] %vm1069_vm6, %v984_v0  ;;  %v2100_v56 = vpack.c.bf16 %v2069_v39, %v2068_v1  ;;  %v1314_v1 = vld [vmem:[#allocation2 + $0xfa] sm:$0xff] }
 0x121   : > { %1267 = vst.msk [vmem:[#allocation3 + $0x20] sm:$0xff] %vm1262_vm7, %v1175_v50  ;;  %1192 = vrot.lane.b32.xlu1 %v3201_v5, %s2828_s11 }
 0x122   : > { %1383 = vrot.lane.b32.xlu0 %v1885_v47, %s2829_s12  ;;  %2754 = vmatprep.mubr.msk.bf16.mxu0 %vm2136_vm12, %v2100_v56 }
 0x123   : > { %v988_v46 = vpop.permute.xlu1 %987  ;;  %v2071_v10 = vld [vmem:[#allocation3 + $0x18] sm:$0xff] }
 0x124   : > { %v1179_v16 = vpop.permute.xlu0 %1178  ;;  %1077 = vst.msk [vmem:[#allocation3 + $0x38] sm:$0xff] %vm1069_vm6, %v988_v46  ;;  %v2101_v26 = vpack.c.bf16 %v2071_v10, %v2070_v6  ;;  %v301_v10 = vld [vmem:[%s2941_s29 + $0xf8] sm:$0xff] }
 0x125   : > { %1269 = vst.msk [vmem:[#allocation3 + $0x30] sm:$0xff] %vm1262_vm7, %v1179_v16  ;;  %1196 = vrot.lane.b32.xlu1 %v1117_v9, %s2828_s11  ;;  %v2814_v16 = vld [vmem:[%s4244_s1] ss:$0 sm:$0xff] }
 0x126   : > { %1387 = vrot.lane.b32.xlu0 %v1309_v13, %s2829_s12  ;;  %2755 = vmatmul.mubr.msk.bf16.vlgmr.msra.gmra.mxu0 %vm2136_vm12, %v2101_v26 }
 0x127   : > { %v1177_v5 = vpop.permute.xlu1 %1176 }
 0x128   : > { %v1368_v41 = vpop.permute.xlu0 %1367  ;;  %1268 = vst.msk [vmem:[#allocation3 + $0x28] sm:$0xff] %vm1262_vm7, %v1177_v5  ;;  %v340_v5 = vmul.f32 %v2814_v16, %v301_v10 }
 0x129   : > { %1460 = vst.msk [vmem:[#allocation3 + $0x20] sm:$0xff] %vm1455_vm8, %v1368_v41  ;;  %1385 = vrot.lane.b32.xlu1 %v1886_v63, %s2829_s12  ;;  %v3609_v41 = vld [vmem:[#allocation2 + $0x111] sm:$0xff] }
 0x12a   : > { %1577 = vrot.lane.b32.xlu0 %v3166_v57, %s2830_s13  ;;  %v1696_v57 = vld [vmem:[#allocation2 + $0xd9] sm:$0xff] }
 0x12b   : > { %v1181_v42 = vpop.permute.xlu1 %1180 }
 0x12c   : > { %v1372_v51 = vpop.permute.xlu0 %1371  ;;  %1270 = vst.msk [vmem:[#allocation3 + $0x38] sm:$0xff] %vm1262_vm7, %v1181_v42 }
 0x12d   : > { %1462 = vst.msk [vmem:[#allocation3 + $0x30] sm:$0xff] %vm1455_vm8, %v1372_v51  ;;  %1389 = vrot.lane.b32.xlu1 %v1310_v14, %s2829_s12 }
 0x12e   : > { %1581 = vrot.lane.b32.xlu0 %v3184_v61, %s2830_s13 }
 0x12f   : > { %v1370_v43 = vpop.permute.xlu1 %1369 }
 0x130   : > { %v1562_v44 = vpop.permute.xlu0 %1561  ;;  %1461 = vst.msk [vmem:[#allocation3 + $0x28] sm:$0xff] %vm1455_vm8, %v1370_v43  ;;  %v2815_v43 = vld [vmem:[%s4245_s2] ss:$0 sm:$0xff] }
 0x131   : > { %1654 = vst.msk [vmem:[#allocation3 + $0x20] sm:$0xff] %vm1649_vm9, %v1562_v44  ;;  %1579 = vrot.lane.b32.xlu1 %v3168_v58, %s2830_s13  ;;  %v1697_v58 = vld [vmem:[#allocation2 + $0xe1] sm:$0xff] }
 0x132   : > { %1770 = vrot.lane.b32.xlu0 %v1116_v55, %s2831_s14 }
 0x133   : > { %v1374_v17 = vpop.permute.xlu1 %1373 }
 0x134   : > { %v1566_v2 = vpop.permute.xlu0 %1565  ;;  %1463 = vst.msk [vmem:[#allocation3 + $0x38] sm:$0xff] %vm1455_vm8, %v1374_v17 }
 0x135   : > { %1656 = vst.msk [vmem:[#allocation3 + $0x30] sm:$0xff] %vm1649_vm9, %v1566_v2  ;;  %1583 = vrot.lane.b32.xlu1 %v3186_v62, %s2830_s13 }
 0x136   : > { %1774 = vrot.lane.b32.xlu0 %v1696_v57, %s2831_s14 }
 0x137   : > { %v1564_v52 = vpop.permute.xlu1 %1563 }
 0x138   : > { %v1755_v19 = vpop.permute.xlu0 %1754  ;;  %1655 = vst.msk [vmem:[#allocation3 + $0x28] sm:$0xff] %vm1649_vm9, %v1564_v52  ;;  %v1894_v52 = vld [vmem:[#allocation2 + $0x112] sm:$0xff] }
 0x139   : > { %1847 = vst.msk [vmem:[#allocation3 + $0x20] sm:$0xff] %vm1842_vm10, %v1755_v19  ;;  %1772 = vrot.lane.b32.xlu1 %v1117_v9, %s2831_s14 }
 0x13a   : > { %1963 = vrot.lane.b32.xlu0 %v1309_v13, %s2832_s19 }
 0x13b   : > { %v1568_v21 = vpop.permute.xlu1 %1567 }
 0x13c   : > { %v1759_v59 = vpop.permute.xlu0 %1758  ;;  %1657 = vst.msk [vmem:[#allocation3 + $0x38] sm:$0xff] %vm1649_vm9, %v1568_v21 }
 0x13d   : > { %1849 = vst.msk [vmem:[#allocation3 + $0x30] sm:$0xff] %vm1842_vm10, %v1759_v59  ;;  %1776 = vrot.lane.b32.xlu1 %v1697_v58, %s2831_s14 }
 0x13e   : > { %1967 = vrot.lane.b32.xlu0 %v1889_v20, %s2832_s19 }
 0x13f   : > { %v1757_v38 = vpop.permute.xlu1 %1756 }
 0x140   : > { %v1948_v22 = vpop.permute.xlu0 %1947  ;;  %1848 = vst.msk [vmem:[#allocation3 + $0x28] sm:$0xff] %vm1842_vm10, %v1757_v38 }
 0x141   : > { %2040 = vst.msk [vmem:[#allocation3 + $0x20] sm:$0xff] %vm2035_vm11, %v1948_v22  ;;  %1965 = vrot.lane.b32.xlu1 %v1310_v14, %s2832_s19 }
 0x142   : > { %812 = vrot.lane.b32.xlu0 %v1309_v13, %s2826_s9 }
 0x143   : > { %v1761_v24 = vpop.permute.xlu1 %1760 }
 0x144   : > { %v1952_v53 = vpop.permute.xlu0 %1951  ;;  %1850 = vst.msk [vmem:[#allocation3 + $0x38] sm:$0xff] %vm1842_vm10, %v1761_v24 }
 0x145   : > { %2042 = vst.msk [vmem:[#allocation3 + $0x30] sm:$0xff] %vm2035_vm11, %v1952_v53  ;;  %1969 = vrot.lane.b32.xlu1 %v1890_v23, %s2832_s19 }
 0x146   : > { %816 = vrot.lane.b32.xlu0 %v1889_v20, %s2826_s9 }
 0x147   : > { %v1950_v25 = vpop.permute.xlu1 %1949 }
 0x148   : > { %v801_v28 = vpop.permute.xlu0 %800  ;;  %2041 = vst.msk [vmem:[#allocation3 + $0x28] sm:$0xff] %vm2035_vm11, %v1950_v25  ;;  %v2072_v54 = vld [vmem:[#allocation3 + $0x20] sm:$0xff] }
 0x149   : > { %887 = vst.msk [vmem:[#allocation3 + $0x50] sm:$0xff] %vm876_vm5, %v801_v28  ;;  %814 = vrot.lane.b32.xlu1 %v1310_v14, %s2826_s9  ;;  %v1893_v14 = vld [vmem:[#allocation2 + $0x10a] sm:$0xff] }
 0x14a   : > { %1005 = vrot.lane.b32.xlu0 %v3184_v61, %s2827_s10 }
 0x14b   : > { %v1954_v45 = vpop.permute.xlu1 %1953 }
 0x14c   : > { %v990_v47 = vpop.permute.xlu0 %989  ;;  %2043 = vst.msk [vmem:[#allocation3 + $0x38] sm:$0xff] %vm2035_vm11, %v1954_v45  ;;  %v2074_v61 = vld [vmem:[#allocation3 + $0x30] sm:$0xff] }
 0x14d   : > { %1078 = vst.msk [vmem:[#allocation3 + $0x40] sm:$0xff] %vm1069_vm6, %v990_v47  ;;  %818 = vrot.lane.b32.xlu1 %v1890_v23, %s2826_s9  ;;  %v1124_v47 = vld [vmem:[#allocation2 + $0x121] sm:$0xff] }
 0x14e   : > { %1009 = vrot.lane.b32.xlu0 %v3197_v3, %s2827_s10 }
 0x14f   : > { %v803_v29 = vpop.permute.xlu1 %802  ;;  %v2073_v60 = vld [vmem:[#allocation3 + $0x28] sm:$0xff] }
 0x150   : > { %v994_v30 = vpop.permute.xlu0 %993  ;;  %888 = vst.msk [vmem:[#allocation3 + $0x58] sm:$0xff] %vm876_vm5, %v803_v29  ;;  %v2102_v63 = vpack.c.bf16 %v2073_v60, %v2072_v54 }
 0x151   : > { %1080 = vst.msk [vmem:[#allocation3 + $0x50] sm:$0xff] %vm1069_vm6, %v994_v30  ;;  %1007 = vrot.lane.b32.xlu1 %v3186_v62, %s2827_s10 }
 0x152   : > { %1198 = vrot.lane.b32.xlu0 %v1696_v57, %s2828_s11  ;;  %2758 = vmatprep.mubr.msk.bf16.mxu0 %vm2136_vm12, %v2102_v63  ;;  %v379_v57 = vadd.f32 %v2815_v43, %v340_v5  ;;  %v1317_v63 = vld [vmem:[#allocation2 + $0x122] sm:$0xff] }
 0x153   : > { %v992_v27 = vpop.permute.xlu1 %991  ;;  %v2075_v48 = vld [vmem:[#allocation3 + $0x38] sm:$0xff] }
 0x154   : > { %v1183_v32 = vpop.permute.xlu0 %1182  ;;  %1079 = vst.msk [vmem:[#allocation3 + $0x48] sm:$0xff] %vm1069_vm6, %v992_v27  ;;  %v2103_v33 = vpack.c.bf16 %v2075_v48, %v2074_v61 }
 0x155   : > { %1271 = vst.msk [vmem:[#allocation3 + $0x40] sm:$0xff] %vm1262_vm7, %v1183_v32  ;;  %1011 = vrot.lane.b32.xlu1 %v3199_v4, %s2827_s10  ;;  %v1318_v32 = vld [vmem:[#allocation2 + $0x12a] sm:$0xff] }
 0x156   : > { %1202 = vrot.lane.b32.xlu0 %v1120_v31, %s2828_s11  ;;  %2759 = vmatmul.mubr.msk.bf16.gmra.mxu0 %vm2136_vm12, %v2103_v33  ;;  %458 = vst.msk [vmem:[#allocation2 + $0x189] sm:$0xff] %vm380_vm0, %v379_v57  ;;  %v1128_v57 = vld [vmem:[#allocation2 + $0x151] sm:$0xff] }
 0x157   : > { %v996_v62 = vpop.permute.xlu1 %995 }
 0x158   : > { %v1187_v40 = vpop.permute.xlu0 %1186  ;;  %1081 = vst.msk [vmem:[#allocation3 + $0x58] sm:$0xff] %vm1069_vm6, %v996_v62 }
 0x159   : > { %1273 = vst.msk [vmem:[#allocation3 + $0x50] sm:$0xff] %vm1262_vm7, %v1187_v40  ;;  %1200 = vrot.lane.b32.xlu1 %v1697_v58, %s2828_s11 }
 0x15a   : > { %1391 = vrot.lane.b32.xlu0 %v1889_v20, %s2829_s12 }
 0x15b   : > { %v1185_v36 = vpop.permute.xlu1 %1184 }
 0x15c   : > { %v1376_v55 = vpop.permute.xlu0 %1375  ;;  %1272 = vst.msk [vmem:[#allocation3 + $0x48] sm:$0xff] %vm1262_vm7, %v1185_v36 }
 0x15d   : > { %1464 = vst.msk [vmem:[#allocation3 + $0x40] sm:$0xff] %vm1455_vm8, %v1376_v55  ;;  %1204 = vrot.lane.b32.xlu1 %v1121_v34, %s2828_s11 }
 0x15e   : > { %1395 = vrot.lane.b32.xlu0 %v1313_v35, %s2829_s12 }
 0x15f   : > { %v1189_v49 = vpop.permute.xlu1 %1188 }
 0x160   : > { %v1380_v37 = vpop.permute.xlu0 %1379  ;;  %1274 = vst.msk [vmem:[#allocation3 + $0x58] sm:$0xff] %vm1262_vm7, %v1189_v49  ;;  %v1897_v49 = vld [vmem:[#allocation2 + $0x13a] sm:$0xff] }
 0x161   : > { %1466 = vst.msk [vmem:[#allocation3 + $0x50] sm:$0xff] %vm1455_vm8, %v1380_v37  ;;  %1393 = vrot.lane.b32.xlu1 %v1890_v23, %s2829_s12 }
 0x162   : > { %1585 = vrot.lane.b32.xlu0 %v3197_v3, %s2830_s13  ;;  %v3592_v3 = vld [vmem:[#allocation2 + $0x109] sm:$0xff] }
 0x163   : > { %v1378_v0 = vpop.permute.xlu1 %1377 }
 0x164   : > { %v1570_v39 = vpop.permute.xlu0 %1569  ;;  %1465 = vst.msk [vmem:[#allocation3 + $0x48] sm:$0xff] %vm1455_vm8, %v1378_v0 }
 0x165   : > { %1658 = vst.msk [vmem:[#allocation3 + $0x40] sm:$0xff] %vm1649_vm9, %v1570_v39  ;;  %1397 = vrot.lane.b32.xlu1 %v1314_v1, %s2829_s12  ;;  %v1898_v39 = vld [vmem:[#allocation2 + $0x142] sm:$0xff] }
 0x166   : > { %1589 = vrot.lane.b32.xlu0 %v3210_v7, %s2830_s13 }
 0x167   : > { %v1382_v50 = vpop.permute.xlu1 %1381 }
 0x168   : > { %v1574_v56 = vpop.permute.xlu0 %1573  ;;  %1467 = vst.msk [vmem:[#allocation3 + $0x58] sm:$0xff] %vm1455_vm8, %v1382_v50 }
 0x169   : > { %1660 = vst.msk [vmem:[#allocation3 + $0x50] sm:$0xff] %vm1649_vm9, %v1574_v56  ;;  %1587 = vrot.lane.b32.xlu1 %v3199_v4, %s2830_s13  ;;  %v300_v4 = vld [vmem:[%s2941_s29 + $0xf0] sm:$0xff] }
 0x16a   : > { %1778 = vrot.lane.b32.xlu0 %v1120_v31, %s2831_s14  ;;  %v339_v26 = vmul.f32 %v2814_v16, %v300_v4 }
 0x16b   : > { %v1572_v6 = vpop.permute.xlu1 %1571 }
 0x16c   : > { %v1763_v9 = vpop.permute.xlu0 %1762  ;;  %1659 = vst.msk [vmem:[#allocation3 + $0x48] sm:$0xff] %vm1649_vm9, %v1572_v6  ;;  %v378_v44 = vadd.f32 %v2815_v43, %v339_v26 }
 0x16d   : > { %1851 = vst.msk [vmem:[#allocation3 + $0x40] sm:$0xff] %vm1842_vm10, %v1763_v9  ;;  %1591 = vrot.lane.b32.xlu1 %v3212_v8, %s2830_s13 }
 0x16e   : > { %1782 = vrot.lane.b32.xlu0 %v3592_v3, %s2831_s14  ;;  %457 = vst.msk [vmem:[#allocation2 + $0x181] sm:$0xff] %vm380_vm0, %v378_v44  ;;  %v936_v44 = vld [vmem:[#allocation2 + $0x158] sm:$0xff] }
 0x16f   : > { %v1576_v13 = vpop.permute.xlu1 %1575 }
 0x170   : > { %v1767_v46 = vpop.permute.xlu0 %1766  ;;  %1661 = vst.msk [vmem:[#allocation3 + $0x58] sm:$0xff] %vm1649_vm9, %v1576_v13 }
 0x171   : > { %1853 = vst.msk [vmem:[#allocation3 + $0x50] sm:$0xff] %vm1842_vm10, %v1767_v46  ;;  %1780 = vrot.lane.b32.xlu1 %v1121_v34, %s2831_s14  ;;  %v935_v46 = vld [vmem:[#allocation2 + $0x150] sm:$0xff] }
 0x172   : > { %1971 = vrot.lane.b32.xlu0 %v1313_v35, %s2832_s19 }
 0x173   : > { %v1765_v42 = vpop.permute.xlu1 %1764 }
 0x174   : > { %v1956_v51 = vpop.permute.xlu0 %1955  ;;  %1852 = vst.msk [vmem:[#allocation3 + $0x48] sm:$0xff] %vm1842_vm10, %v1765_v42 }
 0x175   : > { %2044 = vst.msk [vmem:[#allocation3 + $0x40] sm:$0xff] %vm2035_vm11, %v1956_v51  ;;  %1784 = vrot.lane.b32.xlu1 %v3609_v41, %s2831_s14 }
 0x176   : > { %1975 = vrot.lane.b32.xlu0 %v1893_v14, %s2832_s19 }
 0x177   : > { %v1769_v17 = vpop.permute.xlu1 %1768 }
 0x178   : > { %v1960_v2 = vpop.permute.xlu0 %1959  ;;  %1854 = vst.msk [vmem:[#allocation3 + $0x58] sm:$0xff] %vm1842_vm10, %v1769_v17 }
 0x179   : > { %2046 = vst.msk [vmem:[#allocation3 + $0x50] sm:$0xff] %vm2035_vm11, %v1960_v2  ;;  %1973 = vrot.lane.b32.xlu1 %v1314_v1, %s2832_s19 }
 0x17a   : > { %820 = vrot.lane.b32.xlu0 %v1313_v35, %s2826_s9 }
 0x17b   : > { %v1958_v19 = vpop.permute.xlu1 %1957 }
 0x17c   : > { %v805_v58 = vpop.permute.xlu0 %804  ;;  %2045 = vst.msk [vmem:[#allocation3 + $0x48] sm:$0xff] %vm2035_vm11, %v1958_v19  ;;  %v2076_v59 = vld [vmem:[#allocation3 + $0x40] sm:$0xff] }
 0x17d   : > { %889 = vst.msk [vmem:[#allocation3 + $0x60] sm:$0xff] %vm876_vm5, %v805_v58  ;;  %1977 = vrot.lane.b32.xlu1 %v1894_v52, %s2832_s19  ;;  %v1129_v58 = vld [vmem:[#allocation2 + $0x159] sm:$0xff] }
 0x17e   : > { %824 = vrot.lane.b32.xlu0 %v1893_v14, %s2826_s9 }
 0x17f   : > { %v1962_v20 = vpop.permute.xlu1 %1961 }
 0x180   : > { %v809_v21 = vpop.permute.xlu0 %808  ;;  %2047 = vst.msk [vmem:[#allocation3 + $0x58] sm:$0xff] %vm2035_vm11, %v1962_v20  ;;  %v2078_v53 = vld [vmem:[#allocation3 + $0x50] sm:$0xff]  ;;  %v1321_v20 = vld [vmem:[#allocation2 + $0x152] sm:$0xff] }
 0x181   : > { %891 = vst.msk [vmem:[#allocation3 + $0x70] sm:$0xff] %vm876_vm5, %v809_v21  ;;  %822 = vrot.lane.b32.xlu1 %v1314_v1, %s2826_s9 }
 0x182   : > { %1013 = vrot.lane.b32.xlu0 %v3210_v7, %s2827_s10 }
 0x183   : > { %v807_v38 = vpop.permute.xlu1 %806  ;;  %v2077_v22 = vld [vmem:[#allocation3 + $0x48] sm:$0xff] }
 0x184   : > { %v998_v23 = vpop.permute.xlu0 %997  ;;  %890 = vst.msk [vmem:[#allocation3 + $0x68] sm:$0xff] %vm876_vm5, %v807_v38  ;;  %v2104_v24 = vpack.c.bf16 %v2077_v22, %v2076_v59 }
 0x185   : > { %1082 = vst.msk [vmem:[#allocation3 + $0x60] sm:$0xff] %vm1069_vm6, %v998_v23  ;;  %826 = vrot.lane.b32.xlu1 %v1894_v52, %s2826_s9  ;;  %v3727_v23 = vld [vmem:[#allocation2 + $0x15a] sm:$0xff] }
 0x186   : > { %1017 = vrot.lane.b32.xlu0 %v3220_v11, %s2827_s10  ;;  %2762 = vmatprep.mubr.msk.bf16.mxu0 %vm2136_vm12, %v2104_v24  ;;  %v3729_v24 = vld [vmem:[#allocation2 + $0x168] sm:$0xff] }
 0x187   : > { %v811_v25 = vpop.permute.xlu1 %810  ;;  %v2079_v28 = vld [vmem:[#allocation3 + $0x58] sm:$0xff] }
 0x188   : > { %v1002_v45 = vpop.permute.xlu0 %1001  ;;  %892 = vst.msk [vmem:[#allocation3 + $0x78] sm:$0xff] %vm876_vm5, %v811_v25  ;;  %v2105_v7 = vpack.c.bf16 %v2079_v28, %v2078_v53 }
 0x189   : > { %1084 = vst.msk [vmem:[#allocation3 + $0x70] sm:$0xff] %vm1069_vm6, %v1002_v45  ;;  %1015 = vrot.lane.b32.xlu1 %v3212_v8, %s2827_s10  ;;  %v1125_v8 = vld [vmem:[#allocation2 + $0x129] sm:$0xff] }
 0x18a   : > { %1206 = vrot.lane.b32.xlu0 %v3592_v3, %s2828_s11  ;;  %2763 = vmatmul.mubr.msk.bf16.gmra.mxu0 %vm2136_vm12, %v2105_v7  ;;  %v933_v3 = vld [vmem:[#allocation2 + $0x138] sm:$0xff]  ;;  %v3741_v7 = vld [vmem:[#allocation2 + $0x170] sm:$0xff] }
 0x18b   : > { %v1000_v54 = vpop.permute.xlu1 %999 }
 0x18c   : > { %v1191_v29 = vpop.permute.xlu0 %1190  ;;  %1083 = vst.msk [vmem:[#allocation3 + $0x68] sm:$0xff] %vm1069_vm6, %v1000_v54 }
 0x18d   : > { %1275 = vst.msk [vmem:[#allocation3 + $0x60] sm:$0xff] %vm1262_vm7, %v1191_v29  ;;  %1019 = vrot.lane.b32.xlu1 %v3222_v12, %s2827_s10 }
 0x18e   : > { %1210 = vrot.lane.b32.xlu0 %v1124_v47, %s2828_s11 }
 0x18f   : > { %v1004_v60 = vpop.permute.xlu1 %1003 }
 0x190   : > { %v1195_v30 = vpop.permute.xlu0 %1194  ;;  %1085 = vst.msk [vmem:[#allocation3 + $0x78] sm:$0xff] %vm1069_vm6, %v1004_v60 }
 0x191   : > { %1277 = vst.msk [vmem:[#allocation3 + $0x70] sm:$0xff] %vm1262_vm7, %v1195_v30  ;;  %1208 = vrot.lane.b32.xlu1 %v3609_v41, %s2828_s11  ;;  %v934_v41 = vld [vmem:[#allocation2 + $0x140] sm:$0xff] }
 0x192   : > { %1399 = vrot.lane.b32.xlu0 %v1893_v14, %s2829_s12 }
 0x193   : > { %v1193_v61 = vpop.permute.xlu1 %1192 }
 0x194   : > { %v1384_v31 = vpop.permute.xlu0 %1383  ;;  %1276 = vst.msk [vmem:[#allocation3 + $0x68] sm:$0xff] %vm1262_vm7, %v1193_v61 }
 0x195   : > { %1468 = vst.msk [vmem:[#allocation3 + $0x60] sm:$0xff] %vm1455_vm8, %v1384_v31  ;;  %1212 = vrot.lane.b32.xlu1 %v1125_v8, %s2828_s11 }
 0x196   : > { %1403 = vrot.lane.b32.xlu0 %v1317_v63, %s2829_s12 }
 0x197   : > { %v1197_v27 = vpop.permute.xlu1 %1196 }
 0x198   : > { %v1388_v48 = vpop.permute.xlu0 %1387  ;;  %1278 = vst.msk [vmem:[#allocation3 + $0x78] sm:$0xff] %vm1262_vm7, %v1197_v27 }
 0x199   : > { %1470 = vst.msk [vmem:[#allocation3 + $0x70] sm:$0xff] %vm1455_vm8, %v1388_v48  ;;  %1401 = vrot.lane.b32.xlu1 %v1894_v52, %s2829_s12 }
 0x19a   : > { %1593 = vrot.lane.b32.xlu0 %v3220_v11, %s2830_s13  ;;  %v1704_v11 = vld [vmem:[#allocation2 + $0x139] sm:$0xff] }
 0x19b   : > { %v1386_v33 = vpop.permute.xlu1 %1385 }
 0x19c   : > { %v1578_v62 = vpop.permute.xlu0 %1577  ;;  %1469 = vst.msk [vmem:[#allocation3 + $0x68] sm:$0xff] %vm1455_vm8, %v1386_v33 }
 0x19d   : > { %1662 = vst.msk [vmem:[#allocation3 + $0x60] sm:$0xff] %vm1649_vm9, %v1578_v62  ;;  %1405 = vrot.lane.b32.xlu1 %v1318_v32, %s2829_s12 }
 0x19e   : > { %1597 = vrot.lane.b32.xlu0 %v3230_v15, %s2830_s13 }
 0x19f   : > { %v1390_v40 = vpop.permute.xlu1 %1389 }
 0x1a0   : > { %v1582_v34 = vpop.permute.xlu0 %1581  ;;  %1471 = vst.msk [vmem:[#allocation3 + $0x78] sm:$0xff] %vm1455_vm8, %v1390_v40  ;;  %v3789_v40 = vld [vmem:[#allocation2 + $0x172] sm:$0xff] }
 0x1a1   : > { %1664 = vst.msk [vmem:[#allocation3 + $0x70] sm:$0xff] %vm1649_vm9, %v1582_v34  ;;  %1595 = vrot.lane.b32.xlu1 %v3222_v12, %s2830_s13  ;;  %v1705_v12 = vld [vmem:[#allocation2 + $0x141] sm:$0xff] }
 0x1a2   : > { %1786 = vrot.lane.b32.xlu0 %v1124_v47, %s2831_s14  ;;  %v3743_v47 = vld [vmem:[#allocation2 + $0x169] sm:$0xff] }
 0x1a3   : > { %v1580_v35 = vpop.permute.xlu1 %1579 }
 0x1a4   : > { %v1771_v36 = vpop.permute.xlu0 %1770  ;;  %1663 = vst.msk [vmem:[#allocation3 + $0x68] sm:$0xff] %vm1649_vm9, %v1580_v35 }
 0x1a5   : > { %1855 = vst.msk [vmem:[#allocation3 + $0x60] sm:$0xff] %vm1842_vm10, %v1771_v36  ;;  %1599 = vrot.lane.b32.xlu1 %v3232_v18, %s2830_s13 }
 0x1a6   : > { %1790 = vrot.lane.b32.xlu0 %v1704_v11, %s2831_s14 }
 0x1a7   : > { %v1584_v15 = vpop.permute.xlu1 %1583 }
 0x1a8   : > { %v1775_v55 = vpop.permute.xlu0 %1774  ;;  %1665 = vst.msk [vmem:[#allocation3 + $0x78] sm:$0xff] %vm1649_vm9, %v1584_v15 }
 0x1a9   : > { %1857 = vst.msk [vmem:[#allocation3 + $0x70] sm:$0xff] %vm1842_vm10, %v1775_v55  ;;  %1788 = vrot.lane.b32.xlu1 %v1125_v8, %s2831_s14  ;;  %v3755_v8 = vld [vmem:[#allocation2 + $0x171] sm:$0xff] }
 0x1aa   : > { %1979 = vrot.lane.b32.xlu0 %v1317_v63, %s2832_s19 }
 0x1ab   : > { %v1773_v37 = vpop.permute.xlu1 %1772 }
 0x1ac   : > { %v1964_v1 = vpop.permute.xlu0 %1963  ;;  %1856 = vst.msk [vmem:[#allocation3 + $0x68] sm:$0xff] %vm1842_vm10, %v1773_v37 }
 0x1ad   : > { %2048 = vst.msk [vmem:[#allocation3 + $0x60] sm:$0xff] %vm2035_vm11, %v1964_v1  ;;  %1792 = vrot.lane.b32.xlu1 %v1705_v12, %s2831_s14 }
 0x1ae   : > { %1983 = vrot.lane.b32.xlu0 %v1897_v49, %s2832_s19 }
 0x1af   : > { %v1777_v18 = vpop.permute.xlu1 %1776 }
 0x1b0   : > { %v1968_v0 = vpop.permute.xlu0 %1967  ;;  %1858 = vst.msk [vmem:[#allocation3 + $0x78] sm:$0xff] %vm1842_vm10, %v1777_v18 }
 0x1b1   : > { %2050 = vst.msk [vmem:[#allocation3 + $0x70] sm:$0xff] %vm2035_vm11, %v1968_v0  ;;  %1981 = vrot.lane.b32.xlu1 %v1318_v32, %s2832_s19 }
 0x1b2   : > { %828 = vrot.lane.b32.xlu0 %v1317_v63, %s2826_s9  ;;  %v3757_v63 = vld [vmem:[#allocation2 + $0x16a] sm:$0xff] }
 0x1b3   : > { %v1966_v50 = vpop.permute.xlu1 %1965 }
 0x1b4   : > { %v813_v56 = vpop.permute.xlu0 %812  ;;  %2049 = vst.msk [vmem:[#allocation3 + $0x68] sm:$0xff] %vm2035_vm11, %v1966_v50  ;;  %v2080_v13 = vld [vmem:[#allocation3 + $0x60] sm:$0xff] }
 0x1b5   : > { %893 = vst.msk [vmem:[#allocation3 + $0x80] sm:$0xff] %vm876_vm5, %v813_v56  ;;  %1985 = vrot.lane.b32.xlu1 %v1898_v39, %s2832_s19 }
 0x1b6   : > { %832 = vrot.lane.b32.xlu0 %v1897_v49, %s2826_s9 }
 0x1b7   : > { %v1970_v6 = vpop.permute.xlu1 %1969 }
 0x1b8   : > { %v817_v9 = vpop.permute.xlu0 %816  ;;  %2051 = vst.msk [vmem:[#allocation3 + $0x78] sm:$0xff] %vm2035_vm11, %v1970_v6  ;;  %v2082_v5 = vld [vmem:[#allocation3 + $0x70] sm:$0xff]  ;;  %v940_v6 = vld [vmem:[#allocation2 + $0x188] sm:$0xff] }
 0x1b9   : > { %895 = vst.msk [vmem:[#allocation3 + $0x90] sm:$0xff] %vm876_vm5, %v817_v9  ;;  %830 = vrot.lane.b32.xlu1 %v1318_v32, %s2826_s9  ;;  %v1132_v9 = vld [vmem:[#allocation2 + $0x181] sm:$0xff] }
 0x1ba   : > { %1021 = vrot.lane.b32.xlu0 %v933_v3, %s2827_s10 }
 0x1bb   : > { %v815_v4 = vpop.permute.xlu1 %814  ;;  %v2081_v10 = vld [vmem:[#allocation3 + $0x68] sm:$0xff] }
 0x1bc   : > { %v1006_v16 = vpop.permute.xlu0 %1005  ;;  %894 = vst.msk [vmem:[#allocation3 + $0x88] sm:$0xff] %vm876_vm5, %v815_v4  ;;  %v2106_v26 = vpack.c.bf16 %v2081_v10, %v2080_v13 }
 0x1bd   : > { %1086 = vst.msk [vmem:[#allocation3 + $0x80] sm:$0xff] %vm1069_vm6, %v1006_v16  ;;  %834 = vrot.lane.b32.xlu1 %v1898_v39, %s2826_s9  ;;  %v1133_v16 = vld [vmem:[#allocation2 + $0x189] sm:$0xff] }
 0x1be   : > { %1025 = vrot.lane.b32.xlu0 %v935_v46, %s2827_s10  ;;  %2766 = vmatprep.mubr.msk.bf16.mxu0 %vm2136_vm12, %v2106_v26  ;;  %v1325_v26 = vld [vmem:[#allocation2 + $0x182] sm:$0xff] }
 0x1bf   : > { %v819_v14 = vpop.permute.xlu1 %818  ;;  %v2083_v42 = vld [vmem:[#allocation3 + $0x78] sm:$0xff] }
 0x1c0   : > { %v1010_v51 = vpop.permute.xlu0 %1009  ;;  %896 = vst.msk [vmem:[#allocation3 + $0x98] sm:$0xff] %vm876_vm5, %v819_v14  ;;  %v2107_v43 = vpack.c.bf16 %v2083_v42, %v2082_v5 }
 0x1c1   : > { %1088 = vst.msk [vmem:[#allocation3 + $0x90] sm:$0xff] %vm1069_vm6, %v1010_v51  ;;  %1023 = vrot.lane.b32.xlu1 %v934_v41, %s2827_s10  ;;  %v1326_v51 = vld [vmem:[#allocation2 + $0x18a] sm:$0xff] }
 0x1c2   : > { %1214 = vrot.lane.b32.xlu0 %v1704_v11, %s2828_s11  ;;  %2767 = vmatmul.mubr.msk.bf16.gmra.mxu0 %vm2136_vm12, %v2107_v43  ;;  %v1519_v43 = vld [vmem:[#allocation2 + $0x198] sm:$0xff] }
 0x1c3   : > { %v1008_v17 = vpop.permute.xlu1 %1007 }
 0x1c4   : > { %v1199_v2 = vpop.permute.xlu0 %1198  ;;  %1087 = vst.msk [vmem:[#allocation3 + $0x88] sm:$0xff] %vm1069_vm6, %v1008_v17 }
 0x1c5   : > { %1279 = vst.msk [vmem:[#allocation3 + $0x80] sm:$0xff] %vm1262_vm7, %v1199_v2  ;;  %1027 = vrot.lane.b32.xlu1 %v936_v44, %s2827_s10 }
 0x1c6   : > { %1218 = vrot.lane.b32.xlu0 %v1128_v57, %s2828_s11 }
 0x1c7   : > { %v1012_v52 = vpop.permute.xlu1 %1011 }
 0x1c8   : > { %v1203_v19 = vpop.permute.xlu0 %1202  ;;  %1089 = vst.msk [vmem:[#allocation3 + $0x98] sm:$0xff] %vm1069_vm6, %v1012_v52  ;;  %v1520_v52 = vld [vmem:[#allocation2 + $0x1a0] sm:$0xff] }
 0x1c9   : > { %1281 = vst.msk [vmem:[#allocation3 + $0x90] sm:$0xff] %vm1262_vm7, %v1203_v19  ;;  %1216 = vrot.lane.b32.xlu1 %v1705_v12, %s2828_s11  ;;  %v939_v12 = vld [vmem:[#allocation2 + $0x180] sm:$0xff] }
 0x1ca   : > { %1407 = vrot.lane.b32.xlu0 %v1897_v49, %s2829_s12  ;;  %v1712_v19 = vld [vmem:[#allocation2 + $0x199] sm:$0xff] }
 0x1cb   : > { %v1201_v21 = vpop.permute.xlu1 %1200 }
 0x1cc   : > { %v1392_v59 = vpop.permute.xlu0 %1391  ;;  %1280 = vst.msk [vmem:[#allocation3 + $0x88] sm:$0xff] %vm1262_vm7, %v1201_v21 }
 0x1cd   : > { %1472 = vst.msk [vmem:[#allocation3 + $0x80] sm:$0xff] %vm1455_vm8, %v1392_v59  ;;  %1220 = vrot.lane.b32.xlu1 %v1129_v58, %s2828_s11 }
 0x1ce   : > { %1411 = vrot.lane.b32.xlu0 %v1321_v20, %s2829_s12 }
 0x1cf   : > { %v1205_v38 = vpop.permute.xlu1 %1204 }
 0x1d0   : > { %v1396_v22 = vpop.permute.xlu0 %1395  ;;  %1282 = vst.msk [vmem:[#allocation3 + $0x98] sm:$0xff] %vm1262_vm7, %v1205_v38 }
 0x1d1   : > { %1474 = vst.msk [vmem:[#allocation3 + $0x90] sm:$0xff] %vm1455_vm8, %v1396_v22  ;;  %1409 = vrot.lane.b32.xlu1 %v1898_v39, %s2829_s12 }
 0x1d2   : > { %1601 = vrot.lane.b32.xlu0 %v935_v46, %s2830_s13 }
 0x1d3   : > { %v1394_v53 = vpop.permute.xlu1 %1393 }
 0x1d4   : > { %v1586_v25 = vpop.permute.xlu0 %1585  ;;  %1473 = vst.msk [vmem:[#allocation3 + $0x88] sm:$0xff] %vm1455_vm8, %v1394_v53  ;;  %v1905_v53 = vld [vmem:[#allocation2 + $0x19a] sm:$0xff] }
 0x1d5   : > { %1666 = vst.msk [vmem:[#allocation3 + $0x80] sm:$0xff] %vm1649_vm9, %v1586_v25  ;;  %1413 = vrot.lane.b32.xlu1 %v3727_v23, %s2829_s12 }
 0x1d6   : > { %1605 = vrot.lane.b32.xlu0 %v3729_v24, %s2830_s13 }
 0x1d7   : > { %v1398_v28 = vpop.permute.xlu1 %1397 }
 0x1d8   : > { %v1590_v45 = vpop.permute.xlu0 %1589  ;;  %1475 = vst.msk [vmem:[#allocation3 + $0x98] sm:$0xff] %vm1455_vm8, %v1398_v28 }
 0x1d9   : > { %1668 = vst.msk [vmem:[#allocation3 + $0x90] sm:$0xff] %vm1649_vm9, %v1590_v45  ;;  %1603 = vrot.lane.b32.xlu1 %v936_v44, %s2830_s13 }
 0x1da   : > { %1794 = vrot.lane.b32.xlu0 %v1128_v57, %s2831_s14 }
 0x1db   : > { %v1588_v54 = vpop.permute.xlu1 %1587 }
 0x1dc   : > { %v1779_v29 = vpop.permute.xlu0 %1778  ;;  %1667 = vst.msk [vmem:[#allocation3 + $0x88] sm:$0xff] %vm1649_vm9, %v1588_v54  ;;  %v1906_v54 = vld [vmem:[#allocation2 + $0x1a2] sm:$0xff] }
 0x1dd   : > { %1859 = vst.msk [vmem:[#allocation3 + $0x80] sm:$0xff] %vm1842_vm10, %v1779_v29  ;;  %1607 = vrot.lane.b32.xlu1 %v3741_v7, %s2830_s13 }
 0x1de   : > { %1798 = vrot.lane.b32.xlu0 %v3743_v47, %s2831_s14 }
 0x1df   : > { %v1592_v60 = vpop.permute.xlu1 %1591 }
 0x1e0   : > { %v1783_v30 = vpop.permute.xlu0 %1782  ;;  %1669 = vst.msk [vmem:[#allocation3 + $0x98] sm:$0xff] %vm1649_vm9, %v1592_v60 }
 0x1e1   : > { %1861 = vst.msk [vmem:[#allocation3 + $0x90] sm:$0xff] %vm1842_vm10, %v1783_v30  ;;  %1796 = vrot.lane.b32.xlu1 %v1129_v58, %s2831_s14 }
 0x1e2   : > { %1987 = vrot.lane.b32.xlu0 %v1321_v20, %s2832_s19 }
 0x1e3   : > { %v1781_v61 = vpop.permute.xlu1 %1780 }
 0x1e4   : > { %v1972_v31 = vpop.permute.xlu0 %1971  ;;  %1860 = vst.msk [vmem:[#allocation3 + $0x88] sm:$0xff] %vm1842_vm10, %v1781_v61 }
 0x1e5   : > { %2052 = vst.msk [vmem:[#allocation3 + $0x80] sm:$0xff] %vm2035_vm11, %v1972_v31  ;;  %1800 = vrot.lane.b32.xlu1 %v3755_v8, %s2831_s14 }
 0x1e6   : > { %1991 = vrot.lane.b32.xlu0 %v3757_v63, %s2832_s19  ;;  %v3772_v27 = vpop.f32.mrf.mxu0 }
 0x1e7   : > { %2353 = vst.msk [vmem:[%s3765_s7 + $0x10] sm:$0xff] %vm2350_vm13, %v3772_v27  ;;  %v1785_v48 = vpop.permute.xlu1 %1784 }
 0x1e8   : > { %v1976_v32 = vpop.permute.xlu0 %1975  ;;  %1862 = vst.msk [vmem:[#allocation3 + $0x98] sm:$0xff] %vm1842_vm10, %v1785_v48  ;;  %v3778_v33 = vpop.f32.mrf.mxu0 }
 0x1e9   : > { %2054 = vst.msk [vmem:[#allocation3 + $0x90] sm:$0xff] %vm2035_vm11, %v1976_v32  ;;  %1989 = vrot.lane.b32.xlu1 %v3727_v23, %s2832_s19 }
 0x1ea   : > { %2351 = vst.msk [vmem:[%s3765_s7] sm:$0xff] %vm2350_vm13, %v3778_v33  ;;  %836 = vrot.lane.b32.xlu0 %v1321_v20, %s2826_s9  ;;  %v3787_v62 = vpop.f32.mrf.mxu0 }
 0x1eb   : > { %2354 = vst.msk [vmem:[%s3765_s7 + $0x18] sm:$0xff] %vm2350_vm13, %v3787_v62  ;;  %v1974_v34 = vpop.permute.xlu1 %1973 }
 0x1ec   : > { %v821_v11 = vpop.permute.xlu0 %820  ;;  %2053 = vst.msk [vmem:[#allocation3 + $0x88] sm:$0xff] %vm2035_vm11, %v1974_v34  ;;  %v3795_v35 = vpop.f32.mrf.mxu0  ;;  %v2084_v55 = vld [vmem:[#allocation3 + $0x80] sm:$0xff] }
 0x1ed   : > { %897 = vst.msk [vmem:[#allocation3 + $0xa0] sm:$0xff] %vm876_vm5, %v821_v11  ;;  %1993 = vrot.lane.b32.xlu1 %v3789_v40, %s2832_s19 }
 0x1ee   : > { %2352 = vst.msk [vmem:[%s3765_s7 + $0x8] sm:$0xff] %vm2350_vm13, %v3795_v35  ;;  %840 = vrot.lane.b32.xlu0 %v3757_v63, %s2826_s9 }
 0x1ef   : > { %v1978_v36 = vpop.permute.xlu1 %1977 }
 0x1f0   : > { %v825_v15 = vpop.permute.xlu0 %824  ;;  %2055 = vst.msk [vmem:[#allocation3 + $0x98] sm:$0xff] %vm2035_vm11, %v1978_v36  ;;  %v2086_v0 = vld [vmem:[#allocation3 + $0x90] sm:$0xff] }
 0x1f1   : > { %899 = vst.msk [vmem:[#allocation3 + $0xb0] sm:$0xff] %vm876_vm5, %v825_v15  ;;  %838 = vrot.lane.b32.xlu1 %v3727_v23, %s2826_s9 }
 0x1f2   : > { %1029 = vrot.lane.b32.xlu0 %v3729_v24, %s2827_s10  ;;  %v1713_v24 = vld [vmem:[#allocation2 + $0x1a1] sm:$0xff] }
 0x1f3   : > { %v823_v49 = vpop.permute.xlu1 %822  ;;  %v2085_v37 = vld [vmem:[#allocation3 + $0x88] sm:$0xff] }
 0x1f4   : > { %v1014_v1 = vpop.permute.xlu0 %1013  ;;  %898 = vst.msk [vmem:[#allocation3 + $0xa8] sm:$0xff] %vm876_vm5, %v823_v49  ;;  %v2108_v18 = vpack.c.bf16 %v2085_v37, %v2084_v55 }
 0x1f5   : > { %1090 = vst.msk [vmem:[#allocation3 + $0xa0] sm:$0xff] %vm1069_vm6, %v1014_v1  ;;  %842 = vrot.lane.b32.xlu1 %v3789_v40, %s2826_s9  ;;  %s265_s9 = scalar_lea.vmem %s4248_s5, %s4252_s22 }
 0x1f6   : > { %1033 = vrot.lane.b32.xlu0 %v939_v12, %s2827_s10  ;;  %2770 = vmatprep.mubr.msk.bf16.mxu1 %vm2136_vm12, %v2108_v18 }
 0x1f7   : > { %v827_v39 = vpop.permute.xlu1 %826  ;;  %v2087_v50 = vld [vmem:[#allocation3 + $0x98] sm:$0xff] }
 0x1f8   : > { %v1018_v56 = vpop.permute.xlu0 %1017  ;;  %900 = vst.msk [vmem:[#allocation3 + $0xb8] sm:$0xff] %vm876_vm5, %v827_v39  ;;  %v2109_v3 = vpack.c.bf16 %v2087_v50, %v2086_v0 }
 0x1f9   : > { %1092 = vst.msk [vmem:[#allocation3 + $0xb0] sm:$0xff] %vm1069_vm6, %v1018_v56  ;;  %1031 = vrot.lane.b32.xlu1 %v3741_v7, %s2827_s10 }
 0x1fa   : > { %1222 = vrot.lane.b32.xlu0 %v3743_v47, %s2828_s11  ;;  %2771 = vmatmul.mubr.msk.bf16.vlgmr.msra.gmra.mxu1 %vm2136_vm12, %v2109_v3 }
 0x1fb   : > { %v1016_v13 = vpop.permute.xlu1 %1015 }
 0x1fc   : > { %v1207_v46 = vpop.permute.xlu0 %1206  ;;  %1091 = vst.msk [vmem:[#allocation3 + $0xa8] sm:$0xff] %vm1069_vm6, %v1016_v13 }
 0x1fd   : > { %1283 = vst.msk [vmem:[#allocation3 + $0xa0] sm:$0xff] %vm1262_vm7, %v1207_v46  ;;  %1035 = vrot.lane.b32.xlu1 %v940_v6, %s2827_s10 }
 0x1fe   : > { %1226 = vrot.lane.b32.xlu0 %v1132_v9, %s2828_s11 }
 0x1ff   : > { %v1020_v4 = vpop.permute.xlu1 %1019 }
 0x200   : > { %v1211_v10 = vpop.permute.xlu0 %1210  ;;  %1093 = vst.msk [vmem:[#allocation3 + $0xb8] sm:$0xff] %vm1069_vm6, %v1020_v4 }
 0x201   : > { %1285 = vst.msk [vmem:[#allocation3 + $0xb0] sm:$0xff] %vm1262_vm7, %v1211_v10  ;;  %1224 = vrot.lane.b32.xlu1 %v3755_v8, %s2828_s11 }
 0x202   : > { %1415 = vrot.lane.b32.xlu0 %v3757_v63, %s2829_s12 }
 0x203   : > { %v1209_v5 = vpop.permute.xlu1 %1208 }
 0x204   : > { %v1400_v41 = vpop.permute.xlu0 %1399  ;;  %1284 = vst.msk [vmem:[#allocation3 + $0xa8] sm:$0xff] %vm1262_vm7, %v1209_v5 }
 0x205   : > { %1476 = vst.msk [vmem:[#allocation3 + $0xa0] sm:$0xff] %vm1455_vm8, %v1400_v41  ;;  %1228 = vrot.lane.b32.xlu1 %v1133_v16, %s2828_s11 }
 0x206   : > { %1419 = vrot.lane.b32.xlu0 %v1325_v26, %s2829_s12 }
 0x207   : > { %v1213_v14 = vpop.permute.xlu1 %1212 }
 0x208   : > { %v1404_v42 = vpop.permute.xlu0 %1403  ;;  %1286 = vst.msk [vmem:[#allocation3 + $0xb8] sm:$0xff] %vm1262_vm7, %v1213_v14 }
 0x209   : > { %1478 = vst.msk [vmem:[#allocation3 + $0xb0] sm:$0xff] %vm1455_vm8, %v1404_v42  ;;  %1417 = vrot.lane.b32.xlu1 %v3789_v40, %s2829_s12 }
 0x20a   : > { %1609 = vrot.lane.b32.xlu0 %v939_v12, %s2830_s13 }
 0x20b   : > { %v1402_v44 = vpop.permute.xlu1 %1401 }
 0x20c   : > { %v1594_v57 = vpop.permute.xlu0 %1593  ;;  %1477 = vst.msk [vmem:[#allocation3 + $0xa8] sm:$0xff] %vm1455_vm8, %v1402_v44 }
 0x20d   : > { %1670 = vst.msk [vmem:[#allocation3 + $0xa0] sm:$0xff] %vm1649_vm9, %v1594_v57  ;;  %1421 = vrot.lane.b32.xlu1 %v1326_v51, %s2829_s12  ;;  %s268_s12 = scalar_lea.vmem %s4249_s6, %s4252_s22 }
 0x20e   : > { %1613 = vrot.lane.b32.xlu0 %v1519_v43, %s2830_s13 }
 0x20f   : > { %v1406_v17 = vpop.permute.xlu1 %1405 }
 0x210   : > { %v1598_v2 = vpop.permute.xlu0 %1597  ;;  %1479 = vst.msk [vmem:[#allocation3 + $0xb8] sm:$0xff] %vm1455_vm8, %v1406_v17 }
 0x211   : > { %1672 = vst.msk [vmem:[#allocation3 + $0xb0] sm:$0xff] %vm1649_vm9, %v1598_v2  ;;  %1611 = vrot.lane.b32.xlu1 %v940_v6, %s2830_s13 }
 0x212   : > { %1802 = vrot.lane.b32.xlu0 %v1132_v9, %s2831_s14 }
 0x213   : > { %v1596_v58 = vpop.permute.xlu1 %1595 }
 0x214   : > { %v1787_v20 = vpop.permute.xlu0 %1786  ;;  %1671 = vst.msk [vmem:[#allocation3 + $0xa8] sm:$0xff] %vm1649_vm9, %v1596_v58 }
 0x215   : > { %1863 = vst.msk [vmem:[#allocation3 + $0xa0] sm:$0xff] %vm1842_vm10, %v1787_v20  ;;  %1615 = vrot.lane.b32.xlu1 %v1520_v52, %s2830_s13 }
 0x216   : > { %1806 = vrot.lane.b32.xlu0 %v1712_v19, %s2831_s14  ;;  %v3855_v21 = vpop.f32.mrf.mxu0 }
 0x217   : > { %2357 = vst.msk [vmem:[%s3765_s7 + $0x30] sm:$0xff] %vm2350_vm13, %v3855_v21  ;;  %v1600_v59 = vpop.permute.xlu1 %1599 }
 0x218   : > { %v1791_v38 = vpop.permute.xlu0 %1790  ;;  %1673 = vst.msk [vmem:[#allocation3 + $0xb8] sm:$0xff] %vm1649_vm9, %v1600_v59  ;;  %v3861_v22 = vpop.f32.mrf.mxu0 }
 0x219   : > { %1865 = vst.msk [vmem:[#allocation3 + $0xb0] sm:$0xff] %vm1842_vm10, %v1791_v38  ;;  %1804 = vrot.lane.b32.xlu1 %v1133_v16, %s2831_s14 }
 0x21a   : > { %2355 = vst.msk [vmem:[%s3765_s7 + $0x20] sm:$0xff] %vm2350_vm13, %v3861_v22  ;;  %1995 = vrot.lane.b32.xlu0 %v1325_v26, %s2832_s19  ;;  %v3869_v23 = vpop.f32.mrf.mxu0 }
 0x21b   : > { %2358 = vst.msk [vmem:[%s3765_s7 + $0x38] sm:$0xff] %vm2350_vm13, %v3869_v23  ;;  %v1789_v25 = vpop.permute.xlu1 %1788 }
 0x21c   : > { %v1980_v28 = vpop.permute.xlu0 %1979  ;;  %1864 = vst.msk [vmem:[#allocation3 + $0xa8] sm:$0xff] %vm1842_vm10, %v1789_v25  ;;  %v3875_v45 = vpop.f32.mrf.mxu0 }
 0x21d   : > { %2056 = vst.msk [vmem:[#allocation3 + $0xa0] sm:$0xff] %vm2035_vm11, %v1980_v28  ;;  %1808 = vrot.lane.b32.xlu1 %v1713_v24, %s2831_s14 }
 0x21e   : > { %2356 = vst.msk [vmem:[%s3765_s7 + $0x28] sm:$0xff] %vm2350_vm13, %v3875_v45  ;;  %1999 = vrot.lane.b32.xlu0 %v1905_v53, %s2832_s19 }
 0x21f   : > { %v1793_v7 = vpop.permute.xlu1 %1792 }
 0x220   : > { %v1984_v47 = vpop.permute.xlu0 %1983  ;;  %1866 = vst.msk [vmem:[#allocation3 + $0xb8] sm:$0xff] %vm1842_vm10, %v1793_v7 }
 0x221   : > { %2058 = vst.msk [vmem:[#allocation3 + $0xb0] sm:$0xff] %vm2035_vm11, %v1984_v47  ;;  %1997 = vrot.lane.b32.xlu1 %v1326_v51, %s2832_s19 }
 0x223   : > { %v1982_v29 = vpop.permute.xlu1 %1981 }
 0x224   : > { %v829_v60 = vpop.permute.xlu0 %828  ;;  %2057 = vst.msk [vmem:[#allocation3 + $0xa8] sm:$0xff] %vm2035_vm11, %v1982_v29  ;;  %v2088_v63 = vld [vmem:[#allocation3 + $0xa0] sm:$0xff] }
 0x225   : > { %901 = vst.msk [vmem:[#allocation3 + $0xc0] sm:$0xff] %vm876_vm5, %v829_v60  ;;  %2001 = vrot.lane.b32.xlu1 %v1906_v54, %s2832_s19 }
 0x227   : > { %v1986_v30 = vpop.permute.xlu1 %1985 }
 0x228   : > { %v833_v8 = vpop.permute.xlu0 %832  ;;  %2059 = vst.msk [vmem:[#allocation3 + $0xb8] sm:$0xff] %vm2035_vm11, %v1986_v30  ;;  %v2090_v40 = vld [vmem:[#allocation3 + $0xb0] sm:$0xff] }
 0x229   : > { %903 = vst.msk [vmem:[#allocation3 + $0xd0] sm:$0xff] %vm876_vm5, %v833_v8 }
 0x22b   : > { %v831_v61 = vpop.permute.xlu1 %830  ;;  %v2089_v31 = vld [vmem:[#allocation3 + $0xa8] sm:$0xff] }
 0x22c   : > { %v1022_v48 = vpop.permute.xlu0 %1021  ;;  %902 = vst.msk [vmem:[#allocation3 + $0xc8] sm:$0xff] %vm876_vm5, %v831_v61  ;;  %v2110_v32 = vpack.c.bf16 %v2089_v31, %v2088_v63 }
 0x22d   : > { %1094 = vst.msk [vmem:[#allocation3 + $0xc0] sm:$0xff] %vm1069_vm6, %v1022_v48 }
 0x22e   : > { %2774 = vmatprep.mubr.msk.bf16.mxu1 %vm2136_vm12, %v2110_v32 }
 0x22f   : > { %v835_v34 = vpop.permute.xlu1 %834  ;;  %v2091_v11 = vld [vmem:[#allocation3 + $0xb8] sm:$0xff] }
 0x230   : > { %v1026_v36 = vpop.permute.xlu0 %1025  ;;  %904 = vst.msk [vmem:[#allocation3 + $0xd8] sm:$0xff] %vm876_vm5, %v835_v34  ;;  %v2111_v15 = vpack.c.bf16 %v2091_v11, %v2090_v40 }
 0x231   : > { %1096 = vst.msk [vmem:[#allocation3 + $0xd0] sm:$0xff] %vm1069_vm6, %v1026_v36 }
 0x232   : > { %2775 = vmatmul.mubr.msk.bf16.gmra.mxu1 %vm2136_vm12, %v2111_v15 }
 0x233   : > { %v1024_v55 = vpop.permute.xlu1 %1023 }
 0x234   : > { %v1215_v12 = vpop.permute.xlu0 %1214  ;;  %1095 = vst.msk [vmem:[#allocation3 + $0xc8] sm:$0xff] %vm1069_vm6, %v1024_v55 }
 0x235   : > { %1287 = vst.msk [vmem:[#allocation3 + $0xc0] sm:$0xff] %vm1262_vm7, %v1215_v12 }
 0x237   : > { %v1028_v49 = vpop.permute.xlu1 %1027 }
 0x238   : > { %v1219_v37 = vpop.permute.xlu0 %1218  ;;  %1097 = vst.msk [vmem:[#allocation3 + $0xd8] sm:$0xff] %vm1069_vm6, %v1028_v49 }
 0x239   : > { %1289 = vst.msk [vmem:[#allocation3 + $0xd0] sm:$0xff] %vm1262_vm7, %v1219_v37 }
 0x23b   : > { %v1217_v1 = vpop.permute.xlu1 %1216 }
 0x23c   : > { %v1408_v18 = vpop.permute.xlu0 %1407  ;;  %1288 = vst.msk [vmem:[#allocation3 + $0xc8] sm:$0xff] %vm1262_vm7, %v1217_v1 }
 0x23d   : > { %1480 = vst.msk [vmem:[#allocation3 + $0xc0] sm:$0xff] %vm1455_vm8, %v1408_v18 }
 0x23f   : > { %v1221_v0 = vpop.permute.xlu1 %1220 }
 0x240   : > { %v1412_v39 = vpop.permute.xlu0 %1411  ;;  %1290 = vst.msk [vmem:[#allocation3 + $0xd8] sm:$0xff] %vm1262_vm7, %v1221_v0 }
 0x241   : > { %1482 = vst.msk [vmem:[#allocation3 + $0xd0] sm:$0xff] %vm1455_vm8, %v1412_v39 }
 0x243   : > { %v1410_v50 = vpop.permute.xlu1 %1409 }
 0x244   : > { %v1602_v56 = vpop.permute.xlu0 %1601  ;;  %1481 = vst.msk [vmem:[#allocation3 + $0xc8] sm:$0xff] %vm1455_vm8, %v1410_v50 }
 0x245   : > { %1674 = vst.msk [vmem:[#allocation3 + $0xc0] sm:$0xff] %vm1649_vm9, %v1602_v56 }
 0x247   : > { %v1414_v3 = vpop.permute.xlu1 %1413 }
 0x248   : > { %v1606_v6 = vpop.permute.xlu0 %1605  ;;  %1483 = vst.msk [vmem:[#allocation3 + $0xd8] sm:$0xff] %vm1455_vm8, %v1414_v3 }
 0x249   : > { %1676 = vst.msk [vmem:[#allocation3 + $0xd0] sm:$0xff] %vm1649_vm9, %v1606_v6 }
 0x24a   : > { %v3909_v9 = vpop.f32.mrf.mxu0 }
 0x24b   : > { %2361 = vst.msk [vmem:[%s3765_s7 + $0x50] sm:$0xff] %vm2350_vm13, %v3909_v9  ;;  %v1604_v13 = vpop.permute.xlu1 %1603 }
 0x24c   : > { %v1795_v46 = vpop.permute.xlu0 %1794  ;;  %1675 = vst.msk [vmem:[#allocation3 + $0xc8] sm:$0xff] %vm1649_vm9, %v1604_v13  ;;  %v3915_v4 = vpop.f32.mrf.mxu0 }
 0x24d   : > { %1867 = vst.msk [vmem:[#allocation3 + $0xc0] sm:$0xff] %vm1842_vm10, %v1795_v46 }
 0x24e   : > { %2359 = vst.msk [vmem:[%s3765_s7 + $0x40] sm:$0xff] %vm2350_vm13, %v3915_v4  ;;  %v3921_v10 = vpop.f32.mrf.mxu0 }
 0x24f   : > { %2362 = vst.msk [vmem:[%s3765_s7 + $0x58] sm:$0xff] %vm2350_vm13, %v3921_v10  ;;  %v1608_v16 = vpop.permute.xlu1 %1607 }
 0x250   : > { %v1799_v26 = vpop.permute.xlu0 %1798  ;;  %1677 = vst.msk [vmem:[#allocation3 + $0xd8] sm:$0xff] %vm1649_vm9, %v1608_v16  ;;  %v3927_v5 = vpop.f32.mrf.mxu0 }
 0x251   : > { %1869 = vst.msk [vmem:[#allocation3 + $0xd0] sm:$0xff] %vm1842_vm10, %v1799_v26 }
 0x252   : > { %2360 = vst.msk [vmem:[%s3765_s7 + $0x48] sm:$0xff] %vm2350_vm13, %v3927_v5 }
 0x253   : > { %v1797_v41 = vpop.permute.xlu1 %1796 }
 0x254   : > { %v1988_v14 = vpop.permute.xlu0 %1987  ;;  %1868 = vst.msk [vmem:[#allocation3 + $0xc8] sm:$0xff] %vm1842_vm10, %v1797_v41 }
 0x255   : > { %2060 = vst.msk [vmem:[#allocation3 + $0xc0] sm:$0xff] %vm2035_vm11, %v1988_v14 }
 0x257   : > { %v1801_v42 = vpop.permute.xlu1 %1800 }
 0x258   : > { %v1992_v51 = vpop.permute.xlu0 %1991  ;;  %1870 = vst.msk [vmem:[#allocation3 + $0xd8] sm:$0xff] %vm1842_vm10, %v1801_v42 }
 0x259   : > { %2062 = vst.msk [vmem:[#allocation3 + $0xd0] sm:$0xff] %vm2035_vm11, %v1992_v51 }
 0x25b   : > { %v1990_v43 = vpop.permute.xlu1 %1989 }
 0x25c   : > { %v837_v44 = vpop.permute.xlu0 %836  ;;  %2061 = vst.msk [vmem:[#allocation3 + $0xc8] sm:$0xff] %vm2035_vm11, %v1990_v43  ;;  %v2092_v2 = vld [vmem:[#allocation3 + $0xc0] sm:$0xff] }
 0x25d   : > { %905 = vst.msk [vmem:[#allocation3 + $0xe0] sm:$0xff] %vm876_vm5, %v837_v44 }
 0x25f   : > { %v1994_v57 = vpop.permute.xlu1 %1993 }
 0x260   : > { %v841_v17 = vpop.permute.xlu0 %840  ;;  %2063 = vst.msk [vmem:[#allocation3 + $0xd8] sm:$0xff] %vm2035_vm11, %v1994_v57  ;;  %v2094_v59 = vld [vmem:[#allocation3 + $0xd0] sm:$0xff]  ;;  %v2384_v57 = vsel %vm2350_vm13, %v3795_v35, 0.0 }
 0x261   : > { %907 = vst.msk [vmem:[#allocation3 + $0xf0] sm:$0xff] %vm876_vm5, %v841_v17  ;;  %v2383_v17 = vsel %vm2350_vm13, %v3778_v33, 0.0 }
 0x263   : > { %v839_v52 = vpop.permute.xlu1 %838  ;;  %v2093_v19 = vld [vmem:[#allocation3 + $0xc8] sm:$0xff] }
 0x264   : > { %v1030_v58 = vpop.permute.xlu0 %1029  ;;  %906 = vst.msk [vmem:[#allocation3 + $0xe8] sm:$0xff] %vm876_vm5, %v839_v52  ;;  %v2112_v20 = vpack.c.bf16 %v2093_v19, %v2092_v2  ;;  %v2385_v2 = vadd.f32 %v2384_v57, %v2383_v17  ;;  %v2386_v52 = vsel %vm2350_vm13, %v3772_v27, 0.0 }
 0x265   : > { %1098 = vst.msk [vmem:[#allocation3 + $0xe0] sm:$0xff] %vm1069_vm6, %v1030_v58  ;;  %v2388_v58 = vsel %vm2350_vm13, %v3787_v62, 0.0 }
 0x266   : > { %2778 = vmatprep.mubr.msk.bf16.mxu1 %vm2136_vm12, %v2112_v20  ;;  %v2387_v19 = vadd.f32 %v2386_v52, %v2385_v2  ;;  %v2390_v20 = vsel %vm2350_vm13, %v3861_v22, 0.0 }
 0x267   : > { %v843_v38 = vpop.permute.xlu1 %842  ;;  %v2095_v24 = vld [vmem:[#allocation3 + $0xd8] sm:$0xff] }
 0x268   : > { %v1034_v53 = vpop.permute.xlu0 %1033  ;;  %908 = vst.msk [vmem:[#allocation3 + $0xf8] sm:$0xff] %vm876_vm5, %v843_v38  ;;  %v2113_v25 = vpack.c.bf16 %v2095_v24, %v2094_v59  ;;  %v2389_v59 = vadd.f32 %v2388_v58, %v2387_v19  ;;  %v2392_v38 = vsel %vm2350_vm13, %v3875_v45, 0.0 }
 0x269   : > { %1100 = vst.msk [vmem:[#allocation3 + $0xf0] sm:$0xff] %vm1069_vm6, %v1034_v53 }
 0x26a   : > { %2779 = vmatmul.mubr.msk.bf16.gmra.mxu1 %vm2136_vm12, %v2113_v25  ;;  %v2391_v24 = vadd.f32 %v2390_v20, %v2389_v59  ;;  %v2394_v25 = vsel %vm2350_vm13, %v3855_v21, 0.0 }
 0x26b   : > { %v1032_v28 = vpop.permute.xlu1 %1031 }
 0x26c   : > { %v1223_v7 = vpop.permute.xlu0 %1222  ;;  %1099 = vst.msk [vmem:[#allocation3 + $0xe8] sm:$0xff] %vm1069_vm6, %v1032_v28  ;;  %v2393_v53 = vadd.f32 %v2392_v38, %v2391_v24 }
 0x26d   : > { %1291 = vst.msk [vmem:[#allocation3 + $0xe0] sm:$0xff] %vm1262_vm7, %v1223_v7  ;;  %v2396_v7 = vsel %vm2350_vm13, %v3869_v23, 0.0 }
 0x26e   : > { %v2395_v28 = vadd.f32 %v2394_v25, %v2393_v53 }
 0x26f   : > { %v1036_v47 = vpop.permute.xlu1 %1035 }
 0x270   : > { %v1227_v54 = vpop.permute.xlu0 %1226  ;;  %1101 = vst.msk [vmem:[#allocation3 + $0xf8] sm:$0xff] %vm1069_vm6, %v1036_v47  ;;  %v2398_v47 = vsel %vm2350_vm13, %v3915_v4, 0.0 }
 0x271   : > { %1293 = vst.msk [vmem:[#allocation3 + $0xf0] sm:$0xff] %vm1262_vm7, %v1227_v54  ;;  %v2397_v54 = vadd.f32 %v2396_v7, %v2395_v28 }
 0x273   : > { %v1225_v29 = vpop.permute.xlu1 %1224 }
 0x274   : > { %v1416_v60 = vpop.permute.xlu0 %1415  ;;  %1292 = vst.msk [vmem:[#allocation3 + $0xe8] sm:$0xff] %vm1262_vm7, %v1225_v29 }
 0x275   : > { %1484 = vst.msk [vmem:[#allocation3 + $0xe0] sm:$0xff] %vm1455_vm8, %v1416_v60  ;;  %v2400_v60 = vsel %vm2350_vm13, %v3927_v5, 0.0 }
 0x277   : > { %v1229_v30 = vpop.permute.xlu1 %1228 }
 0x278   : > { %v1420_v8 = vpop.permute.xlu0 %1419  ;;  %1294 = vst.msk [vmem:[#allocation3 + $0xf8] sm:$0xff] %vm1262_vm7, %v1229_v30  ;;  %v2399_v30 = vadd.f32 %v2398_v47, %v2397_v54 }
 0x279   : > { %1486 = vst.msk [vmem:[#allocation3 + $0xf0] sm:$0xff] %vm1455_vm8, %v1420_v8 }
 0x27b   : > { %v1418_v63 = vpop.permute.xlu1 %1417 }
 0x27c   : > { %v1610_v61 = vpop.permute.xlu0 %1609  ;;  %1485 = vst.msk [vmem:[#allocation3 + $0xe8] sm:$0xff] %vm1455_vm8, %v1418_v63  ;;  %v2401_v63 = vadd.f32 %v2400_v60, %v2399_v30 }
 0x27d   : > { %1678 = vst.msk [vmem:[#allocation3 + $0xe0] sm:$0xff] %vm1649_vm9, %v1610_v61 }
 0x27f   : > { %v1422_v31 = vpop.permute.xlu1 %1421 }
 0x280   : > { %v1614_v48 = vpop.permute.xlu0 %1613  ;;  %1487 = vst.msk [vmem:[#allocation3 + $0xf8] sm:$0xff] %vm1455_vm8, %v1422_v31 }
 0x281   : > { %1680 = vst.msk [vmem:[#allocation3 + $0xf0] sm:$0xff] %vm1649_vm9, %v1614_v48  ;;  %v2402_v48 = vsel %vm2350_vm13, %v3909_v9, 0.0 }
 0x282   : > { %v3959_v32 = vpop.f32.mrf.mxu0 }
 0x283   : > { %2365 = vst.msk [vmem:[%s3765_s7 + $0x70] sm:$0xff] %vm2350_vm13, %v3959_v32  ;;  %v1612_v40 = vpop.permute.xlu1 %1611 }
 0x284   : > { %v1803_v34 = vpop.permute.xlu0 %1802  ;;  %1679 = vst.msk [vmem:[#allocation3 + $0xe8] sm:$0xff] %vm1649_vm9, %v1612_v40  ;;  %v3965_v11 = vpop.f32.mrf.mxu0  ;;  %v2403_v40 = vadd.f32 %v2402_v48, %v2401_v63 }
 0x285   : > { %1871 = vst.msk [vmem:[#allocation3 + $0xe0] sm:$0xff] %vm1842_vm10, %v1803_v34  ;;  %v2404_v34 = vsel %vm2350_vm13, %v3921_v10, 0.0 }
 0x286   : > { %2363 = vst.msk [vmem:[%s3765_s7 + $0x60] sm:$0xff] %vm2350_vm13, %v3965_v11  ;;  %v3971_v36 = vpop.f32.mrf.mxu0 }
 0x287   : > { %2366 = vst.msk [vmem:[%s3765_s7 + $0x78] sm:$0xff] %vm2350_vm13, %v3971_v36  ;;  %v1616_v15 = vpop.permute.xlu1 %1615 }
 0x288   : > { %v1807_v55 = vpop.permute.xlu0 %1806  ;;  %1681 = vst.msk [vmem:[#allocation3 + $0xf8] sm:$0xff] %vm1649_vm9, %v1616_v15  ;;  %v3977_v12 = vpop.f32.mrf.mxu0  ;;  %v2406_v15 = vsel %vm2350_vm13, %v3965_v11, 0.0 }
 0x289   : > { %1873 = vst.msk [vmem:[#allocation3 + $0xf0] sm:$0xff] %vm1842_vm10, %v1807_v55  ;;  %v2405_v55 = vadd.f32 %v2404_v34, %v2403_v40 }
 0x28a   : > { %2364 = vst.msk [vmem:[%s3765_s7 + $0x68] sm:$0xff] %vm2350_vm13, %v3977_v12 }
 0x28b   : > { %v1805_v49 = vpop.permute.xlu1 %1804 }
 0x28c   : > { %v1996_v37 = vpop.permute.xlu0 %1995  ;;  %1872 = vst.msk [vmem:[#allocation3 + $0xe8] sm:$0xff] %vm1842_vm10, %v1805_v49  ;;  %v2408_v49 = vsel %vm2350_vm13, %v3977_v12, 0.0 }
 0x28d   : > { %2064 = vst.msk [vmem:[#allocation3 + $0xe0] sm:$0xff] %vm2035_vm11, %v1996_v37  ;;  %v2407_v37 = vadd.f32 %v2406_v15, %v2405_v55 }
 0x28f   : > { %v1809_v1 = vpop.permute.xlu1 %1808 }
 0x290   : > { %v2000_v18 = vpop.permute.xlu0 %1999  ;;  %1874 = vst.msk [vmem:[#allocation3 + $0xf8] sm:$0xff] %vm1842_vm10, %v1809_v1  ;;  %v2409_v1 = vadd.f32 %v2408_v49, %v2407_v37 }
 0x291   : > { %2066 = vst.msk [vmem:[#allocation3 + $0xf0] sm:$0xff] %vm2035_vm11, %v2000_v18  ;;  %v2410_v18 = vsel %vm2350_vm13, %v3959_v32, 0.0 }
 0x293   : > { %v1998_v0 = vpop.permute.xlu1 %1997 }
 0x294   : > { %2065 = vst.msk [vmem:[#allocation3 + $0xe8] sm:$0xff] %vm2035_vm11, %v1998_v0  ;;  %v2096_v50 = vld [vmem:[#allocation3 + $0xe0] sm:$0xff]  ;;  %v2411_v0 = vadd.f32 %v2410_v18, %v2409_v1 }
 0x297   : > { %v2002_v39 = vpop.permute.xlu1 %2001 }
 0x298   : > { %2067 = vst.msk [vmem:[#allocation3 + $0xf8] sm:$0xff] %vm2035_vm11, %v2002_v39  ;;  %v2098_v6 = vld [vmem:[#allocation3 + $0xf0] sm:$0xff]  ;;  %v2412_v39 = vsel %vm2350_vm13, %v3971_v36, 0.0 }
 0x29b   : > { %v2097_v56 = vld [vmem:[#allocation3 + $0xe8] sm:$0xff] }
 0x29c   : > { %v2114_v3 = vpack.c.bf16 %v2097_v56, %v2096_v50  ;;  %v2413_v56 = vadd.f32 %v2412_v39, %v2411_v0 }
 0x29e   : > { %2782 = vmatprep.mubr.msk.bf16.mxu1 %vm2136_vm12, %v2114_v3 }
 0x29f   : > { %v2099_v13 = vld [vmem:[#allocation3 + $0xf8] sm:$0xff] }
 0x2a0   : > { %v2115_v46 = vpack.c.bf16 %v2099_v13, %v2098_v6 }
 0x2a2   : > { %2783 = vmatmul.mubr.msk.bf16.gmra.mxu1 %vm2136_vm12, %v2115_v46 }
 0x2ba   : > { %v3991_v16 = vpop.f32.mrf.mxu1 }
 0x2bb   : > { %2369 = vst.msk [vmem:[%s3765_s7 + $0x90] sm:$0xff] %vm2350_vm13, %v3991_v16  ;;  %v2418_v46 = vsel %vm2350_vm13, %v3991_v16, 0.0 }
 0x2bc   : > { %v3996_v26 = vpop.f32.mrf.mxu1 }
 0x2bd   : > { %2367 = vst.msk [vmem:[%s3765_s7 + $0x80] sm:$0xff] %vm2350_vm13, %v3996_v26  ;;  %v2414_v50 = vsel %vm2350_vm13, %v3996_v26, 0.0 }
 0x2be   : > { %v4001_v41 = vpop.f32.mrf.mxu1  ;;  %v2415_v6 = vadd.f32 %v2414_v50, %v2413_v56 }
 0x2bf   : > { %2370 = vst.msk [vmem:[%s3765_s7 + $0x98] sm:$0xff] %vm2350_vm13, %v4001_v41  ;;  %v2420_v17 = vsel %vm2350_vm13, %v4001_v41, 0.0 }
 0x2c0   : > { %v4006_v14 = vpop.f32.mrf.mxu1 }
 0x2c1   : > { %2368 = vst.msk [vmem:[%s3765_s7 + $0x88] sm:$0xff] %vm2350_vm13, %v4006_v14  ;;  %v2416_v3 = vsel %vm2350_vm13, %v4006_v14, 0.0 }
 0x2c2   : > { %v2417_v13 = vadd.f32 %v2416_v3, %v2415_v6 }
 0x2c4   : > { %v2419_v57 = vadd.f32 %v2418_v46, %v2417_v13 }
 0x2c6   : > { %v2421_v52 = vadd.f32 %v2420_v17, %v2419_v57 }
 0x2f2   : > { %v4011_v42 = vpop.f32.mrf.mxu1 }
 0x2f3   : > { %2373 = vst.msk [vmem:[%s3765_s7 + $0xb0] sm:$0xff] %vm2350_vm13, %v4011_v42  ;;  %v2426_v59 = vsel %vm2350_vm13, %v4011_v42, 0.0 }
 0x2f4   : > { %v4016_v51 = vpop.f32.mrf.mxu1 }
 0x2f5   : > { %2371 = vst.msk [vmem:[%s3765_s7 + $0xa0] sm:$0xff] %vm2350_vm13, %v4016_v51  ;;  %v2422_v2 = vsel %vm2350_vm13, %v4016_v51, 0.0 }
 0x2f6   : > { %v4021_v43 = vpop.f32.mrf.mxu1  ;;  %v2423_v58 = vadd.f32 %v2422_v2, %v2421_v52 }
 0x2f7   : > { %2374 = vst.msk [vmem:[%s3765_s7 + $0xb8] sm:$0xff] %vm2350_vm13, %v4021_v43  ;;  %v2428_v24 = vsel %vm2350_vm13, %v4021_v43, 0.0 }
 0x2f8   : > { %v4026_v44 = vpop.f32.mrf.mxu1 }
 0x2f9   : > { %2372 = vst.msk [vmem:[%s3765_s7 + $0xa8] sm:$0xff] %vm2350_vm13, %v4026_v44  ;;  %v2424_v19 = vsel %vm2350_vm13, %v4026_v44, 0.0 }
 0x2fa   : > { %v2425_v20 = vadd.f32 %v2424_v19, %v2423_v58 }
 0x2fc   : > { %v2427_v38 = vadd.f32 %v2426_v59, %v2425_v20 }
 0x2fe   : > { %v2429_v25 = vadd.f32 %v2428_v24, %v2427_v38 }
 0x32a   : > { %v4049_v29 = vpop.f32.mrf.mxu1 }
 0x32b   : > { %2377 = vst.msk [vmem:[%s3765_s7 + $0xd0] sm:$0xff] %vm2350_vm13, %v4049_v29  ;;  %v2434_v54 = vsel %vm2350_vm13, %v4049_v29, 0.0 }
 0x32c   : > { %v4056_v8 = vpop.f32.mrf.mxu1 }
 0x32d   : > { %2375 = vst.msk [vmem:[%s3765_s7 + $0xc0] sm:$0xff] %vm2350_vm13, %v4056_v8  ;;  %v2430_v53 = vsel %vm2350_vm13, %v4056_v8, 0.0 }
 0x32e   : > { %v4061_v61 = vpop.f32.mrf.mxu1  ;;  %v2431_v7 = vadd.f32 %v2430_v53, %v2429_v25 }
 0x32f   : > { %2378 = vst.msk [vmem:[%s3765_s7 + $0xd8] sm:$0xff] %vm2350_vm13, %v4061_v61  ;;  %v2436_v48 = vsel %vm2350_vm13, %v4061_v61, 0.0 }
 0x330   : > { %v4066_v31 = vpop.f32.mrf.mxu1 }
 0x331   : > { %2376 = vst.msk [vmem:[%s3765_s7 + $0xc8] sm:$0xff] %vm2350_vm13, %v4066_v31  ;;  %v2432_v28 = vsel %vm2350_vm13, %v4066_v31, 0.0 }
 0x332   : > { %v2433_v47 = vadd.f32 %v2432_v28, %v2431_v7 }
 0x334   : > { %v2435_v60 = vadd.f32 %v2434_v54, %v2433_v47 }
 0x336   : > { %v2437_v34 = vadd.f32 %v2436_v48, %v2435_v60 }
 0x362   : > { %v2784_v30 = vpop.f32.mrf.mxu1 }
 0x363   : > { %2381 = vst.msk [vmem:[%s3765_s7 + $0xf0] sm:$0xff] %vm2350_vm13, %v2784_v30  ;;  %v2442_v18 = vsel %vm2350_vm13, %v2784_v30, 0.0 }
 0x364   : > { %v2335_v63 = vpop.f32.mrf.mxu1 }
 0x365   : > { %2379 = vst.msk [vmem:[%s3765_s7 + $0xe0] sm:$0xff] %vm2350_vm13, %v2335_v63  ;;  %v2438_v40 = vsel %vm2350_vm13, %v2335_v63, 0.0 }
 0x366   : > { %v2785_v15 = vpop.f32.mrf.mxu1  ;;  %v2439_v55 = vadd.f32 %v2438_v40, %v2437_v34 }
 0x367   : > { %2382 = vst.msk [vmem:[%s3765_s7 + $0xf8] sm:$0xff] %vm2350_vm13, %v2785_v15  ;;  %v2444_v39 = vsel %vm2350_vm13, %v2785_v15, 0.0 }
 0x368   : > { %v2338_v49 = vpop.f32.mrf.mxu1 }
 0x369   : > { %2380 = vst.msk [vmem:[%s3765_s7 + $0xe8] sm:$0xff] %vm2350_vm13, %v2338_v49  ;;  %v2440_v37 = vsel %vm2350_vm13, %v2338_v49, 0.0 }
 0x36a   : > { %v2441_v1 = vadd.f32 %v2440_v37, %v2439_v55 }
 0x36c   : > { %v2443_v0 = vadd.f32 %v2442_v18, %v2441_v1 }
 0x36e   : > { %v2445_v50 = vadd.f32 %v2444_v39, %v2443_v0 }
 0x370   : > { %v2446_v56 = vrot.slane %v2445_v50, 4 }
 0x372   : > { %v2447_v3 = vadd.f32 %v2446_v56, %v2445_v50 }
 0x374   : > { %v2448_v6 = vrot.slane %v2447_v3, 2 }
 0x376   : > { %v2449_v13 = vadd.f32 %v2448_v6, %v2447_v3 }
 0x378   : > { %v2450_v46 = vrot.slane %v2449_v13, 1 }
 0x37a   : > { %v2451_v57 = vadd.f32 %v2450_v46, %v2449_v13 }
 0x37c   : > { %v4123_v17 = vmul.f32 0.00390625, %v2451_v57 }
 0x37e   : > { %2487 = vst.msk [vmem:[%s265_s9] sm:$0x1] %vm2486_vm14, %v4123_v17  ;;  %v4128_v2 = vsub.f32 %v2335_v63, %v4123_v17  ;;  %v4131_v52 = vsub.f32 %v2338_v49, %v4123_v17  ;;  %v4134_v19 = vsub.f32 %v2784_v30, %v4123_v17  ;;  %v4137_v58 = vsub.f32 %v2785_v15, %v4123_v17 }
 0x37f   : > { %v2454_v20 = vsub.f32 %v3778_v33, %v4123_v17  ;;  %v2455_v59 = vsub.f32 %v3795_v35, %v4123_v17  ;;  %v2456_v38 = vsub.f32 %v3772_v27, %v4123_v17  ;;  %v2457_v24 = vsub.f32 %v3787_v62, %v4123_v17 }
 0x380   : > { %v2458_v28 = vsub.f32 %v3861_v22, %v4123_v17  ;;  %v2459_v47 = vsub.f32 %v3875_v45, %v4123_v17  ;;  %v2460_v27 = vsub.f32 %v3855_v21, %v4123_v17  ;;  %v2461_v22 = vsub.f32 %v3869_v23, %v4123_v17 }
 0x381   : > { %v2488_v53 = vmul.f32 %v2454_v20, %v2454_v20  ;;  %v2489_v25 = vmul.f32 %v2455_v59, %v2455_v59  ;;  %v2490_v7 = vmul.f32 %v2456_v38, %v2456_v38  ;;  %v2491_v54 = vmul.f32 %v2457_v24, %v2457_v24 }
 0x382   : > { %v2492_v30 = vmul.f32 %v2458_v28, %v2458_v28  ;;  %v2493_v48 = vmul.f32 %v2459_v47, %v2459_v47  ;;  %v2462_v34 = vsub.f32 %v3915_v4, %v4123_v17  ;;  %v2494_v15 = vmul.f32 %v2460_v27, %v2460_v27 }
 0x383   : > { %v2520_v33 = vsel %vm2350_vm13, %v2488_v53, 0.0  ;;  %v2521_v35 = vsel %vm2350_vm13, %v2489_v25, 0.0  ;;  %v2523_v62 = vsel %vm2350_vm13, %v2490_v7, 0.0  ;;  %v2525_v40 = vsel %vm2350_vm13, %v2491_v54, 0.0 }
 0x384   : > { %v2522_v60 = vadd.f32 %v2521_v35, %v2520_v33  ;;  %v2527_v55 = vsel %vm2350_vm13, %v2492_v30, 0.0  ;;  %v2463_v21 = vsub.f32 %v3927_v5, %v4123_v17  ;;  %v2495_v37 = vmul.f32 %v2461_v22, %v2461_v22 }
 0x385   : > { %v2529_v1 = vsel %vm2350_vm13, %v2493_v48, 0.0  ;;  %v2464_v23 = vsub.f32 %v3909_v9, %v4123_v17  ;;  %v2496_v0 = vmul.f32 %v2462_v34, %v2462_v34  ;;  %v2531_v39 = vsel %vm2350_vm13, %v2494_v15, 0.0 }
 0x386   : > { %v2524_v63 = vadd.f32 %v2523_v62, %v2522_v60  ;;  %v2465_v4 = vsub.f32 %v3921_v10, %v4123_v17  ;;  %v2497_v56 = vmul.f32 %v2463_v21, %v2463_v21  ;;  %v2533_v3 = vsel %vm2350_vm13, %v2495_v37, 0.0 }
 0x387   : > { %v2466_v5 = vsub.f32 %v3965_v11, %v4123_v17  ;;  %v2498_v13 = vmul.f32 %v2464_v23, %v2464_v23  ;;  %v2535_v46 = vsel %vm2350_vm13, %v2496_v0, 0.0  ;;  %v2467_v9 = vsub.f32 %v3977_v12, %v4123_v17 }
 0x388   : > { %v2526_v45 = vadd.f32 %v2525_v40, %v2524_v63  ;;  %v2499_v20 = vmul.f32 %v2465_v4, %v2465_v4  ;;  %v2537_v59 = vsel %vm2350_vm13, %v2497_v56, 0.0  ;;  %v2468_v10 = vsub.f32 %v3959_v32, %v4123_v17 }
 0x389   : > { %v2500_v24 = vmul.f32 %v2466_v5, %v2466_v5  ;;  %v2539_v53 = vsel %vm2350_vm13, %v2498_v13, 0.0  ;;  %v2469_v11 = vsub.f32 %v3971_v36, %v4123_v17  ;;  %v2501_v28 = vmul.f32 %v2467_v9, %v2467_v9 }
 0x38a   : > { %v2528_v49 = vadd.f32 %v2527_v55, %v2526_v45  ;;  %v2541_v7 = vsel %vm2350_vm13, %v2499_v20, 0.0  ;;  %v2470_v12 = vsub.f32 %v3996_v26, %v4123_v17  ;;  %v2502_v54 = vmul.f32 %v2468_v10, %v2468_v10 }
 0x38b   : > { %v2543_v33 = vsel %vm2350_vm13, %v2500_v24, 0.0  ;;  %v2471_v32 = vsub.f32 %v4006_v14, %v4123_v17  ;;  %v2503_v60 = vmul.f32 %v2469_v11, %v2469_v11  ;;  %v2545_v27 = vsel %vm2350_vm13, %v2501_v28, 0.0 }
 0x38c   : > { %v2530_v18 = vadd.f32 %v2529_v1, %v2528_v49  ;;  %v2472_v36 = vsub.f32 %v3991_v16, %v4123_v17  ;;  %v2504_v62 = vmul.f32 %v2470_v12, %v2470_v12  ;;  %v2547_v63 = vsel %vm2350_vm13, %v2502_v54, 0.0 }
 0x38d   : > { %v2473_v26 = vsub.f32 %v4001_v41, %v4123_v17  ;;  %v2505_v48 = vmul.f32 %v2471_v32, %v2471_v32  ;;  %v2549_v40 = vsel %vm2350_vm13, %v2503_v60, 0.0  ;;  %v2474_v14 = vsub.f32 %v4016_v51, %v4123_v17 }
 0x38e   : > { %v2532_v50 = vadd.f32 %v2531_v39, %v2530_v18  ;;  %v2506_v34 = vmul.f32 %v2472_v36, %v2472_v36  ;;  %v2551_v15 = vsel %vm2350_vm13, %v2504_v62, 0.0  ;;  %v2475_v16 = vsub.f32 %v4026_v44, %v4123_v17 }
 0x38f   : > { %v2507_v49 = vmul.f32 %v2473_v26, %v2473_v26  ;;  %v2553_v21 = vsel %vm2350_vm13, %v2505_v48, 0.0  ;;  %v2476_v41 = vsub.f32 %v4011_v42, %v4123_v17  ;;  %v2508_v1 = vmul.f32 %v2474_v14, %v2474_v14 }
 0x390   : > { %v2534_v6 = vadd.f32 %v2533_v3, %v2532_v50  ;;  %v2555_v18 = vsel %vm2350_vm13, %v2506_v34, 0.0  ;;  %v2477_v51 = vsub.f32 %v4021_v43, %v4123_v17  ;;  %v2509_v0 = vmul.f32 %v2475_v16, %v2475_v16 }
 0x391   : > { %v2557_v39 = vsel %vm2350_vm13, %v2507_v49, 0.0  ;;  %v2478_v44 = vsub.f32 %v4056_v8, %v4123_v17  ;;  %v2510_v4 = vmul.f32 %v2476_v41, %v2476_v41  ;;  %v2559_v56 = vsel %vm2350_vm13, %v2508_v1, 0.0 }
 0x392   : > { %v2536_v57 = vadd.f32 %v2535_v46, %v2534_v6  ;;  %v2479_v42 = vsub.f32 %v4066_v31, %v4123_v17  ;;  %v2511_v6 = vmul.f32 %v2477_v51, %v2477_v51  ;;  %v2561_v5 = vsel %vm2350_vm13, %v2509_v0, 0.0 }
 0x393   : > { %v2480_v43 = vsub.f32 %v4049_v29, %v4123_v17  ;;  %v2512_v46 = vmul.f32 %v2478_v44, %v2478_v44  ;;  %v2481_v8 = vsub.f32 %v4061_v61, %v4123_v17  ;;  %v2516_v29 = vmul.f32 %v4128_v2, %v4128_v2 }
 0x394   : > { %v2538_v38 = vadd.f32 %v2537_v59, %v2536_v57  ;;  %v2563_v57 = vsel %vm2350_vm13, %v2510_v4, 0.0  ;;  %v2513_v20 = vmul.f32 %v2479_v42, %v2479_v42  ;;  %v2565_v59 = vsel %vm2350_vm13, %v2511_v6, 0.0 }
 0x395   : > { %v2514_v10 = vmul.f32 %v2480_v43, %v2480_v43  ;;  %v2567_v31 = vsel %vm2350_vm13, %v2512_v46, 0.0  ;;  %v2517_v61 = vmul.f32 %v4131_v52, %v4131_v52  ;;  %v2518_v12 = vmul.f32 %v4134_v19, %v4134_v19 }
 0x396   : > { %v2540_v25 = vadd.f32 %v2539_v53, %v2538_v38  ;;  %v2515_v53 = vmul.f32 %v2481_v8, %v2481_v8  ;;  %v2575_v54 = vsel %vm2350_vm13, %v2516_v29, 0.0 }
 0x397   : > { %v2571_v28 = vsel %vm2350_vm13, %v2514_v10, 0.0  ;;  %v2577_v2 = vsel %vm2350_vm13, %v2517_v61, 0.0  ;;  %v2579_v60 = vsel %vm2350_vm13, %v2518_v12, 0.0 }
 0x398   : > { %v2542_v47 = vadd.f32 %v2541_v7, %v2540_v25  ;;  %v2569_v25 = vsel %vm2350_vm13, %v2513_v20, 0.0  ;;  %v2573_v17 = vsel %vm2350_vm13, %v2515_v53, 0.0 }
 0x39a   : > { %v2544_v35 = vadd.f32 %v2543_v33, %v2542_v47 }
 0x39c   : > { %v2546_v30 = vadd.f32 %v2545_v27, %v2544_v35  ;;  %v2519_v35 = vmul.f32 %v4137_v58, %v4137_v58 }
 0x39e   : > { %v2548_v22 = vadd.f32 %v2547_v63, %v2546_v30  ;;  %v2581_v52 = vsel %vm2350_vm13, %v2519_v35, 0.0 }
 0x3a0   : > { %v2550_v45 = vadd.f32 %v2549_v40, %v2548_v22 }
 0x3a2   : > { %v2552_v55 = vadd.f32 %v2551_v15, %v2550_v45 }
 0x3a4   : > { %v2554_v37 = vadd.f32 %v2553_v21, %v2552_v55 }
 0x3a6   : > { %v2556_v23 = vadd.f32 %v2555_v18, %v2554_v37 }
 0x3a8   : > { %v2558_v50 = vadd.f32 %v2557_v39, %v2556_v23 }
 0x3aa   : > { %v2560_v3 = vadd.f32 %v2559_v56, %v2558_v50 }
 0x3ac   : > { %v2562_v13 = vadd.f32 %v2561_v5, %v2560_v3 }
 0x3ae   : > { %v2564_v9 = vadd.f32 %v2563_v57, %v2562_v13 }
 0x3b0   : > { %v2566_v38 = vadd.f32 %v2565_v59, %v2564_v9 }
 0x3b2   : > { %v2568_v24 = vadd.f32 %v2567_v31, %v2566_v38 }
 0x3b4   : > { %v2570_v11 = vadd.f32 %v2569_v25, %v2568_v24 }
 0x3b6   : > { %v2572_v7 = vadd.f32 %v2571_v28, %v2570_v11 }
 0x3b8   : > { %v2574_v47 = vadd.f32 %v2573_v17, %v2572_v7 }
 0x3ba   : > { %v2576_v33 = vadd.f32 %v2575_v54, %v2574_v47 }
 0x3bc   : > { %v2578_v32 = vadd.f32 %v2577_v2, %v2576_v33 }
 0x3be   : > { %v2580_v27 = vadd.f32 %v2579_v60, %v2578_v32 }
 0x3c0   : > { %v2582_v30 = vadd.f32 %v2581_v52, %v2580_v27 }
 0x3c2   : > { %v2583_v36 = vrot.slane %v2582_v30, 4 }
 0x3c4   : > { %v2584_v62 = vadd.f32 %v2583_v36, %v2582_v30 }
 0x3c6   : > { %v2585_v63 = vrot.slane %v2584_v62, 2 }
 0x3c8   : > { %v2586_v22 = vadd.f32 %v2585_v63, %v2584_v62 }
 0x3ca   : > { %v2587_v19 = vrot.slane %v2586_v22, 1 }
 0x3cc   : > { %v2588_v26 = vadd.f32 %v2587_v19, %v2586_v22 }
 0x3ce   : > { %2589 = vst.msk [vmem:[%s268_s12] sm:$0x1] %vm2486_vm14, %v2588_v26 }
 0x3cf PF: > { %s17_s21 = sadd.s32 1, %s2822_s21  }
 0x3d0   : > { %p14_p4 = scmp.ge.s32.totalorder %s17_s21, 4  }
 0x3d2   :  { %16 = sbr.rel (!%p14_p4) target bundleno = 1 (0x1), region = 93 }

</bundles_post_ra>
